<compile_context>
chip_gen: v7x
topology: tpu7x:2x2x1
jax: 0.10.0
libtpu: 0.0.40
codegen_flags: <defaults>
</compile_context>

<pallas_src>
import jax
import jax.numpy as jnp
import numpy as np
from jax import lax
from jax.experimental import pallas as pl
from jax.experimental.pallas import tpu as pltpu

GRU_HIDDEN = 128      # GRU_HIDDEN_SIZE
SENT_EMBED = 16       # SENT_EMBED_SIZE
BERT_DIM = 768
FC1_DIM = 64


# ----------------------------------------------------------------------------
# Fused kernel: sentiment GRU recurrence -> fused FC head -> final reverse GRU.
# No grid; everything is VMEM-resident for the whole call, with recurrence-2
# weights prefetched (HBM -> VMEM DMA) under recurrence 1.
# ----------------------------------------------------------------------------
def _bigru_fused_kernel(
        x_ref,                                            # (T, 768) bf16 CLS
        wih1_ref, whh1_ref, bgi1_ref, bhhn1_ref,          # sentiment GRU (rev)
        bgi2_ref, bhhn2_ref, b1_ref,                      # GRU-2 biases, FC1 bias
        wih2_hbm, whh2_hbm, w1_hbm, wfc_hbm,              # prefetched weights (HBM)
        out_ref,                                          # (1, 128) f32
        wih2_v, whh2_v, w1_v, wfc_v, dma_sem,             # prefetch landing zone
        gi1_scr, gi2_scr, hseq_scr):                      # VMEM scratch
    T = x_ref.shape[0]
    H = GRU_HIDDEN

    # ---- Kick off the recurrence-2 / FC weight prefetch immediately: these
    # ~0.74 MB are only consumed AFTER recurrence 1, so they stream in under
    # the serial loop instead of sitting on the kernel-start critical path.
    cp_wih2 = pltpu.make_async_copy(wih2_hbm, wih2_v, dma_sem.at[0])
    cp_whh2 = pltpu.make_async_copy(whh2_hbm, whh2_v, dma_sem.at[1])
    cp_w1 = pltpu.make_async_copy(w1_hbm, w1_v, dma_sem.at[2])
    cp_wfc = pltpu.make_async_copy(wfc_hbm, wfc_v, dma_sem.at[3])
    cp_wih2.start(); cp_whh2.start(); cp_w1.start(); cp_wfc.start()

    # ---- Hoisted, h-independent input projection for GRU-1: one batched MXU
    # matmul instead of T M=1 matmuls on the serial path. b_ih1 + b_hh1[r,z]
    # are pre-folded into bgi1 at init.
    gi1_scr[...] = (jnp.dot(x_ref[...], wih1_ref[...],
                            preferred_element_type=jnp.float32)
                    + bgi1_ref[...])                      # (T, 3H)

    def gru_cell(gi, h, whh_ref, bhhn_ref):
        # PyTorch gate order [r | z | n]; matmul in bf16, gate math in f32.
        # b_hh for r/z is already inside gi; only b_hh_n stays per step
        # (it must sit inside the r* term).
        gh = jnp.dot(h.astype(jnp.bfloat16), whh_ref[...],
                     preferred_element_type=jnp.float32)
        r = jax.nn.sigmoid(gi[:, :H] + gh[:, :H])
        z = jax.nn.sigmoid(gi[:, H:2 * H] + gh[:, H:2 * H])
        n = jnp.tanh(gi[:, 2 * H:] + r * (gh[:, 2 * H:] + bhhn_ref[...]))
        return n + z * (h - n)                            # == (1-z)*n + z*h

    h0 = jnp.zeros((1, H), jnp.float32)
    # Full unroll only for short sequences; partial unroll keeps LLO
    # visibility without spilling the 64-vreg file when T is large.
    unroll = True if T <= 32 else 8

    # ---- Recurrence 1: sentiment reverse-direction cell, hidden carried
    # across all T CLS vectors (mirrors the reference Python loop).
    def body1(t, h):
        gi = gi1_scr[pl.ds(t, 1), :]                      # (1, 3H)
        h_new = gru_cell(gi, h, whh1_ref, bhhn1_ref)
        hseq_scr[pl.ds(t, 1), :] = h_new                  # history for FC head
        return h_new

    lax.fori_loop(0, T, body1, h0, unroll=unroll)

    # ---- Prefetched weights must have landed before the batched stage.
    cp_wih2.wait(); cp_whh2.wait(); cp_w1.wait(); cp_wfc.wait()

    # ---- Batched sentiment FC head with FC_2 folded into GRU-2's input
    # projection (done off the serial chain, all T steps at once), plus the
    # deferred hoisted cls projection for GRU-2. No concat, no (T,16) tensor.
    hseq = hseq_scr[...].astype(jnp.bfloat16)             # (T, 128)
    y1 = jnp.maximum(
        jnp.dot(hseq, w1_v[...], preferred_element_type=jnp.float32)
        + b1_ref[...], 0.0)                               # (T, 64) = relu(FC_1)
    gi2_scr[...] = (
        jnp.dot(x_ref[...], wih2_v[...], preferred_element_type=jnp.float32)
        + jnp.dot(y1.astype(jnp.bfloat16), wfc_v[...],
                  preferred_element_type=jnp.float32)
        + bgi2_ref[...])                                  # (T, 3H)

    # ---- Recurrence 2: reverse direction of the final BiGRU; hidden[-1] is
    # the reverse cell's state after walking the sequence back-to-front.
    def body2(t, h):
        gi = gi2_scr[pl.ds(T - 1 - t, 1), :]
        return gru_cell(gi, h, whh2_v, bhhn2_ref)

    h_final = lax.fori_loop(0, T, body2, h0, unroll=unroll)
    out_ref[...] = h_final


def _vmem_estimate_bytes(T):
    G = 3 * GRU_HIDDEN
    weights = 2 * (2 * BERT_DIM * G + 2 * GRU_HIDDEN * G
                   + GRU_HIDDEN * FC1_DIM + FC1_DIM * G)      # bf16 copies
    per_step = T * (BERT_DIM * 2 + 2 * G * 4 + GRU_HIDDEN * 4)
    return weights + per_step + (64 << 10)


def bigru_fused(cls_vec, params):
    """cls_vec: (T, 768). Returns hidden[-1] of the final BiGRU: (1, 128) f32."""
    T = int(cls_vec.shape[0])
    G = 3 * GRU_HIDDEN
    x = cls_vec.astype(jnp.bfloat16)
    s1 = params["sent_gru_rev"]
    fc = params["sent_fc"]
    s2 = params["big_gru_rev"]

    est = _vmem_estimate_bytes(T)
    if est > (28 << 20):
        # TODO(synk): for very long sequences tile the hoisted projections and
        # the FC stage over T instead of growing VMEM scratch linearly.
        raise ValueError(f"T={T} needs ~{est >> 20} MiB VMEM; tile over T first")

    vmem_spec = pl.BlockSpec(memory_space=pltpu.MemorySpace.VMEM)
    hbm_spec = pl.BlockSpec(memory_space=pl.ANY)

    return pl.pallas_call(
        _bigru_fused_kernel,
        out_shape=jax.ShapeDtypeStruct((1, GRU_HIDDEN), jnp.float32),
        in_specs=[vmem_spec] * 8 + [hbm_spec] * 4,
        scratch_shapes=[
            pltpu.VMEM((BERT_DIM, G), jnp.bfloat16),      # wih2 (cls part)
            pltpu.VMEM((GRU_HIDDEN, G), jnp.bfloat16),    # whh2
            pltpu.VMEM((GRU_HIDDEN, FC1_DIM), jnp.bfloat16),  # FC1 weight
            pltpu.VMEM((FC1_DIM, G), jnp.bfloat16),       # FC2 folded into wih2
            pltpu.SemaphoreType.DMA((4,)),
            pltpu.VMEM((T, G), jnp.float32),              # gi1 (input proj 1)
            pltpu.VMEM((T, G), jnp.float32),              # gi2 (input proj 2)
            pltpu.VMEM((T, GRU_HIDDEN), jnp.float32),     # hidden-state history
        ],
        compiler_params=pltpu.CompilerParams(vmem_limit_bytes=(32 << 20)),
    )(x,
      s1["w_ih_t"], s1["w_hh_t"], s1["bias_gi"], s1["b_hh_n"],
      s2["bias_gi"], s2["b_hh_n"], fc["b1"],
      s2["w_ih_cls_t"], s2["w_hh_t"], fc["w1_t"], s2["w_fc_fused_t"])


# ----------------------------------------------------------------------------
# Parameters (deterministic synthetic init — PyTorch-style uniform bounds).
# All folding algebra is done in f32; matmul weights cast once to bf16.
# ----------------------------------------------------------------------------
def init_params(key, vocab_size):
    keys = jax.random.split(key, 8)
    H, G = GRU_HIDDEN, 3 * GRU_HIDDEN
    k_gru = 1.0 / float(H) ** 0.5
    k_fc1 = 1.0 / float(H) ** 0.5
    k_fc2 = 1.0 / float(FC1_DIM) ** 0.5

    def uni(k, shape, bound):
        return jax.random.uniform(k, shape, jnp.float32, -bound, bound)

    def gru_raw(k, d_in):
        k1, k2, k3, k4 = jax.random.split(k, 4)
        return dict(w_ih_t=uni(k1, (d_in, G), k_gru),
                    w_hh_t=uni(k2, (H, G), k_gru),
                    b_ih=uni(k3, (1, G), k_gru),
                    b_hh=uni(k4, (1, G), k_gru))

    sent = gru_raw(keys[1], BERT_DIM)                    # weight_*_l0_reverse
    fc_raw = dict(
        w1_t=uni(keys[2], (H, FC1_DIM), k_fc1),
        b1=uni(keys[3], (1, FC1_DIM), k_fc1),
        w2_t=uni(keys[4], (FC1_DIM, SENT_EMBED), k_fc2),
        b2=uni(keys[5], (1, SENT_EMBED), k_fc2),
    )
    big = gru_raw(keys[6], BERT_DIM + SENT_EMBED)        # weight_*_l0_reverse

    def fold_rz_bias(b_ih_like, b_hh):
        # b_hh for the r/z gates folds into the hoisted input projection;
        # b_hh_n must stay inside the r* term (PyTorch GRU).
        return b_ih_like + jnp.concatenate(
            [b_hh[:, :2 * H], jnp.zeros((1, H), jnp.float32)], axis=1)

    w_ih_cls = big["w_ih_t"][:BERT_DIM]                  # (768, 3H)
    w_ih_sent = big["w_ih_t"][BERT_DIM:]                 # (16, 3H)
    # FC_2 folded into GRU-2's input projection (f32 algebra, one bf16 cast).
    w_fc_fused = fc_raw["w2_t"] @ w_ih_sent              # (64, 3H)
    bias_gi2 = fold_rz_bias(big["b_ih"] + fc_raw["b2"] @ w_ih_sent, big["b_hh"])

    params = dict(
        # TODO(synk): BertModel.from_pretrained / torch.load checkpoint have no
        # Pallas equivalent; stand-in is a deterministic embedding table.
        bert_embed=uni(keys[0], (vocab_size, BERT_DIM), 0.02),
        sent_gru_rev=dict(
            w_ih_t=sent["w_ih_t"].astype(jnp.bfloat16),
            w_hh_t=sent["w_hh_t"].astype(jnp.bfloat16),
            bias_gi=fold_rz_bias(sent["b_ih"], sent["b_hh"]),
            b_hh_n=sent["b_hh"][:, 2 * H:],
        ),
        sent_fc=dict(
            w1_t=fc_raw["w1_t"].astype(jnp.bfloat16),
            b1=fc_raw["b1"],
        ),
        big_gru_rev=dict(
            w_ih_cls_t=w_ih_cls.astype(jnp.bfloat16),
            w_fc_fused_t=w_fc_fused.astype(jnp.bfloat16),
            w_hh_t=big["w_hh_t"].astype(jnp.bfloat16),
            bias_gi=bias_gi2,
            b_hh_n=big["b_hh"][:, 2 * H:],
        ),
    )
    raw = dict(sent=sent, fc=fc_raw, big=big)            # f32, for the reference
    return params, raw


# ----------------------------------------------------------------------------
# BiGRU.forward
# ----------------------------------------------------------------------------
def bigru_forward(params, tokens, masks=None):
    # "last_hidden_state[:, 0, :]" stand-in: gather ONLY the CLS row per
    # sequence instead of gathering (B, L, 768) and slicing.
    cls = params["bert_embed"][tokens[:, 0]]             # (B, 768) = length-B, batch-1 seq
    return bigru_fused(cls, params)                      # (1, 128) == hidden[-1]


# ----------------------------------------------------------------------------
# Pure-JAX f32 reference (PyTorch nn.GRU gate math, unfolded weights).
# ----------------------------------------------------------------------------
def bigru_reference(raw, cls):
    H = GRU_HIDDEN
    T = cls.shape[0]

    def cell(x, h, p):
        gi = x @ p["w_ih_t"] + p["b_ih"]
        gh = h @ p["w_hh_t"] + p["b_hh"]
        r = jax.nn.sigmoid(gi[:, :H] + gh[:, :H])
        z = jax.nn.sigmoid(gi[:, H:2 * H] + gh[:, H:2 * H])
        n = jnp.tanh(gi[:, 2 * H:] + r * gh[:, 2 * H:])
        return (1.0 - z) * n + z * h

    fc = raw["fc"]
    h = jnp.zeros((1, H), jnp.float32)
    s_embeds = []
    for t in range(T):                                   # sentiment reverse cell, len-1 seqs
        h = cell(cls[t:t + 1], h, raw["sent"])
        y = jnp.maximum(h @ fc["w1_t"] + fc["b1"], 0.0)
        s_embeds.append(y @ fc["w2_t"] + fc["b2"])
    xcat = jnp.concatenate([cls, jnp.concatenate(s_embeds, axis=0)], axis=1)

    h2 = jnp.zeros((1, H), jnp.float32)
    for t in range(T - 1, -1, -1):                       # final GRU, reverse direction
        h2 = cell(xcat[t:t + 1], h2, raw["big"])
    return h2


if __name__ == "__main__":
    key = jax.random.PRNGKey(0)
    k_tok, k_par = jax.random.split(key)

    B, L, VOCAB = 4, 8, 1000                             # small token batch
    tokens = jax.random.randint(k_tok, (B, L), 0, VOCAB, dtype=jnp.int32)

    params, raw = init_params(k_par, VOCAB)
    out = jax.jit(bigru_forward)(params, tokens)
    out = jax.block_until_ready(out)

    assert out.shape == (1, GRU_HIDDEN), out.shape
    assert out.dtype == jnp.float32

    # Tolerance check vs. an f32 reference (bf16 matmul drift guard).
    cls_ref = params["bert_embed"][tokens[:, 0]]
    ref = np.asarray(bigru_reference(raw, cls_ref))
    got = np.asarray(out)
    max_err = float(np.max(np.abs(got - ref)))
    assert max_err < 1e-2, f"max |kernel - f32 ref| = {max_err}"

    print("KERNEL_OK")
</pallas_src>

<mosaic_0001>
module attributes {stable_mosaic.version = 11 : i64} {
  func.func @_bigru_fused_kernel(%arg0: memref<4x768xbf16, #tpu.memory_space<vmem>>, %arg1: memref<768x384xbf16, #tpu.memory_space<vmem>>, %arg2: memref<128x384xbf16, #tpu.memory_space<vmem>>, %arg3: memref<1x384xf32, #tpu.memory_space<vmem>>, %arg4: memref<1x128xf32, #tpu.memory_space<vmem>>, %arg5: memref<1x384xf32, #tpu.memory_space<vmem>>, %arg6: memref<1x128xf32, #tpu.memory_space<vmem>>, %arg7: memref<1x64xf32, #tpu.memory_space<vmem>>, %arg8: memref<768x384xbf16, #tpu.memory_space<any>>, %arg9: memref<128x384xbf16, #tpu.memory_space<any>>, %arg10: memref<128x64xbf16, #tpu.memory_space<any>>, %arg11: memref<64x384xbf16, #tpu.memory_space<any>>, %arg12: memref<1x128xf32, #tpu.memory_space<vmem>>, %arg13: memref<768x384xbf16, #tpu.memory_space<vmem>>, %arg14: memref<128x384xbf16, #tpu.memory_space<vmem>>, %arg15: memref<128x64xbf16, #tpu.memory_space<vmem>>, %arg16: memref<64x384xbf16, #tpu.memory_space<vmem>>, %arg17: memref<4x!tpu.dma_semaphore, #tpu.memory_space<semaphore_mem>>, %arg18: memref<4x384xf32, #tpu.memory_space<vmem>>, %arg19: memref<4x384xf32, #tpu.memory_space<vmem>>, %arg20: memref<4x128xf32, #tpu.memory_space<vmem>>) attributes {dimension_semantics = [], scalar_prefetch = 0 : i64, scratch_operands = 8 : i64, tpu.core_type = #tpu.core_type<tc>} {
    %c0_i32 = arith.constant 0 : i32
    %0 = tpu.memref_slice %arg17[%c0_i32] : memref<4x!tpu.dma_semaphore, #tpu.memory_space<semaphore_mem>> -> memref<1x!tpu.dma_semaphore, #tpu.memory_space<semaphore_mem>>
    %1 = tpu.memref_squeeze %0 : memref<1x!tpu.dma_semaphore, #tpu.memory_space<semaphore_mem>> -> memref<!tpu.dma_semaphore, #tpu.memory_space<semaphore_mem>>
    tpu.enqueue_dma source(%arg8 : memref<768x384xbf16, #tpu.memory_space<any>>) target(%arg13 : memref<768x384xbf16, #tpu.memory_space<vmem>>) target_semaphore(%1 : memref<!tpu.dma_semaphore, #tpu.memory_space<semaphore_mem>>)
    %c1_i32 = arith.constant 1 : i32
    %2 = tpu.memref_slice %arg17[%c1_i32] : memref<4x!tpu.dma_semaphore, #tpu.memory_space<semaphore_mem>> -> memref<1x!tpu.dma_semaphore, #tpu.memory_space<semaphore_mem>>
    %3 = tpu.memref_squeeze %2 : memref<1x!tpu.dma_semaphore, #tpu.memory_space<semaphore_mem>> -> memref<!tpu.dma_semaphore, #tpu.memory_space<semaphore_mem>>
    tpu.enqueue_dma source(%arg9 : memref<128x384xbf16, #tpu.memory_space<any>>) target(%arg14 : memref<128x384xbf16, #tpu.memory_space<vmem>>) target_semaphore(%3 : memref<!tpu.dma_semaphore, #tpu.memory_space<semaphore_mem>>)
    %c2_i32 = arith.constant 2 : i32
    %4 = tpu.memref_slice %arg17[%c2_i32] : memref<4x!tpu.dma_semaphore, #tpu.memory_space<semaphore_mem>> -> memref<1x!tpu.dma_semaphore, #tpu.memory_space<semaphore_mem>>
    %5 = tpu.memref_squeeze %4 : memref<1x!tpu.dma_semaphore, #tpu.memory_space<semaphore_mem>> -> memref<!tpu.dma_semaphore, #tpu.memory_space<semaphore_mem>>
    tpu.enqueue_dma source(%arg10 : memref<128x64xbf16, #tpu.memory_space<any>>) target(%arg15 : memref<128x64xbf16, #tpu.memory_space<vmem>>) target_semaphore(%5 : memref<!tpu.dma_semaphore, #tpu.memory_space<semaphore_mem>>)
    %c3_i32 = arith.constant 3 : i32
    %6 = tpu.memref_slice %arg17[%c3_i32] : memref<4x!tpu.dma_semaphore, #tpu.memory_space<semaphore_mem>> -> memref<1x!tpu.dma_semaphore, #tpu.memory_space<semaphore_mem>>
    %7 = tpu.memref_squeeze %6 : memref<1x!tpu.dma_semaphore, #tpu.memory_space<semaphore_mem>> -> memref<!tpu.dma_semaphore, #tpu.memory_space<semaphore_mem>>
    tpu.enqueue_dma source(%arg11 : memref<64x384xbf16, #tpu.memory_space<any>>) target(%arg16 : memref<64x384xbf16, #tpu.memory_space<vmem>>) target_semaphore(%7 : memref<!tpu.dma_semaphore, #tpu.memory_space<semaphore_mem>>)
    %c0 = arith.constant 0 : index
    %c0_0 = arith.constant 0 : index
    %8 = vector.load %arg0[%c0, %c0_0] : memref<4x768xbf16, #tpu.memory_space<vmem>>, vector<4x768xbf16>
    %c0_1 = arith.constant 0 : index
    %c0_2 = arith.constant 0 : index
    %9 = vector.load %arg1[%c0_1, %c0_2] : memref<768x384xbf16, #tpu.memory_space<vmem>>, vector<768x384xbf16>
    %cst = arith.constant dense<0.000000e+00> : vector<4x384xf32>
    %10 = tpu.matmul %8, %9, %cst {dimension_numbers = #tpu.dot_dimension_numbers<[1], [0], [0], [1], [0, 0, 1, 1], [], []>} : vector<4x768xbf16>, vector<768x384xbf16>, vector<4x384xf32> -> vector<4x384xf32>
    %c0_3 = arith.constant 0 : index
    %c0_4 = arith.constant 0 : index
    %11 = vector.load %arg3[%c0_3, %c0_4] : memref<1x384xf32, #tpu.memory_space<vmem>>, vector<1x384xf32>
    %12 = vector.broadcast %11 : vector<1x384xf32> to vector<4x384xf32>
    %13 = arith.addf %10, %12 : vector<4x384xf32>
    %c0_5 = arith.constant 0 : index
    %c0_6 = arith.constant 0 : index
    %14 = vector.load %arg18[%c0_5, %c0_6] : memref<4x384xf32, #tpu.memory_space<vmem>>, vector<4x384xf32>
    tpu.vector_store %arg18[%c0_5, %c0_6], %13 {strides = array<i32>} : memref<4x384xf32, #tpu.memory_space<vmem>>, vector<4x384xf32>,
    %cst_7 = arith.constant 0.000000e+00 : f32
    %15 = vector.broadcast %cst_7 : f32 to vector<1x128xf32>
    %c0_i32_8 = arith.constant 0 : i32
    %16 = arith.index_cast %c0_i32_8 : i32 to index
    %c0_9 = arith.constant 0 : index
    %17 = vector.load %arg18[%16, %c0_9] : memref<4x384xf32, #tpu.memory_space<vmem>>, vector<1x384xf32>
    %18 = arith.truncf %15 : vector<1x128xf32> to vector<1x128xbf16>
    %c0_10 = arith.constant 0 : index
    %c0_11 = arith.constant 0 : index
    %19 = vector.load %arg2[%c0_10, %c0_11] : memref<128x384xbf16, #tpu.memory_space<vmem>>, vector<128x384xbf16>
    %cst_12 = arith.constant dense<0.000000e+00> : vector<1x384xf32>
    %20 = tpu.matmul %18, %19, %cst_12 {dimension_numbers = #tpu.dot_dimension_numbers<[1], [0], [0], [1], [0, 0, 1, 1], [], []>} : vector<1x128xbf16>, vector<128x384xbf16>, vector<1x384xf32> -> vector<1x384xf32>
    %21 = vector.extract_strided_slice %17 {offsets = [0, 0], sizes = [1, 128], strides = [1, 1]} : vector<1x384xf32> to vector<1x128xf32>
    %22 = vector.extract_strided_slice %20 {offsets = [0, 0], sizes = [1, 128], strides = [1, 1]} : vector<1x384xf32> to vector<1x128xf32>
    %23 = arith.addf %21, %22 : vector<1x128xf32>
    %24 = arith.negf %23 : vector<1x128xf32>
    %25 = math.exp %24 : vector<1x128xf32>
    %cst_13 = arith.constant 1.000000e+00 : f32
    %26 = vector.broadcast %cst_13 : f32 to vector<1x128xf32>
    %27 = arith.addf %26, %25 : vector<1x128xf32>
    %28 = arith.divf %26, %27 : vector<1x128xf32>
    %29 = vector.extract_strided_slice %17 {offsets = [0, 128], sizes = [1, 128], strides = [1, 1]} : vector<1x384xf32> to vector<1x128xf32>
    %30 = vector.extract_strided_slice %20 {offsets = [0, 128], sizes = [1, 128], strides = [1, 1]} : vector<1x384xf32> to vector<1x128xf32>
    %31 = arith.addf %29, %30 : vector<1x128xf32>
    %32 = arith.negf %31 : vector<1x128xf32>
    %33 = math.exp %32 : vector<1x128xf32>
    %cst_14 = arith.constant 1.000000e+00 : f32
    %34 = vector.broadcast %cst_14 : f32 to vector<1x128xf32>
    %35 = arith.addf %34, %33 : vector<1x128xf32>
    %36 = arith.divf %34, %35 : vector<1x128xf32>
    %37 = vector.extract_strided_slice %17 {offsets = [0, 256], sizes = [1, 128], strides = [1, 1]} : vector<1x384xf32> to vector<1x128xf32>
    %38 = vector.extract_strided_slice %20 {offsets = [0, 256], sizes = [1, 128], strides = [1, 1]} : vector<1x384xf32> to vector<1x128xf32>
    %c0_15 = arith.constant 0 : index
    %c0_16 = arith.constant 0 : index
    %39 = vector.load %arg4[%c0_15, %c0_16] : memref<1x128xf32, #tpu.memory_space<vmem>>, vector<1x128xf32>
    %40 = arith.addf %38, %39 : vector<1x128xf32>
    %41 = arith.mulf %28, %40 : vector<1x128xf32>
    %42 = arith.addf %37, %41 : vector<1x128xf32>
    %43 = math.tanh %42 : vector<1x128xf32>
    %44 = arith.subf %15, %43 : vector<1x128xf32>
    %45 = arith.mulf %36, %44 : vector<1x128xf32>
    %46 = arith.addf %43, %45 : vector<1x128xf32>
    %47 = arith.index_cast %c0_i32_8 : i32 to index
    %c0_17 = arith.constant 0 : index
    %48 = vector.load %arg20[%47, %c0_17] : memref<4x128xf32, #tpu.memory_space<vmem>>, vector<1x128xf32>
    tpu.vector_store %arg20[%47, %c0_17], %46 {strides = array<i32>} : memref<4x128xf32, #tpu.memory_space<vmem>>, vector<1x128xf32>,
    %c1_i32_18 = arith.constant 1 : i32
    %49 = arith.index_cast %c1_i32_18 : i32 to index
    %c0_19 = arith.constant 0 : index
    %50 = vector.load %arg18[%49, %c0_19] : memref<4x384xf32, #tpu.memory_space<vmem>>, vector<1x384xf32>
    %51 = arith.truncf %46 : vector<1x128xf32> to vector<1x128xbf16>
    %c0_20 = arith.constant 0 : index
    %c0_21 = arith.constant 0 : index
    %52 = vector.load %arg2[%c0_20, %c0_21] : memref<128x384xbf16, #tpu.memory_space<vmem>>, vector<128x384xbf16>
    %cst_22 = arith.constant dense<0.000000e+00> : vector<1x384xf32>
    %53 = tpu.matmul %51, %52, %cst_22 {dimension_numbers = #tpu.dot_dimension_numbers<[1], [0], [0], [1], [0, 0, 1, 1], [], []>} : vector<1x128xbf16>, vector<128x384xbf16>, vector<1x384xf32> -> vector<1x384xf32>
    %54 = vector.extract_strided_slice %50 {offsets = [0, 0], sizes = [1, 128], strides = [1, 1]} : vector<1x384xf32> to vector<1x128xf32>
    %55 = vector.extract_strided_slice %53 {offsets = [0, 0], sizes = [1, 128], strides = [1, 1]} : vector<1x384xf32> to vector<1x128xf32>
    %56 = arith.addf %54, %55 : vector<1x128xf32>
    %57 = arith.negf %56 : vector<1x128xf32>
    %58 = math.exp %57 : vector<1x128xf32>
    %cst_23 = arith.constant 1.000000e+00 : f32
    %59 = vector.broadcast %cst_23 : f32 to vector<1x128xf32>
    %60 = arith.addf %59, %58 : vector<1x128xf32>
    %61 = arith.divf %59, %60 : vector<1x128xf32>
    %62 = vector.extract_strided_slice %50 {offsets = [0, 128], sizes = [1, 128], strides = [1, 1]} : vector<1x384xf32> to vector<1x128xf32>
    %63 = vector.extract_strided_slice %53 {offsets = [0, 128], sizes = [1, 128], strides = [1, 1]} : vector<1x384xf32> to vector<1x128xf32>
    %64 = arith.addf %62, %63 : vector<1x128xf32>
    %65 = arith.negf %64 : vector<1x128xf32>
    %66 = math.exp %65 : vector<1x128xf32>
    %cst_24 = arith.constant 1.000000e+00 : f32
    %67 = vector.broadcast %cst_24 : f32 to vector<1x128xf32>
    %68 = arith.addf %67, %66 : vector<1x128xf32>
    %69 = arith.divf %67, %68 : vector<1x128xf32>
    %70 = vector.extract_strided_slice %50 {offsets = [0, 256], sizes = [1, 128], strides = [1, 1]} : vector<1x384xf32> to vector<1x128xf32>
    %71 = vector.extract_strided_slice %53 {offsets = [0, 256], sizes = [1, 128], strides = [1, 1]} : vector<1x384xf32> to vector<1x128xf32>
    %c0_25 = arith.constant 0 : index
    %c0_26 = arith.constant 0 : index
    %72 = vector.load %arg4[%c0_25, %c0_26] : memref<1x128xf32, #tpu.memory_space<vmem>>, vector<1x128xf32>
    %73 = arith.addf %71, %72 : vector<1x128xf32>
    %74 = arith.mulf %61, %73 : vector<1x128xf32>
    %75 = arith.addf %70, %74 : vector<1x128xf32>
    %76 = math.tanh %75 : vector<1x128xf32>
    %77 = arith.subf %46, %76 : vector<1x128xf32>
    %78 = arith.mulf %69, %77 : vector<1x128xf32>
    %79 = arith.addf %76, %78 : vector<1x128xf32>
    %80 = arith.index_cast %c1_i32_18 : i32 to index
    %c0_27 = arith.constant 0 : index
    %81 = vector.load %arg20[%80, %c0_27] : memref<4x128xf32, #tpu.memory_space<vmem>>, vector<1x128xf32>
    tpu.vector_store %arg20[%80, %c0_27], %79 {strides = array<i32>} : memref<4x128xf32, #tpu.memory_space<vmem>>, vector<1x128xf32>,
    %c2_i32_28 = arith.constant 2 : i32
    %82 = arith.index_cast %c2_i32_28 : i32 to index
    %c0_29 = arith.constant 0 : index
    %83 = vector.load %arg18[%82, %c0_29] : memref<4x384xf32, #tpu.memory_space<vmem>>, vector<1x384xf32>
    %84 = arith.truncf %79 : vector<1x128xf32> to vector<1x128xbf16>
    %c0_30 = arith.constant 0 : index
    %c0_31 = arith.constant 0 : index
    %85 = vector.load %arg2[%c0_30, %c0_31] : memref<128x384xbf16, #tpu.memory_space<vmem>>, vector<128x384xbf16>
    %cst_32 = arith.constant dense<0.000000e+00> : vector<1x384xf32>
    %86 = tpu.matmul %84, %85, %cst_32 {dimension_numbers = #tpu.dot_dimension_numbers<[1], [0], [0], [1], [0, 0, 1, 1], [], []>} : vector<1x128xbf16>, vector<128x384xbf16>, vector<1x384xf32> -> vector<1x384xf32>
    %87 = vector.extract_strided_slice %83 {offsets = [0, 0], sizes = [1, 128], strides = [1, 1]} : vector<1x384xf32> to vector<1x128xf32>
    %88 = vector.extract_strided_slice %86 {offsets = [0, 0], sizes = [1, 128], strides = [1, 1]} : vector<1x384xf32> to vector<1x128xf32>
    %89 = arith.addf %87, %88 : vector<1x128xf32>
    %90 = arith.negf %89 : vector<1x128xf32>
    %91 = math.exp %90 : vector<1x128xf32>
    %cst_33 = arith.constant 1.000000e+00 : f32
    %92 = vector.broadcast %cst_33 : f32 to vector<1x128xf32>
    %93 = arith.addf %92, %91 : vector<1x128xf32>
    %94 = arith.divf %92, %93 : vector<1x128xf32>
    %95 = vector.extract_strided_slice %83 {offsets = [0, 128], sizes = [1, 128], strides = [1, 1]} : vector<1x384xf32> to vector<1x128xf32>
    %96 = vector.extract_strided_slice %86 {offsets = [0, 128], sizes = [1, 128], strides = [1, 1]} : vector<1x384xf32> to vector<1x128xf32>
    %97 = arith.addf %95, %96 : vector<1x128xf32>
    %98 = arith.negf %97 : vector<1x128xf32>
    %99 = math.exp %98 : vector<1x128xf32>
    %cst_34 = arith.constant 1.000000e+00 : f32
    %100 = vector.broadcast %cst_34 : f32 to vector<1x128xf32>
    %101 = arith.addf %100, %99 : vector<1x128xf32>
    %102 = arith.divf %100, %101 : vector<1x128xf32>
    %103 = vector.extract_strided_slice %83 {offsets = [0, 256], sizes = [1, 128], strides = [1, 1]} : vector<1x384xf32> to vector<1x128xf32>
    %104 = vector.extract_strided_slice %86 {offsets = [0, 256], sizes = [1, 128], strides = [1, 1]} : vector<1x384xf32> to vector<1x128xf32>
    %c0_35 = arith.constant 0 : index
    %c0_36 = arith.constant 0 : index
    %105 = vector.load %arg4[%c0_35, %c0_36] : memref<1x128xf32, #tpu.memory_space<vmem>>, vector<1x128xf32>
    %106 = arith.addf %104, %105 : vector<1x128xf32>
    %107 = arith.mulf %94, %106 : vector<1x128xf32>
    %108 = arith.addf %103, %107 : vector<1x128xf32>
    %109 = math.tanh %108 : vector<1x128xf32>
    %110 = arith.subf %79, %109 : vector<1x128xf32>
    %111 = arith.mulf %102, %110 : vector<1x128xf32>
    %112 = arith.addf %109, %111 : vector<1x128xf32>
    %113 = arith.index_cast %c2_i32_28 : i32 to index
    %c0_37 = arith.constant 0 : index
    %114 = vector.load %arg20[%113, %c0_37] : memref<4x128xf32, #tpu.memory_space<vmem>>, vector<1x128xf32>
    tpu.vector_store %arg20[%113, %c0_37], %112 {strides = array<i32>} : memref<4x128xf32, #tpu.memory_space<vmem>>, vector<1x128xf32>,
    %c3_i32_38 = arith.constant 3 : i32
    %115 = arith.index_cast %c3_i32_38 : i32 to index
    %c0_39 = arith.constant 0 : index
    %116 = vector.load %arg18[%115, %c0_39] : memref<4x384xf32, #tpu.memory_space<vmem>>, vector<1x384xf32>
    %117 = arith.truncf %112 : vector<1x128xf32> to vector<1x128xbf16>
    %c0_40 = arith.constant 0 : index
    %c0_41 = arith.constant 0 : index
    %118 = vector.load %arg2[%c0_40, %c0_41] : memref<128x384xbf16, #tpu.memory_space<vmem>>, vector<128x384xbf16>
    %cst_42 = arith.constant dense<0.000000e+00> : vector<1x384xf32>
    %119 = tpu.matmul %117, %118, %cst_42 {dimension_numbers = #tpu.dot_dimension_numbers<[1], [0], [0], [1], [0, 0, 1, 1], [], []>} : vector<1x128xbf16>, vector<128x384xbf16>, vector<1x384xf32> -> vector<1x384xf32>
    %120 = vector.extract_strided_slice %116 {offsets = [0, 0], sizes = [1, 128], strides = [1, 1]} : vector<1x384xf32> to vector<1x128xf32>
    %121 = vector.extract_strided_slice %119 {offsets = [0, 0], sizes = [1, 128], strides = [1, 1]} : vector<1x384xf32> to vector<1x128xf32>
    %122 = arith.addf %120, %121 : vector<1x128xf32>
    %123 = arith.negf %122 : vector<1x128xf32>
    %124 = math.exp %123 : vector<1x128xf32>
    %cst_43 = arith.constant 1.000000e+00 : f32
    %125 = vector.broadcast %cst_43 : f32 to vector<1x128xf32>
    %126 = arith.addf %125, %124 : vector<1x128xf32>
    %127 = arith.divf %125, %126 : vector<1x128xf32>
    %128 = vector.extract_strided_slice %116 {offsets = [0, 128], sizes = [1, 128], strides = [1, 1]} : vector<1x384xf32> to vector<1x128xf32>
    %129 = vector.extract_strided_slice %119 {offsets = [0, 128], sizes = [1, 128], strides = [1, 1]} : vector<1x384xf32> to vector<1x128xf32>
    %130 = arith.addf %128, %129 : vector<1x128xf32>
    %131 = arith.negf %130 : vector<1x128xf32>
    %132 = math.exp %131 : vector<1x128xf32>
    %cst_44 = arith.constant 1.000000e+00 : f32
    %133 = vector.broadcast %cst_44 : f32 to vector<1x128xf32>
    %134 = arith.addf %133, %132 : vector<1x128xf32>
    %135 = arith.divf %133, %134 : vector<1x128xf32>
    %136 = vector.extract_strided_slice %116 {offsets = [0, 256], sizes = [1, 128], strides = [1, 1]} : vector<1x384xf32> to vector<1x128xf32>
    %137 = vector.extract_strided_slice %119 {offsets = [0, 256], sizes = [1, 128], strides = [1, 1]} : vector<1x384xf32> to vector<1x128xf32>
    %c0_45 = arith.constant 0 : index
    %c0_46 = arith.constant 0 : index
    %138 = vector.load %arg4[%c0_45, %c0_46] : memref<1x128xf32, #tpu.memory_space<vmem>>, vector<1x128xf32>
    %139 = arith.addf %137, %138 : vector<1x128xf32>
    %140 = arith.mulf %127, %139 : vector<1x128xf32>
    %141 = arith.addf %136, %140 : vector<1x128xf32>
    %142 = math.tanh %141 : vector<1x128xf32>
    %143 = arith.subf %112, %142 : vector<1x128xf32>
    %144 = arith.mulf %135, %143 : vector<1x128xf32>
    %145 = arith.addf %142, %144 : vector<1x128xf32>
    %146 = arith.index_cast %c3_i32_38 : i32 to index
    %c0_47 = arith.constant 0 : index
    %147 = vector.load %arg20[%146, %c0_47] : memref<4x128xf32, #tpu.memory_space<vmem>>, vector<1x128xf32>
    tpu.vector_store %arg20[%146, %c0_47], %145 {strides = array<i32>} : memref<4x128xf32, #tpu.memory_space<vmem>>, vector<1x128xf32>,
    %c4_i32 = arith.constant 4 : i32
    %c0_i32_48 = arith.constant 0 : i32
    %148 = tpu.memref_slice %arg17[%c0_i32_48] : memref<4x!tpu.dma_semaphore, #tpu.memory_space<semaphore_mem>> -> memref<1x!tpu.dma_semaphore, #tpu.memory_space<semaphore_mem>>
    %149 = tpu.memref_squeeze %148 : memref<1x!tpu.dma_semaphore, #tpu.memory_space<semaphore_mem>> -> memref<!tpu.dma_semaphore, #tpu.memory_space<semaphore_mem>>
    tpu.wait_dma2 semaphore(%149 : memref<!tpu.dma_semaphore, #tpu.memory_space<semaphore_mem>>) src(%arg8 : memref<768x384xbf16, #tpu.memory_space<any>>) dst(%arg13 : memref<768x384xbf16, #tpu.memory_space<vmem>>)
    %c1_i32_49 = arith.constant 1 : i32
    %150 = tpu.memref_slice %arg17[%c1_i32_49] : memref<4x!tpu.dma_semaphore, #tpu.memory_space<semaphore_mem>> -> memref<1x!tpu.dma_semaphore, #tpu.memory_space<semaphore_mem>>
    %151 = tpu.memref_squeeze %150 : memref<1x!tpu.dma_semaphore, #tpu.memory_space<semaphore_mem>> -> memref<!tpu.dma_semaphore, #tpu.memory_space<semaphore_mem>>
    tpu.wait_dma2 semaphore(%151 : memref<!tpu.dma_semaphore, #tpu.memory_space<semaphore_mem>>) src(%arg9 : memref<128x384xbf16, #tpu.memory_space<any>>) dst(%arg14 : memref<128x384xbf16, #tpu.memory_space<vmem>>)
    %c2_i32_50 = arith.constant 2 : i32
    %152 = tpu.memref_slice %arg17[%c2_i32_50] : memref<4x!tpu.dma_semaphore, #tpu.memory_space<semaphore_mem>> -> memref<1x!tpu.dma_semaphore, #tpu.memory_space<semaphore_mem>>
    %153 = tpu.memref_squeeze %152 : memref<1x!tpu.dma_semaphore, #tpu.memory_space<semaphore_mem>> -> memref<!tpu.dma_semaphore, #tpu.memory_space<semaphore_mem>>
    tpu.wait_dma2 semaphore(%153 : memref<!tpu.dma_semaphore, #tpu.memory_space<semaphore_mem>>) src(%arg10 : memref<128x64xbf16, #tpu.memory_space<any>>) dst(%arg15 : memref<128x64xbf16, #tpu.memory_space<vmem>>)
    %c3_i32_51 = arith.constant 3 : i32
    %154 = tpu.memref_slice %arg17[%c3_i32_51] : memref<4x!tpu.dma_semaphore, #tpu.memory_space<semaphore_mem>> -> memref<1x!tpu.dma_semaphore, #tpu.memory_space<semaphore_mem>>
    %155 = tpu.memref_squeeze %154 : memref<1x!tpu.dma_semaphore, #tpu.memory_space<semaphore_mem>> -> memref<!tpu.dma_semaphore, #tpu.memory_space<semaphore_mem>>
    tpu.wait_dma2 semaphore(%155 : memref<!tpu.dma_semaphore, #tpu.memory_space<semaphore_mem>>) src(%arg11 : memref<64x384xbf16, #tpu.memory_space<any>>) dst(%arg16 : memref<64x384xbf16, #tpu.memory_space<vmem>>)
    %c0_52 = arith.constant 0 : index
    %c0_53 = arith.constant 0 : index
    %156 = vector.load %arg20[%c0_52, %c0_53] : memref<4x128xf32, #tpu.memory_space<vmem>>, vector<4x128xf32>
    %157 = arith.truncf %156 : vector<4x128xf32> to vector<4x128xbf16>
    %c0_54 = arith.constant 0 : index
    %c0_55 = arith.constant 0 : index
    %158 = vector.load %arg15[%c0_54, %c0_55] : memref<128x64xbf16, #tpu.memory_space<vmem>>, vector<128x64xbf16>
    %cst_56 = arith.constant dense<0.000000e+00> : vector<4x64xf32>
    %159 = tpu.matmul %157, %158, %cst_56 {dimension_numbers = #tpu.dot_dimension_numbers<[1], [0], [0], [1], [0, 0, 1, 1], [], []>} : vector<4x128xbf16>, vector<128x64xbf16>, vector<4x64xf32> -> vector<4x64xf32>
    %c0_57 = arith.constant 0 : index
    %c0_58 = arith.constant 0 : index
    %160 = vector.load %arg7[%c0_57, %c0_58] : memref<1x64xf32, #tpu.memory_space<vmem>>, vector<1x64xf32>
    %161 = vector.broadcast %160 : vector<1x64xf32> to vector<4x64xf32>
    %162 = arith.addf %159, %161 : vector<4x64xf32>
    %cst_59 = arith.constant 0.000000e+00 : f32
    %163 = vector.broadcast %cst_59 : f32 to vector<4x64xf32>
    %164 = arith.maximumf %162, %163 : vector<4x64xf32>
    %c0_60 = arith.constant 0 : index
    %c0_61 = arith.constant 0 : index
    %165 = vector.load %arg0[%c0_60, %c0_61] : memref<4x768xbf16, #tpu.memory_space<vmem>>, vector<4x768xbf16>
    %c0_62 = arith.constant 0 : index
    %c0_63 = arith.constant 0 : index
    %166 = vector.load %arg13[%c0_62, %c0_63] : memref<768x384xbf16, #tpu.memory_space<vmem>>, vector<768x384xbf16>
    %cst_64 = arith.constant dense<0.000000e+00> : vector<4x384xf32>
    %167 = tpu.matmul %165, %166, %cst_64 {dimension_numbers = #tpu.dot_dimension_numbers<[1], [0], [0], [1], [0, 0, 1, 1], [], []>} : vector<4x768xbf16>, vector<768x384xbf16>, vector<4x384xf32> -> vector<4x384xf32>
    %168 = arith.truncf %164 : vector<4x64xf32> to vector<4x64xbf16>
    %c0_65 = arith.constant 0 : index
    %c0_66 = arith.constant 0 : index
    %169 = vector.load %arg16[%c0_65, %c0_66] : memref<64x384xbf16, #tpu.memory_space<vmem>>, vector<64x384xbf16>
    %cst_67 = arith.constant dense<0.000000e+00> : vector<4x384xf32>
    %170 = tpu.matmul %168, %169, %cst_67 {dimension_numbers = #tpu.dot_dimension_numbers<[1], [0], [0], [1], [0, 0, 1, 1], [], []>} : vector<4x64xbf16>, vector<64x384xbf16>, vector<4x384xf32> -> vector<4x384xf32>
    %171 = arith.addf %167, %170 : vector<4x384xf32>
    %c0_68 = arith.constant 0 : index
    %c0_69 = arith.constant 0 : index
    %172 = vector.load %arg5[%c0_68, %c0_69] : memref<1x384xf32, #tpu.memory_space<vmem>>, vector<1x384xf32>
    %173 = vector.broadcast %172 : vector<1x384xf32> to vector<4x384xf32>
    %174 = arith.addf %171, %173 : vector<4x384xf32>
    %c0_70 = arith.constant 0 : index
    %c0_71 = arith.constant 0 : index
    %175 = vector.load %arg19[%c0_70, %c0_71] : memref<4x384xf32, #tpu.memory_space<vmem>>, vector<4x384xf32>
    tpu.vector_store %arg19[%c0_70, %c0_71], %174 {strides = array<i32>} : memref<4x384xf32, #tpu.memory_space<vmem>>, vector<4x384xf32>,
    %c0_i32_72 = arith.constant 0 : i32
    %c3_i32_73 = arith.constant 3 : i32
    %176 = arith.subi %c3_i32_73, %c0_i32_72 : i32
    %177 = arith.index_cast %176 : i32 to index
    %c0_74 = arith.constant 0 : index
    %178 = vector.load %arg19[%177, %c0_74] : memref<4x384xf32, #tpu.memory_space<vmem>>, vector<1x384xf32>
    %179 = arith.truncf %15 : vector<1x128xf32> to vector<1x128xbf16>
    %c0_75 = arith.constant 0 : index
    %c0_76 = arith.constant 0 : index
    %180 = vector.load %arg14[%c0_75, %c0_76] : memref<128x384xbf16, #tpu.memory_space<vmem>>, vector<128x384xbf16>
    %cst_77 = arith.constant dense<0.000000e+00> : vector<1x384xf32>
    %181 = tpu.matmul %179, %180, %cst_77 {dimension_numbers = #tpu.dot_dimension_numbers<[1], [0], [0], [1], [0, 0, 1, 1], [], []>} : vector<1x128xbf16>, vector<128x384xbf16>, vector<1x384xf32> -> vector<1x384xf32>
    %182 = vector.extract_strided_slice %178 {offsets = [0, 0], sizes = [1, 128], strides = [1, 1]} : vector<1x384xf32> to vector<1x128xf32>
    %183 = vector.extract_strided_slice %181 {offsets = [0, 0], sizes = [1, 128], strides = [1, 1]} : vector<1x384xf32> to vector<1x128xf32>
    %184 = arith.addf %182, %183 : vector<1x128xf32>
    %185 = arith.negf %184 : vector<1x128xf32>
    %186 = math.exp %185 : vector<1x128xf32>
    %cst_78 = arith.constant 1.000000e+00 : f32
    %187 = vector.broadcast %cst_78 : f32 to vector<1x128xf32>
    %188 = arith.addf %187, %186 : vector<1x128xf32>
    %189 = arith.divf %187, %188 : vector<1x128xf32>
    %190 = vector.extract_strided_slice %178 {offsets = [0, 128], sizes = [1, 128], strides = [1, 1]} : vector<1x384xf32> to vector<1x128xf32>
    %191 = vector.extract_strided_slice %181 {offsets = [0, 128], sizes = [1, 128], strides = [1, 1]} : vector<1x384xf32> to vector<1x128xf32>
    %192 = arith.addf %190, %191 : vector<1x128xf32>
    %193 = arith.negf %192 : vector<1x128xf32>
    %194 = math.exp %193 : vector<1x128xf32>
    %cst_79 = arith.constant 1.000000e+00 : f32
    %195 = vector.broadcast %cst_79 : f32 to vector<1x128xf32>
    %196 = arith.addf %195, %194 : vector<1x128xf32>
    %197 = arith.divf %195, %196 : vector<1x128xf32>
    %198 = vector.extract_strided_slice %178 {offsets = [0, 256], sizes = [1, 128], strides = [1, 1]} : vector<1x384xf32> to vector<1x128xf32>
    %199 = vector.extract_strided_slice %181 {offsets = [0, 256], sizes = [1, 128], strides = [1, 1]} : vector<1x384xf32> to vector<1x128xf32>
    %c0_80 = arith.constant 0 : index
    %c0_81 = arith.constant 0 : index
    %200 = vector.load %arg6[%c0_80, %c0_81] : memref<1x128xf32, #tpu.memory_space<vmem>>, vector<1x128xf32>
    %201 = arith.addf %199, %200 : vector<1x128xf32>
    %202 = arith.mulf %189, %201 : vector<1x128xf32>
    %203 = arith.addf %198, %202 : vector<1x128xf32>
    %204 = math.tanh %203 : vector<1x128xf32>
    %205 = arith.subf %15, %204 : vector<1x128xf32>
    %206 = arith.mulf %197, %205 : vector<1x128xf32>
    %207 = arith.addf %204, %206 : vector<1x128xf32>
    %c1_i32_82 = arith.constant 1 : i32
    %c3_i32_83 = arith.constant 3 : i32
    %208 = arith.subi %c3_i32_83, %c1_i32_82 : i32
    %209 = arith.index_cast %208 : i32 to index
    %c0_84 = arith.constant 0 : index
    %210 = vector.load %arg19[%209, %c0_84] : memref<4x384xf32, #tpu.memory_space<vmem>>, vector<1x384xf32>
    %211 = arith.truncf %207 : vector<1x128xf32> to vector<1x128xbf16>
    %c0_85 = arith.constant 0 : index
    %c0_86 = arith.constant 0 : index
    %212 = vector.load %arg14[%c0_85, %c0_86] : memref<128x384xbf16, #tpu.memory_space<vmem>>, vector<128x384xbf16>
    %cst_87 = arith.constant dense<0.000000e+00> : vector<1x384xf32>
    %213 = tpu.matmul %211, %212, %cst_87 {dimension_numbers = #tpu.dot_dimension_numbers<[1], [0], [0], [1], [0, 0, 1, 1], [], []>} : vector<1x128xbf16>, vector<128x384xbf16>, vector<1x384xf32> -> vector<1x384xf32>
    %214 = vector.extract_strided_slice %210 {offsets = [0, 0], sizes = [1, 128], strides = [1, 1]} : vector<1x384xf32> to vector<1x128xf32>
    %215 = vector.extract_strided_slice %213 {offsets = [0, 0], sizes = [1, 128], strides = [1, 1]} : vector<1x384xf32> to vector<1x128xf32>
    %216 = arith.addf %214, %215 : vector<1x128xf32>
    %217 = arith.negf %216 : vector<1x128xf32>
    %218 = math.exp %217 : vector<1x128xf32>
    %cst_88 = arith.constant 1.000000e+00 : f32
    %219 = vector.broadcast %cst_88 : f32 to vector<1x128xf32>
    %220 = arith.addf %219, %218 : vector<1x128xf32>
    %221 = arith.divf %219, %220 : vector<1x128xf32>
    %222 = vector.extract_strided_slice %210 {offsets = [0, 128], sizes = [1, 128], strides = [1, 1]} : vector<1x384xf32> to vector<1x128xf32>
    %223 = vector.extract_strided_slice %213 {offsets = [0, 128], sizes = [1, 128], strides = [1, 1]} : vector<1x384xf32> to vector<1x128xf32>
    %224 = arith.addf %222, %223 : vector<1x128xf32>
    %225 = arith.negf %224 : vector<1x128xf32>
    %226 = math.exp %225 : vector<1x128xf32>
    %cst_89 = arith.constant 1.000000e+00 : f32
    %227 = vector.broadcast %cst_89 : f32 to vector<1x128xf32>
    %228 = arith.addf %227, %226 : vector<1x128xf32>
    %229 = arith.divf %227, %228 : vector<1x128xf32>
    %230 = vector.extract_strided_slice %210 {offsets = [0, 256], sizes = [1, 128], strides = [1, 1]} : vector<1x384xf32> to vector<1x128xf32>
    %231 = vector.extract_strided_slice %213 {offsets = [0, 256], sizes = [1, 128], strides = [1, 1]} : vector<1x384xf32> to vector<1x128xf32>
    %c0_90 = arith.constant 0 : index
    %c0_91 = arith.constant 0 : index
    %232 = vector.load %arg6[%c0_90, %c0_91] : memref<1x128xf32, #tpu.memory_space<vmem>>, vector<1x128xf32>
    %233 = arith.addf %231, %232 : vector<1x128xf32>
    %234 = arith.mulf %221, %233 : vector<1x128xf32>
    %235 = arith.addf %230, %234 : vector<1x128xf32>
    %236 = math.tanh %235 : vector<1x128xf32>
    %237 = arith.subf %207, %236 : vector<1x128xf32>
    %238 = arith.mulf %229, %237 : vector<1x128xf32>
    %239 = arith.addf %236, %238 : vector<1x128xf32>
    %c2_i32_92 = arith.constant 2 : i32
    %c3_i32_93 = arith.constant 3 : i32
    %240 = arith.subi %c3_i32_93, %c2_i32_92 : i32
    %241 = arith.index_cast %240 : i32 to index
    %c0_94 = arith.constant 0 : index
    %242 = vector.load %arg19[%241, %c0_94] : memref<4x384xf32, #tpu.memory_space<vmem>>, vector<1x384xf32>
    %243 = arith.truncf %239 : vector<1x128xf32> to vector<1x128xbf16>
    %c0_95 = arith.constant 0 : index
    %c0_96 = arith.constant 0 : index
    %244 = vector.load %arg14[%c0_95, %c0_96] : memref<128x384xbf16, #tpu.memory_space<vmem>>, vector<128x384xbf16>
    %cst_97 = arith.constant dense<0.000000e+00> : vector<1x384xf32>
    %245 = tpu.matmul %243, %244, %cst_97 {dimension_numbers = #tpu.dot_dimension_numbers<[1], [0], [0], [1], [0, 0, 1, 1], [], []>} : vector<1x128xbf16>, vector<128x384xbf16>, vector<1x384xf32> -> vector<1x384xf32>
    %246 = vector.extract_strided_slice %242 {offsets = [0, 0], sizes = [1, 128], strides = [1, 1]} : vector<1x384xf32> to vector<1x128xf32>
    %247 = vector.extract_strided_slice %245 {offsets = [0, 0], sizes = [1, 128], strides = [1, 1]} : vector<1x384xf32> to vector<1x128xf32>
    %248 = arith.addf %246, %247 : vector<1x128xf32>
    %249 = arith.negf %248 : vector<1x128xf32>
    %250 = math.exp %249 : vector<1x128xf32>
    %cst_98 = arith.constant 1.000000e+00 : f32
    %251 = vector.broadcast %cst_98 : f32 to vector<1x128xf32>
    %252 = arith.addf %251, %250 : vector<1x128xf32>
    %253 = arith.divf %251, %252 : vector<1x128xf32>
    %254 = vector.extract_strided_slice %242 {offsets = [0, 128], sizes = [1, 128], strides = [1, 1]} : vector<1x384xf32> to vector<1x128xf32>
    %255 = vector.extract_strided_slice %245 {offsets = [0, 128], sizes = [1, 128], strides = [1, 1]} : vector<1x384xf32> to vector<1x128xf32>
    %256 = arith.addf %254, %255 : vector<1x128xf32>
    %257 = arith.negf %256 : vector<1x128xf32>
    %258 = math.exp %257 : vector<1x128xf32>
    %cst_99 = arith.constant 1.000000e+00 : f32
    %259 = vector.broadcast %cst_99 : f32 to vector<1x128xf32>
    %260 = arith.addf %259, %258 : vector<1x128xf32>
    %261 = arith.divf %259, %260 : vector<1x128xf32>
    %262 = vector.extract_strided_slice %242 {offsets = [0, 256], sizes = [1, 128], strides = [1, 1]} : vector<1x384xf32> to vector<1x128xf32>
    %263 = vector.extract_strided_slice %245 {offsets = [0, 256], sizes = [1, 128], strides = [1, 1]} : vector<1x384xf32> to vector<1x128xf32>
    %c0_100 = arith.constant 0 : index
    %c0_101 = arith.constant 0 : index
    %264 = vector.load %arg6[%c0_100, %c0_101] : memref<1x128xf32, #tpu.memory_space<vmem>>, vector<1x128xf32>
    %265 = arith.addf %263, %264 : vector<1x128xf32>
    %266 = arith.mulf %253, %265 : vector<1x128xf32>
    %267 = arith.addf %262, %266 : vector<1x128xf32>
    %268 = math.tanh %267 : vector<1x128xf32>
    %269 = arith.subf %239, %268 : vector<1x128xf32>
    %270 = arith.mulf %261, %269 : vector<1x128xf32>
    %271 = arith.addf %268, %270 : vector<1x128xf32>
    %c3_i32_102 = arith.constant 3 : i32
    %c3_i32_103 = arith.constant 3 : i32
    %272 = arith.subi %c3_i32_103, %c3_i32_102 : i32
    %273 = arith.index_cast %272 : i32 to index
    %c0_104 = arith.constant 0 : index
    %274 = vector.load %arg19[%273, %c0_104] : memref<4x384xf32, #tpu.memory_space<vmem>>, vector<1x384xf32>
    %275 = arith.truncf %271 : vector<1x128xf32> to vector<1x128xbf16>
    %c0_105 = arith.constant 0 : index
    %c0_106 = arith.constant 0 : index
    %276 = vector.load %arg14[%c0_105, %c0_106] : memref<128x384xbf16, #tpu.memory_space<vmem>>, vector<128x384xbf16>
    %cst_107 = arith.constant dense<0.000000e+00> : vector<1x384xf32>
    %277 = tpu.matmul %275, %276, %cst_107 {dimension_numbers = #tpu.dot_dimension_numbers<[1], [0], [0], [1], [0, 0, 1, 1], [], []>} : vector<1x128xbf16>, vector<128x384xbf16>, vector<1x384xf32> -> vector<1x384xf32>
    %278 = vector.extract_strided_slice %274 {offsets = [0, 0], sizes = [1, 128], strides = [1, 1]} : vector<1x384xf32> to vector<1x128xf32>
    %279 = vector.extract_strided_slice %277 {offsets = [0, 0], sizes = [1, 128], strides = [1, 1]} : vector<1x384xf32> to vector<1x128xf32>
    %280 = arith.addf %278, %279 : vector<1x128xf32>
    %281 = arith.negf %280 : vector<1x128xf32>
    %282 = math.exp %281 : vector<1x128xf32>
    %cst_108 = arith.constant 1.000000e+00 : f32
    %283 = vector.broadcast %cst_108 : f32 to vector<1x128xf32>
    %284 = arith.addf %283, %282 : vector<1x128xf32>
    %285 = arith.divf %283, %284 : vector<1x128xf32>
    %286 = vector.extract_strided_slice %274 {offsets = [0, 128], sizes = [1, 128], strides = [1, 1]} : vector<1x384xf32> to vector<1x128xf32>
    %287 = vector.extract_strided_slice %277 {offsets = [0, 128], sizes = [1, 128], strides = [1, 1]} : vector<1x384xf32> to vector<1x128xf32>
    %288 = arith.addf %286, %287 : vector<1x128xf32>
    %289 = arith.negf %288 : vector<1x128xf32>
    %290 = math.exp %289 : vector<1x128xf32>
    %cst_109 = arith.constant 1.000000e+00 : f32
    %291 = vector.broadcast %cst_109 : f32 to vector<1x128xf32>
    %292 = arith.addf %291, %290 : vector<1x128xf32>
    %293 = arith.divf %291, %292 : vector<1x128xf32>
    %294 = vector.extract_strided_slice %274 {offsets = [0, 256], sizes = [1, 128], strides = [1, 1]} : vector<1x384xf32> to vector<1x128xf32>
    %295 = vector.extract_strided_slice %277 {offsets = [0, 256], sizes = [1, 128], strides = [1, 1]} : vector<1x384xf32> to vector<1x128xf32>
    %c0_110 = arith.constant 0 : index
    %c0_111 = arith.constant 0 : index
    %296 = vector.load %arg6[%c0_110, %c0_111] : memref<1x128xf32, #tpu.memory_space<vmem>>, vector<1x128xf32>
    %297 = arith.addf %295, %296 : vector<1x128xf32>
    %298 = arith.mulf %285, %297 : vector<1x128xf32>
    %299 = arith.addf %294, %298 : vector<1x128xf32>
    %300 = math.tanh %299 : vector<1x128xf32>
    %301 = arith.subf %271, %300 : vector<1x128xf32>
    %302 = arith.mulf %293, %301 : vector<1x128xf32>
    %303 = arith.addf %300, %302 : vector<1x128xf32>
    %c4_i32_112 = arith.constant 4 : i32
    %c0_113 = arith.constant 0 : index
    %c0_114 = arith.constant 0 : index
    %304 = vector.load %arg12[%c0_113, %c0_114] : memref<1x128xf32, #tpu.memory_space<vmem>>, vector<1x128xf32>
    tpu.vector_store %arg12[%c0_113, %c0_114], %303 {strides = array<i32>} : memref<1x128xf32, #tpu.memory_space<vmem>>, vector<1x128xf32>,
    return
  }
}

</mosaic_0001>

<bundles_post_ra>
// kernel: bigru_forward.1
= control target key start
LH: loop header
LB: loop body
LE: loop exit
PB: predicated region body
PF: predicated region fallthrough
CT: control target
= control target key end

     0   :  { %17 = vsyncpa [#allocation11], 0  ;;  %s5783_s0 = inlined_call_operand.vmem [shape: bf16[4,768], index: 0, kind: input, shape index: {}]   ;;  %s5784_s1 = inlined_call_operand.hbm [shape: bf16[768,384], index: 1, kind: input, shape index: {}]   ;;  %s5785_s2 = inlined_call_operand.hbm [shape: bf16[128,384], index: 2, kind: input, shape index: {}]   ;;  %s5786_s3 = inlined_call_operand.hbm [shape: f32[1,384], index: 3, kind: input, shape index: {}]   ;;  %s5787_s4 = inlined_call_operand.hbm [shape: f32[1,128], index: 4, kind: input, shape index: {}]   ;;  %s5788_s5 = inlined_call_operand.hbm [shape: f32[1,384], index: 5, kind: input, shape index: {}]   ;;  %s5789_s6 = inlined_call_operand.hbm [shape: f32[1,128], index: 6, kind: input, shape index: {}]   ;;  %s5790_s7 = inlined_call_operand.hbm [shape: f32[1,64], index: 7, kind: input, shape index: {}]   ;;  %s5791_s8 = inlined_call_operand.hbm [shape: bf16[768,384], index: 8, kind: input, shape index: {}]   ;;  %s5792_s9 = inlined_call_operand.hbm [shape: bf16[128,384], index: 9, kind: input, shape index: {}]   ;;  %s5793_s10 = inlined_call_operand.vmem [shape: bf16[128,64], index: 10, kind: input, shape index: {}]   ;;  %s5794_s11 = inlined_call_operand.hbm [shape: bf16[64,384], index: 11, kind: input, shape index: {}]   ;;  %s5795_s12 = inlined_call_operand.hbm [shape: f32[1,128], index: 12, kind: output, shape index: {}]  }
   0x1   :  { %18 = vsyncpa [#allocation14], 0 }
   0x2   :  { %19 = vsyncpa [#allocation17], 0 }
   0x3   :  { %20 = vsyncpa [#allocation20], 0 }
   0x4   :  { %21 = vsyncpa [#allocation12], 0  ;;  %s5009_s21 = smov [#allocation13]   ;;  %s5010_s23 = smov [#allocation16]  }
   0x5   :  { %s41_s22 = sshll.u32 %s5009_s21, 4  ;;  %s64_s24 = sshll.u32 %s5010_s23, 4  ;;  %s42_s22 = int_to_ptr.vmem [resolvable:$true] %s41_s22  ;;  %s5103_s24 = int_to_ptr.vmem [resolvable:$true] %s64_s24 }
   0x6   :  { %s4815_s27 = scalar_lea.hbm %s5785_s2, 3072 }
   0x7   :  { %p4816_p0 = scmp.ne.s32.totalorder %s5785_s2, %s4815_s27  ;;  %p4819_p1 = scmp.lt.u32.totalorder %s4815_s27, %s5785_s2 }
   0x9   :  { %p4821_p2 = pnand %p4819_p1, %p4816_p0 }
   0xb   :  { %4824 = shalt.err (!%p4821_p2)
}
   0xc   :  { %s4825_s14 = scalar_lea.vmem %s42_s22, 3072  ;;  %p4830_p4 = scmp.lt.s32.totalorder %s42_s22, %s42_s22 }
   0xd   :  { %p4826_p3 = scmp.ne.s32.totalorder %s42_s22, %s4825_s14  ;;  %p4831_p5 = scmp.lt.s32.totalorder %s4825_s14, %s4825_s14 }
   0xf   :  { %p4832_p6 = por %p4831_p5, %p4830_p4 }
  0x11   :  { %p4833_p7 = pnand %p4832_p6, %p4826_p3 }
  0x13   :  { %4836 = shalt.err (!%p4833_p7)
}
  0x14   :  { %s5011_s15 = smov 192   ;;  %s5012_s16 = smov 12  }
  0x15   :  { %47 = dma.hbm_to_vmem [thread:$0]  %s5785_s2, 3072, %s42_s22, [#allocation14], %s5011_s15, %s5011_s15, %s5012_s16  }
  0x16   :  { %s4837_s21 = scalar_lea.hbm %s5787_s4, 16 }
  0x17   :  { %p4838_p8 = scmp.ne.s32.totalorder %s5787_s4, %s4837_s21  ;;  %p4841_p9 = scmp.lt.u32.totalorder %s4837_s21, %s5787_s4 }
  0x19   :  { %p4843_p10 = pnand %p4841_p9, %p4838_p8 }
  0x1b   :  { %4846 = shalt.err (!%p4843_p10)
}
  0x1c   :  { %s4847_s28 = scalar_lea.vmem %s5103_s24, 16  ;;  %s4851_s2 = scalar_lea.vmem %s5103_s24, 32 }
  0x1d   :  { %p4848_p11 = scmp.ne.s32.totalorder %s5103_s24, %s4847_s28  ;;  %p4852_p12 = scmp.lt.s32.totalorder %s5103_s24, %s5103_s24 }
  0x1e   :  { %p4853_p13 = scmp.lt.s32.totalorder %s4851_s2, %s4847_s28 }
  0x20   :  { %p4854_p0 = por %p4853_p13, %p4852_p12 }
  0x22   :  { %p4855_p1 = pnand %p4854_p0, %p4848_p11 }
  0x24   :  { %4858 = shalt.err (!%p4855_p1)
}
  0x25   :  { %67 = dma.hbm_to_vmem [thread:$0]  %s5787_s4, 16, %s5103_s24, [#allocation17]  }
  0x26   :  { %s5013_s30 = smov [#allocation19]   ;;  %s5014_s14 = smov [#allocation10]  }
  0x27   :  { %s84_s13 = sshll.u32 %s5013_s30, 4  ;;  %s29_s17 = sshll.u32 %s5014_s14, 4  ;;  %s85_s13 = int_to_ptr.vmem [resolvable:$true] %s84_s13  ;;  %s5138_s17 = int_to_ptr.vmem [resolvable:$true] %s29_s17 }
  0x28   :  { %s4859_s20 = scalar_lea.hbm %s5789_s6, 16 }
  0x29   :  { %p4860_p2 = scmp.ne.s32.totalorder %s5789_s6, %s4859_s20  ;;  %p4863_p3 = scmp.lt.u32.totalorder %s4859_s20, %s5789_s6 }
  0x2b   :  { %p4865_p4 = pnand %p4863_p3, %p4860_p2 }
  0x2d   :  { %4868 = shalt.err (!%p4865_p4)
}
  0x2e   :  { %s4869_s4 = scalar_lea.vmem %s85_s13, 16  ;;  %s4873_s24 = scalar_lea.vmem %s85_s13, 32 }
  0x2f   :  { %p4870_p5 = scmp.ne.s32.totalorder %s85_s13, %s4869_s4  ;;  %p4874_p6 = scmp.lt.s32.totalorder %s85_s13, %s85_s13 }
  0x30   :  { %p4875_p7 = scmp.lt.s32.totalorder %s4873_s24, %s4869_s4 }
  0x32   :  { %p4876_p8 = por %p4875_p7, %p4874_p6 }
  0x34   :  { %p4877_p9 = pnand %p4876_p8, %p4870_p5 }
  0x36   :  { %4880 = shalt.err (!%p4877_p9)
}
  0x37   :  { %87 = dma.hbm_to_vmem [thread:$0]  %s5789_s6, 16, %s85_s13, [#allocation20]  }
  0x38   :  { %s4881_s29 = scalar_lea.hbm %s5784_s1, 18432 }
  0x39   :  { %p4882_p10 = scmp.ne.s32.totalorder %s5784_s1, %s4881_s29  ;;  %p4885_p11 = scmp.lt.u32.totalorder %s4881_s29, %s5784_s1 }
  0x3b   :  { %p4887_p12 = pnand %p4885_p11, %p4882_p10 }
  0x3d   :  { %4890 = shalt.err (!%p4887_p12)
}
  0x3e   :  { %s4891_s20 = scalar_lea.vmem %s5138_s17, 18432  ;;  %p4896_p0 = scmp.lt.s32.totalorder %s5138_s17, %s5138_s17 }
  0x3f   :  { %p4892_p13 = scmp.ne.s32.totalorder %s5138_s17, %s4891_s20  ;;  %p4897_p1 = scmp.lt.s32.totalorder %s4891_s20, %s4891_s20 }
  0x41   :  { %p4898_p2 = por %p4897_p1, %p4896_p0 }
  0x43   :  { %p4899_p3 = pnand %p4898_p2, %p4892_p13 }
  0x45   :  { %4902 = shalt.err (!%p4899_p3)
}
  0x46   :  { %35 = dma.hbm_to_vmem [thread:$0]  %s5784_s1, 18432, %s5138_s17, [#allocation11], %s5011_s15, %s5011_s15, %s5012_s16  }
  0x47   :  { %s5015_s21 = smov [#allocation15]   ;;  %s5016_s25 = smov [#allocation18]  }
  0x48   :  { %s54_s23 = sshll.u32 %s5015_s21, 4  ;;  %s74_s26 = sshll.u32 %s5016_s25, 4  ;;  %s55_s23 = int_to_ptr.vmem [resolvable:$true] %s54_s23  ;;  %s75_s26 = int_to_ptr.vmem [resolvable:$true] %s74_s26 }
  0x49   :  { %s4903_s27 = scalar_lea.hbm %s5786_s3, 48 }
  0x4a   :  { %p4904_p4 = scmp.ne.s32.totalorder %s5786_s3, %s4903_s27  ;;  %p4907_p5 = scmp.lt.u32.totalorder %s4903_s27, %s5786_s3 }
  0x4c   :  { %p4909_p6 = pnand %p4907_p5, %p4904_p4 }
  0x4e   :  { %4912 = shalt.err (!%p4909_p6)
}
  0x4f   :  { %s4913_s1 = scalar_lea.vmem %s55_s23, 48  ;;  %s4917_s16 = scalar_lea.vmem %s55_s23, 64 }
  0x50   :  { %p4914_p7 = scmp.ne.s32.totalorder %s55_s23, %s4913_s1  ;;  %p4918_p8 = scmp.lt.s32.totalorder %s55_s23, %s55_s23 }
  0x51   :  { %p4919_p9 = scmp.lt.s32.totalorder %s4917_s16, %s4913_s1 }
  0x53   :  { %p4920_p10 = por %p4919_p9, %p4918_p8 }
  0x55   :  { %p4921_p11 = pnand %p4920_p10, %p4914_p7 }
  0x57   :  { %4924 = shalt.err (!%p4921_p11)
}
  0x58   :  { %57 = dma.hbm_to_vmem [thread:$0]  %s5786_s3, 48, %s55_s23, [#allocation14]  }
  0x59   :  { %s4925_s19 = scalar_lea.hbm %s5788_s5, 48 }
  0x5a   :  { %p4926_p12 = scmp.ne.s32.totalorder %s5788_s5, %s4925_s19  ;;  %p4929_p13 = scmp.lt.u32.totalorder %s4925_s19, %s5788_s5 }
  0x5c   :  { %p4931_p0 = pnand %p4929_p13, %p4926_p12 }
  0x5e   :  { %4934 = shalt.err (!%p4931_p0)
}
  0x5f   :  { %s4935_s25 = scalar_lea.vmem %s75_s26, 48  ;;  %s4939_s4 = scalar_lea.vmem %s75_s26, 64 }
  0x60   :  { %p4936_p1 = scmp.ne.s32.totalorder %s75_s26, %s4935_s25  ;;  %p4940_p2 = scmp.lt.s32.totalorder %s75_s26, %s75_s26 }
  0x61   :  { %p4941_p3 = scmp.lt.s32.totalorder %s4939_s4, %s4935_s25 }
  0x63   :  { %p4942_p4 = por %p4941_p3, %p4940_p2 }
  0x65   :  { %p4943_p5 = pnand %p4942_p4, %p4936_p1 }
  0x67   :  { %4946 = shalt.err (!%p4943_p5)
}
  0x68   :  { %77 = dma.hbm_to_vmem [thread:$0]  %s5788_s5, 48, %s75_s26, [#allocation17]  }
  0x69   :  { %s5017_s24 = smov [#allocation21]   ;;  %s4947_s22 = scalar_lea.hbm %s5790_s7, 16 }
  0x6a   :  { %s94_s27 = sshll.u32 %s5017_s24, 4  ;;  %p4948_p6 = scmp.ne.s32.totalorder %s5790_s7, %s4947_s22  ;;  %s95_s27 = int_to_ptr.vmem [resolvable:$true] %s94_s27 }
  0x6b   :  { %p4951_p7 = scmp.lt.u32.totalorder %s4947_s22, %s5790_s7 }
  0x6d   :  { %p4953_p8 = pnand %p4951_p7, %p4948_p6 }
  0x6f   :  { %4956 = shalt.err (!%p4953_p8)
}
  0x70   :  { %s4957_s30 = scalar_lea.vmem %s95_s27, 16  ;;  %s4961_s5 = scalar_lea.vmem %s95_s27, 32 }
  0x71   :  { %p4958_p9 = scmp.ne.s32.totalorder %s95_s27, %s4957_s30  ;;  %p4962_p10 = scmp.lt.s32.totalorder %s95_s27, %s95_s27 }
  0x72   :  { %p4963_p11 = scmp.lt.s32.totalorder %s4961_s5, %s4957_s30 }
  0x74   :  { %p4964_p12 = por %p4963_p11, %p4962_p10 }
  0x76   :  { %p4965_p13 = pnand %p4964_p12, %p4958_p9 }
  0x78   :  { %4968 = shalt.err (!%p4965_p13)
}
  0x79   :  { %97 = dma.hbm_to_vmem [thread:$0]  %s5790_s7, 16, %s95_s27, [#allocation20]  }
  0x7a   :  { %4991 = dma.done.wait [#allocation11], 18432  }
  0x7b   :  { %4992 = vsyncadd [#allocation11], 4294948864 }
  0x7c   :  { %4993 = dma.done.wait [#allocation14], 3120  }
  0x7d   :  { %4994 = vsyncadd [#allocation14], 4294964176 }
  0x7e   :  { %4995 = dma.done.wait [#allocation17], 64  }
  0x7f   :  { %4996 = vsyncadd [#allocation17], 4294967232 }
  0x80   :  { %4997 = dma.done.wait [#allocation20], 32  }
  0x81   :  { %4998 = vsyncadd [#allocation20], 4294967264  ;;  %s124_s18 = sld [smem:[#allocation0]]   ;;  %148 = sst [smem:[#allocation24 + $0x6]] %s5011_s15 }
  0x82   :  { %s5018_s19 = smov [#allocation2]   ;;  %s5019_s6 = smov 384  }
  0x83   :  { %s132_s20 = sshll.u32 %s5018_s19, 4  ;;  %136 = sst [smem:[#allocation24]] %s5019_s6  ;;  %s133_s20 = int_to_ptr.vmem [resolvable:$true] %s132_s20 }
  0x84   :  { %138 = sst [smem:[#allocation24 + $0x1]] %s5019_s6  ;;  %s5020_s7 = smov 3  }
  0x85   :  { %140 = sst [smem:[#allocation24 + $0x2]] %s5020_s7  ;;  %s5021_s13 = smov 64  }
  0x86   :  { %142 = sst [smem:[#allocation24 + $0x3]] %s5021_s13  ;;  %s5022_s25 = smov 128  }
  0x87   :  { %s3765_s21 = sshll.u32 %s124_s18, 26  ;;  %144 = sst [smem:[#allocation24 + $0x4]] %s5022_s25 }
  0x88   :  { %s5214_s4 = sadd.s32 134217728, %s3765_s21  ;;  %s5023_s3 = smov 2  }
  0x89   :  { %146 = sst [smem:[#allocation24 + $0x5]] %s5023_s3  ;;  %s5024_s23 = smov 4  }
  0x8a   :  { %150 = sst [smem:[#allocation24 + $0x7]] %s5021_s13  ;;  %s5025_s24 = smov [#allocation6]  }
  0x8b   :  { %152 = sst [smem:[#allocation24 + $0x8]] %s5024_s23  ;;  %s5026_s27 = smov [#allocation23]  }
  0x8c   :  { %154 = dma.general %s5791_s8, 18432, %s133_s20, %s5025_s24, %s5026_s27, [#allocation24], %s5214_s4, 0  }
  0x8d   :  { %171 = sst [smem:[#allocation26]] %s5019_s6  ;;  %s5027_s22 = smov [#allocation3]  }
  0x8e   :  { %173 = sst [smem:[#allocation26 + $0x1]] %s5019_s6  ;;  %s167_s29 = sshll.u32 %s5027_s22, 4  ;;  %s168_s29 = int_to_ptr.vmem [resolvable:$true] %s167_s29 }
  0x8f   :  { %175 = sst [smem:[#allocation26 + $0x2]] %s5020_s7  ;;  %s5028_s8 = smov [#allocation6 + $0x1]  }
  0x90   :  { %177 = sst [smem:[#allocation26 + $0x3]] %s5021_s13  ;;  %s5029_s1 = smov [#allocation25]  }
  0x91   :  { %179 = sst [smem:[#allocation26 + $0x4]] %s5022_s25 }
  0x92   :  { %181 = sst [smem:[#allocation26 + $0x5]] %s5023_s3 }
  0x93   :  { %183 = sst [smem:[#allocation26 + $0x6]] %s5011_s15 }
  0x94   :  { %185 = sst [smem:[#allocation26 + $0x7]] %s5021_s13 }
  0x95   :  { %187 = sst [smem:[#allocation26 + $0x8]] %s5024_s23 }
  0x96   :  { %189 = dma.general %s5792_s9, 3072, %s168_s29, %s5028_s8, %s5029_s1, [#allocation26], %s5214_s4, 0  }
  0x97   :  { %v5239_v0 = vld [vmem:[%s5793_s10] sm:$0xff]  ;;  %v5244_v1 = vld [vmem:[%s5793_s10 + $0x8] sm:$0xff]  ;;  %v5249_v2 = vld [vmem:[%s5793_s10 + $0x10] sm:$0xff] }
  0x98   :  { %v5254_v3 = vld [vmem:[%s5793_s10 + $0x18] sm:$0xff]  ;;  %v5259_v4 = vld [vmem:[%s5793_s10 + $0x20] sm:$0xff]  ;;  %v5264_v5 = vld [vmem:[%s5793_s10 + $0x28] sm:$0xff] }
  0x99   :  { %v5269_v6 = vld [vmem:[%s5793_s10 + $0x30] sm:$0xff]  ;;  %v5274_v7 = vld [vmem:[%s5793_s10 + $0x38] sm:$0xff] }
  0x9a   :  { %246 = vsyncadd [#allocation6 + $0x2], 1024  ;;  %263 = sst [smem:[#allocation29]] %s5019_s6  ;;  %s5030_s1 = smov [#allocation5]   ;;  %v478_v28 = vlaneseq  ;;  %v5033_v30 = vmov 1983009808  }
  0x9b   :  { %s259_s16 = sshll.u32 %s5030_s1, 4  ;;  %265 = sst [smem:[#allocation29 + $0x1]] %s5019_s6  ;;  %v497_v31 = vunpack.c.l.s4 %v5033_v30  ;;  %vm5036_vm0 = vmmov 0   ;;  %s260_s16 = int_to_ptr.vmem [resolvable:$true] %s259_s16 }
  0x9c   :  { %267 = sst [smem:[#allocation29 + $0x2]] %s5020_s7  ;;  %s5031_s10 = smov [#allocation6 + $0x3]   ;;  %v5289_v35 = vshrl.u32 %v478_v28, 7 }
  0x9d   :  { %269 = sst [smem:[#allocation29 + $0x3]] %s5021_s13  ;;  %s5032_s17 = smov [#allocation28]   ;;  %v498_v38 = vunpack.c.0.s8 %v497_v31 }
  0x9e   :  { %271 = sst [smem:[#allocation29 + $0x4]] %s5022_s25 }
  0x9f   :  { %273 = sst [smem:[#allocation29 + $0x5]] %s5023_s3  ;;  %v5292_v43 = vsub.s32 %v498_v38, %v5289_v35 }
  0xa0   :  { %275 = sst [smem:[#allocation29 + $0x6]] %s5011_s15 }
  0xa1   :  { %277 = sst [smem:[#allocation29 + $0x7]] %s5021_s13 }
  0xa2   :  { %279 = sst [smem:[#allocation29 + $0x8]] %s5024_s23 }
  0xa3   :  { %281 = dma.general %s5794_s11, 1536, %s260_s16, %s5031_s10, %s5032_s17, [#allocation29], %s5214_s4, 0  }
  0xa4   :  { %v4485_v8 = vld [vmem:[#allocation10 + $0x4] ss:$12 sps:$4 sm:$0xff]   ;;  %v4487_v9 = vld [vmem:[#allocation10] ss:$12 sps:$4 sm:$0xff]   ;;  %v4488_v10 = vld [vmem:[#allocation10 + $0x1c] ss:$12 sps:$4 sm:$0xff]  }
  0xa5   :  { %1294 = vmatprep.subr.bf16.mxu0 %v4485_v8  ;;  %v4490_v11 = vld [vmem:[#allocation10 + $0x18] ss:$12 sps:$4 sm:$0xff]   ;;  %v4491_v12 = vld [vmem:[#allocation10 + $0x34] ss:$12 sps:$4 sm:$0xff]   ;;  %v4493_v14 = vld [vmem:[#allocation10 + $0x30] ss:$12 sps:$4 sm:$0xff]  }
  0xa6   :  { %1295 = vmatpush1.bf16.msra.mxu0 %v4487_v9  ;;  %v4494_v13 = vld [vmem:[#allocation10 + $0xc8] ss:$12 sps:$4 sm:$0xff]   ;;  %v4495_v16 = vld [vmem:[#allocation10 + $0x4c] ss:$12 sps:$4 sm:$0xff]   ;;  %v4500_v21 = vld [vmem:[#allocation10 + $0x64] ss:$12 sps:$4 sm:$0xff]  }
  0xa7   :  { %1296 = vmatprep.subr.bf16.mxu0 %v4488_v10  ;;  %4036 = vmatprep.subr.bf16.mxu1 %v4494_v13  ;;  %v4497_v15 = vld [vmem:[#allocation10 + $0x8] ss:$12 sps:$4 sm:$0xff]   ;;  %v4499_v17 = vld [vmem:[#allocation10 + $0xe0] ss:$12 sps:$4 sm:$0xff]   ;;  %v4504_v20 = vld [vmem:[#allocation10 + $0xf8] ss:$12 sps:$4 sm:$0xff]  }
  0xa8   :  { %4037 = vmatpush3.bf16.msra.mxu1 %v4497_v15  ;;  %v4498_v18 = vld [vmem:[#allocation10 + $0x48] ss:$12 sps:$4 sm:$0xff]   ;;  %v4502_v19 = vld [vmem:[#allocation10 + $0x20] ss:$12 sps:$4 sm:$0xff]   ;;  %v4507_v23 = vld [vmem:[#allocation10 + $0x38] ss:$12 sps:$4 sm:$0xff]  }
  0xa9   :  { %4038 = vmatprep.subr.bf16.mxu1 %v4499_v17  ;;  %v4503_v22 = vld [vmem:[#allocation10 + $0x60] ss:$12 sps:$4 sm:$0xff]   ;;  %v4509_v24 = vld [vmem:[#allocation10 + $0x110] ss:$12 sps:$4 sm:$0xff]   ;;  %v4514_v27 = vld [vmem:[#allocation10 + $0x128] ss:$12 sps:$4 sm:$0xff]  }
  0xaa   :  { %1297 = vmatpush1.bf16.msra.mxu0 %v4490_v11  ;;  %v4505_v25 = vld [vmem:[#allocation10 + $0x7c] ss:$12 sps:$4 sm:$0xff]   ;;  %v4508_v29 = vld [vmem:[#allocation10 + $0x78] ss:$12 sps:$4 sm:$0xff]   ;;  %v4510_v32 = vld [vmem:[#allocation10 + $0x94] ss:$12 sps:$4 sm:$0xff]  }
  0xab   :  { %1298 = vmatprep.subr.bf16.mxu0 %v4491_v12  ;;  %v4512_v26 = vld [vmem:[#allocation10 + $0x50] ss:$12 sps:$4 sm:$0xff]   ;;  %v4517_v33 = vld [vmem:[#allocation10 + $0x68] ss:$12 sps:$4 sm:$0xff]   ;;  %v4519_v34 = vld [vmem:[#allocation10 + $0x140] ss:$12 sps:$4 sm:$0xff]  }
  0xac   :  { %4039 = vmatpush3.bf16.msra.mxu1 %v4502_v19  ;;  %v4513_v36 = vld [vmem:[#allocation10 + $0x90] ss:$12 sps:$4 sm:$0xff]   ;;  %v4515_v37 = vld [vmem:[#allocation10 + $0xac] ss:$12 sps:$4 sm:$0xff]   ;;  %v4518_v41 = vld [vmem:[#allocation10 + $0xa8] ss:$12 sps:$4 sm:$0xff]  }
  0xad   :  { %4040 = vmatprep.subr.bf16.mxu1 %v4504_v20  ;;  %v4522_v39 = vld [vmem:[#allocation10 + $0x80] ss:$12 sps:$4 sm:$0xff]   ;;  %v4524_v40 = vld [vmem:[#allocation10 + $0x158] ss:$12 sps:$4 sm:$0xff]   ;;  %v4529_v45 = vld [vmem:[#allocation10 + $0x170] ss:$12 sps:$4 sm:$0xff]  }
  0xae   :  { %1299 = vmatpush1.bf16.msra.mxu0 %v4493_v14  ;;  %v4520_v42 = vld [vmem:[#allocation10 + $0xc4] ss:$12 sps:$4 sm:$0xff]   ;;  %v4523_v46 = vld [vmem:[#allocation10 + $0xc0] ss:$12 sps:$4 sm:$0xff]   ;;  %v4525_v48 = vld [vmem:[#allocation10 + $0xdc] ss:$12 sps:$4 sm:$0xff]  }
  0xaf   :  { %1300 = vmatprep.subr.bf16.mxu0 %v4495_v16  ;;  %v4527_v44 = vld [vmem:[#allocation10 + $0x98] ss:$12 sps:$4 sm:$0xff]   ;;  %v4532_v51 = vld [vmem:[#allocation10 + $0xb0] ss:$12 sps:$4 sm:$0xff]   ;;  %v4535_v53 = vld [vmem:[#allocation10 + $0x248] ss:$12 sps:$4 sm:$0xff]  }
  0xb0   :  { %4041 = vmatpush3.bf16.msra.mxu1 %v4507_v23  ;;  %v282_v47 = vld [vmem:[%s5783_s0] sm:$0xff]  ;;  %v4530_v56 = vld [vmem:[#allocation10 + $0xf4] ss:$12 sps:$4 sm:$0xff]   ;;  %v4533_v60 = vld [vmem:[#allocation10 + $0xf0] ss:$12 sps:$4 sm:$0xff]  }
  0xb1   :  { %4042 = vmatprep.subr.bf16.mxu1 %v4509_v24  ;;  %v495_v49 = vcombine.high %v282_v47, %v282_v47  ;;  %v5298_v50 = vrot.slane %v282_v47, %v5292_v43  ;;  %v4528_v55 = vld [vmem:[#allocation10 + $0xd8] ss:$12 sps:$4 sm:$0xff]   ;;  %v4538_v57 = vld [vmem:[#allocation10 + $0x188] ss:$12 sps:$4 sm:$0xff]   ;;  %v4540_v58 = vld [vmem:[#allocation10 + $0x260] ss:$12 sps:$4 sm:$0xff]  }
  0xb2   :  { %1301 = vmatpush1.bf16.msra.mxu0 %v4498_v18  ;;  %v4536_v61 = vld [vmem:[#allocation10 + $0x10c] ss:$12 sps:$4 sm:$0xff]   ;;  %v4539_v8 = vld [vmem:[#allocation10 + $0x108] ss:$12 sps:$4 sm:$0xff]   ;;  %v4541_v9 = vld [vmem:[#allocation10 + $0x124] ss:$12 sps:$4 sm:$0xff]  }
  0xb3   :  { %1302 = vmatprep.subr.bf16.mxu0 %v4500_v21  ;;  %v510_v52 = vcombine.high %v5298_v50, %v5298_v50  ;;  %v5303_v54 = vrot.slane %v495_v49, %v5292_v43  ;;  %v4543_v62 = vld [vmem:[#allocation10 + $0x1a0] ss:$12 sps:$4 sm:$0xff]   ;;  %v4545_v63 = vld [vmem:[#allocation10 + $0x278] ss:$12 sps:$4 sm:$0xff]   ;;  %v4550_v11 = vld [vmem:[#allocation10 + $0x290] ss:$12 sps:$4 sm:$0xff]  }
  0xb4   :  { %4043 = vmatpush3.bf16.msra.mxu1 %v4512_v26  ;;  %v4548_v10 = vld [vmem:[#allocation10 + $0x1b8] ss:$12 sps:$4 sm:$0xff]   ;;  %v4544_v12 = vld [vmem:[#allocation10 + $0x120] ss:$12 sps:$4 sm:$0xff]   ;;  %v4546_v13 = vld [vmem:[#allocation10 + $0x13c] ss:$12 sps:$4 sm:$0xff]  }
  0xb5   :  { %4044 = vmatprep.subr.bf16.mxu1 %v4514_v27  ;;  %1449 = vmatprep.mubr.bf16.mxu1 %v510_v52  ;;  %v511_v59 = vcombine.high %v5303_v54, %v5303_v54  ;;  %v4553_v14 = vld [vmem:[#allocation10 + $0x1d0] ss:$12 sps:$4 sm:$0xff]   ;;  %v4555_v15 = vld [vmem:[#allocation10 + $0x2a8] ss:$12 sps:$4 sm:$0xff]   ;;  %v4549_v16 = vld [vmem:[#allocation10 + $0x138] ss:$12 sps:$4 sm:$0xff]  }
  0xb6   :  { %1303 = vmatpush1.bf16.msra.mxu0 %v4503_v22  ;;  %1326 = vmatprep.mubr.bf16.mxu0 %v510_v52  ;;  %v4551_v17 = vld [vmem:[#allocation10 + $0x154] ss:$12 sps:$4 sm:$0xff]   ;;  %v4554_v20 = vld [vmem:[#allocation10 + $0x150] ss:$12 sps:$4 sm:$0xff]   ;;  %v4556_v21 = vld [vmem:[#allocation10 + $0x16c] ss:$12 sps:$4 sm:$0xff]  }
  0xb7   :  { %1304 = vmatprep.subr.bf16.mxu0 %v4505_v25  ;;  %v4558_v18 = vld [vmem:[#allocation10 + $0x1e8] ss:$12 sps:$4 sm:$0xff]   ;;  %v4560_v19 = vld [vmem:[#allocation10 + $0x2c0] ss:$12 sps:$4 sm:$0xff]   ;;  %v4565_v23 = vld [vmem:[#allocation10 + $0x2d8] ss:$12 sps:$4 sm:$0xff]  }
  0xb8   :  { %4045 = vmatpush3.bf16.msra.mxu1 %v4517_v33  ;;  %v4564_v22 = vld [vmem:[#allocation10 + $0x200] ss:$12 sps:$4 sm:$0xff]   ;;  %v4559_v24 = vld [vmem:[#allocation10 + $0x168] ss:$12 sps:$4 sm:$0xff]   ;;  %v4563_v25 = vld [vmem:[#allocation10 + $0x184] ss:$12 sps:$4 sm:$0xff]  }
  0xb9   :  { %4046 = vmatprep.subr.bf16.mxu1 %v4519_v34  ;;  %v4569_v26 = vld [vmem:[#allocation10 + $0x218] ss:$12 sps:$4 sm:$0xff]   ;;  %v4570_v27 = vld [vmem:[#allocation10 + $0x2f0] ss:$12 sps:$4 sm:$0xff]   ;;  %v4561_v28 = vld [vmem:[#allocation10 + $0x180] ss:$12 sps:$4 sm:$0xff]  }
  0xba   :  { %1305 = vmatpush1.bf16.msra.mxu0 %v4508_v29  ;;  %v4568_v29 = vld [vmem:[#allocation10 + $0x19c] ss:$12 sps:$4 sm:$0xff]   ;;  %v4573_v33 = vld [vmem:[#allocation10 + $0x1b4] ss:$12 sps:$4 sm:$0xff]   ;;  %v4578_v38 = vld [vmem:[#allocation10 + $0x1cc] ss:$12 sps:$4 sm:$0xff]  }
  0xbb   :  { %1306 = vmatprep.subr.bf16.mxu0 %v4510_v32  ;;  %v4574_v30 = vld [vmem:[#allocation10 + $0x230] ss:$12 sps:$4 sm:$0xff]   ;;  %v4575_v31 = vld [vmem:[#allocation10 + $0x3c8] ss:$12 sps:$4 sm:$0xff]   ;;  %v4566_v32 = vld [vmem:[#allocation10 + $0x198] ss:$12 sps:$4 sm:$0xff]  }
  0xbc   :  { %4047 = vmatpush3.bf16.msra.mxu1 %v4522_v39  ;;  %v4579_v34 = vld [vmem:[#allocation10 + $0x308] ss:$12 sps:$4 sm:$0xff]   ;;  %v4584_v39 = vld [vmem:[#allocation10 + $0x320] ss:$12 sps:$4 sm:$0xff]  }
  0xbd   :  { %4048 = vmatprep.subr.bf16.mxu1 %v4524_v40  ;;  %v4585_v40 = vld [vmem:[#allocation10 + $0x3f8] ss:$12 sps:$4 sm:$0xff]   ;;  %v4588_v47 = vld [vmem:[#allocation10 + $0x1fc] ss:$12 sps:$4 sm:$0xff]  }
  0xbe   :  { %1307 = vmatpush1.bf16.msra.mxu0 %v4513_v36  ;;  %v4580_v36 = vld [vmem:[#allocation10 + $0x3e0] ss:$12 sps:$4 sm:$0xff]   ;;  %v4595_v49 = vld [vmem:[#allocation10 + $0x428] ss:$12 sps:$4 sm:$0xff]  }
  0xbf   :  { %1308 = vmatprep.subr.bf16.mxu0 %v4515_v37  ;;  %v4571_v37 = vld [vmem:[#allocation10 + $0x1b0] ss:$12 sps:$4 sm:$0xff]   ;;  %v4599_v52 = vld [vmem:[#allocation10 + $0x368] ss:$12 sps:$4 sm:$0xff]  }
  0xc0   :  { %4049 = vmatpush3.bf16.msra.mxu1 %v4527_v44  ;;  %v4589_v44 = vld [vmem:[#allocation10 + $0x338] ss:$12 sps:$4 sm:$0xff]  }
  0xc1   :  { %4050 = vmatprep.subr.bf16.mxu1 %v4529_v45  ;;  %v4590_v45 = vld [vmem:[#allocation10 + $0x410] ss:$12 sps:$4 sm:$0xff]  }
  0xc2   :  { %1309 = vmatpush1.bf16.msra.mxu0 %v4518_v41  ;;  %v4576_v41 = vld [vmem:[#allocation10 + $0x1c8] ss:$12 sps:$4 sm:$0xff]  }
  0xc3   :  { %1310 = vmatprep.subr.bf16.mxu0 %v4520_v42  ;;  %v4583_v42 = vld [vmem:[#allocation10 + $0x1e4] ss:$12 sps:$4 sm:$0xff]  }
  0xc4   :  { %4051 = vmatpush3.bf16.msra.mxu1 %v4532_v51  ;;  %v4593_v51 = vld [vmem:[#allocation10 + $0x214] ss:$12 sps:$4 sm:$0xff]  }
  0xc5   :  { %4058 = vmatprep.subr.bf16.mxu1 %v4535_v53  ;;  %v5313_v53 = vld.sshfl [vmem:[%s5783_s0 + $0x8] sm:$0x33 pattern:$0x76325410] }
  0xc6   :  { %1311 = vmatpush1.bf16.msra.mxu0 %v4523_v46  ;;  %v4581_v46 = vld [vmem:[#allocation10 + $0x1e0] ss:$12 sps:$4 sm:$0xff]  }
  0xc7   :  { %1312 = vmatprep.subr.bf16.mxu0 %v4525_v48  ;;  %1450 = vmatmul.mubr.bf16.vlgmr.msra.gmra.mrb[0].mxu1 %v5298_v50  ;;  %v4594_v48 = vld [vmem:[#allocation10 + $0x350] ss:$12 sps:$4 sm:$0xff]  }
  0xc8   :  { %4059 = vmatpush3.bf16.msra.mxu1 %v4538_v57  ;;  %1489 = vmatprep.mubr.bf16.mxu1 %v511_v59  ;;  %v4591_v57 = vld [vmem:[#allocation10 + $0x210] ss:$12 sps:$4 sm:$0xff]  }
  0xc9   :  { %4060 = vmatprep.subr.bf16.mxu1 %v4540_v58  ;;  %v4598_v58 = vld [vmem:[#allocation10 + $0x22c] ss:$12 sps:$4 sm:$0xff]  }
  0xca   :  { %1313 = vmatpush1.bf16.msra.mxu0 %v4528_v55  ;;  %v4600_v55 = vld [vmem:[#allocation10 + $0x440] ss:$12 sps:$4 sm:$0xff]  }
  0xcb   :  { %1314 = vmatprep.subr.bf16.mxu0 %v4530_v56  ;;  %v5317_v56 = vcombine.high %v5313_v53, %v5313_v53 }
  0xcc   :  { %4061 = vmatpush3.bf16.msra.mxu1 %v4543_v62  ;;  %v4603_v62 = vld [vmem:[#allocation10 + $0x244] ss:$12 sps:$4 sm:$0xff]  }
  0xcd   :  { %4062 = vmatprep.subr.bf16.mxu1 %v4545_v63  ;;  %v4609_v63 = vld [vmem:[#allocation10 + $0x398] ss:$12 sps:$4 sm:$0xff]  }
  0xce   :  { %1315 = vmatpush1.bf16.msra.mxu0 %v4533_v60  ;;  %v4605_v60 = vld [vmem:[#allocation10 + $0x458] ss:$12 sps:$4 sm:$0xff]  }
  0xcf   :  { %1316 = vmatprep.subr.bf16.mxu0 %v4536_v61  ;;  %v4596_v61 = vld [vmem:[#allocation10 + $0x228] ss:$12 sps:$4 sm:$0xff]  }
  0xd0   :  { %4063 = vmatpush3.bf16.msra.mxu1 %v4548_v10  ;;  %v4608_v10 = vld [vmem:[#allocation10 + $0x25c] ss:$12 sps:$4 sm:$0xff]  }
  0xd1   :  { %4064 = vmatprep.subr.bf16.mxu1 %v4550_v11  ;;  %v4614_v11 = vld [vmem:[#allocation10 + $0x3b0] ss:$12 sps:$4 sm:$0xff]  }
  0xd2   :  { %1317 = vmatpush1.bf16.msra.mxu0 %v4539_v8  ;;  %v4610_v8 = vld [vmem:[#allocation10 + $0x470] ss:$12 sps:$4 sm:$0xff]  }
  0xd3   :  { %1318 = vmatprep.subr.bf16.mxu0 %v4541_v9  ;;  %v4601_v9 = vld [vmem:[#allocation10 + $0x240] ss:$12 sps:$4 sm:$0xff]  }
  0xd4   :  { %4065 = vmatpush3.bf16.msra.mxu1 %v4553_v14  ;;  %v4611_v14 = vld [vmem:[#allocation10 + $0x270] ss:$12 sps:$4 sm:$0xff]  }
  0xd5   :  { %4066 = vmatprep.subr.bf16.mxu1 %v4555_v15  ;;  %v4617_v15 = vld [vmem:[#allocation10 + $0x28c] ss:$12 sps:$4 sm:$0xff]  }
  0xd6   :  { %1319 = vmatpush1.bf16.msra.mxu0 %v4544_v12  ;;  %v4606_v12 = vld [vmem:[#allocation10 + $0x258] ss:$12 sps:$4 sm:$0xff]  }
  0xd7   :  { %1320 = vmatprep.subr.bf16.mxu0 %v4546_v13  ;;  %v4613_v13 = vld [vmem:[#allocation10 + $0x274] ss:$12 sps:$4 sm:$0xff]  }
  0xd8   :  { %4067 = vmatpush3.bf16.msra.mxu1 %v4558_v18  ;;  %v5324_v18 = vld [vmem:[#allocation13 + $0x4] ss:$12 sps:$4 sm:$0xff]  }
  0xd9   :  { %4068 = vmatprep.subr.bf16.mxu1 %v4560_v19  ;;  %v4615_v19 = vld [vmem:[#allocation10 + $0x288] ss:$12 sps:$4 sm:$0xff]  }
  0xda   :  { %1321 = vmatpush1.bf16.msra.mxu0 %v4549_v16  ;;  %v5034_v16 = vmov 0  }
  0xdb   :  { %1322 = vmatprep.subr.bf16.mxu0 %v4551_v17  ;;  %v5322_v17 = vld [vmem:[#allocation13] ss:$12 sps:$4 sm:$0xff]  }
  0xdc   :  { %4069 = vmatpush3.bf16.msra.mxu1 %v4564_v22  ;;  %v5330_v22 = vld [vmem:[#allocation13 + $0x18] ss:$12 sps:$4 sm:$0xff]  }
  0xdd   :  { %4070 = vmatprep.subr.bf16.mxu1 %v4565_v23  ;;  %v4618_v23 = vld [vmem:[#allocation10 + $0x2a0] ss:$12 sps:$4 sm:$0xff]  }
  0xde   :  { %1323 = vmatpush1.bf16.msra.mxu0 %v4554_v20  ;;  %v4620_v20 = vld [vmem:[#allocation10 + $0x2a4] ss:$12 sps:$4 sm:$0xff]  }
  0xdf   :  { %1324 = vmatprep.subr.bf16.mxu0 %v4556_v21  ;;  %v5327_v21 = vld [vmem:[#allocation13 + $0x1c] ss:$12 sps:$4 sm:$0xff]  }
  0xe0   :  { %4071 = vmatpush3.bf16.msra.mxu1 %v4569_v26  ;;  %v5336_v26 = vld [vmem:[#allocation13 + $0x30] ss:$12 sps:$4 sm:$0xff]  }
  0xe1   :  { %4072 = vmatprep.subr.bf16.mxu1 %v4570_v27  ;;  %v5339_v27 = vld [vmem:[#allocation13 + $0x4c] ss:$12 sps:$4 sm:$0xff]  }
  0xe2   :  { %1325 = vmatpush1.bf16.msra.mxu0 %v4559_v24  ;;  %v5333_v24 = vld [vmem:[#allocation13 + $0x34] ss:$12 sps:$4 sm:$0xff]  }
  0xe3   :  { %1335 = vmatprep.subr.bf16.mxu0 %v4563_v25  ;;  %v4623_v25 = vld [vmem:[#allocation10 + $0x2bc] ss:$12 sps:$4 sm:$0xff]  }
  0xe4   :  { %4073 = vmatpush3.bf16.msra.mxu1 %v4574_v30  ;;  %v5342_v30 = vld [vmem:[#allocation13 + $0x48] ss:$12 sps:$4 sm:$0xff]  }
  0xe5   :  { %1327 = vmatmul.mubr.bf16.vlgmr.msra.gmra.mrb[0].mxu0 %v5298_v50  ;;  %4080 = vmatprep.subr.bf16.mxu1 %v4575_v31  ;;  %v4586_v50 = vld [vmem:[#allocation10 + $0x1f8] ss:$12 sps:$4 sm:$0xff]  }
  0xe6   :  { %1336 = vmatpush1.bf16.msra.mxu0 %v4561_v28  ;;  %1367 = vmatprep.mubr.bf16.mxu0 %v511_v59  ;;  %v4604_v59 = vld [vmem:[#allocation10 + $0x380] ss:$12 sps:$4 sm:$0xff]   ;;  %v4621_v28 = vld [vmem:[#allocation10 + $0x2b8] ss:$12 sps:$4 sm:$0xff]  }
  0xe7   :  { %1337 = vmatprep.subr.bf16.mxu0 %v4568_v29  ;;  %1490 = vmatmul.mubr.bf16.vlgmr.msra.gmra.mrb[4].mxu1 %v5303_v54  ;;  %v4626_v29 = vld [vmem:[#allocation10 + $0x2d4] ss:$12 sps:$4 sm:$0xff]   ;;  %v5345_v31 = vld [vmem:[#allocation13 + $0x64] ss:$12 sps:$4 sm:$0xff]  }
  0xe8   :  { %4081 = vmatpush3.bf16.msra.mxu1 %v4579_v34  ;;  %1529 = vmatprep.mubr.bf16.mxu1 %v5317_v56  ;;  %v5348_v34 = vld [vmem:[#allocation13 + $0x60] ss:$12 sps:$4 sm:$0xff]  }
  0xe9   :  { %4082 = vmatprep.subr.bf16.mxu1 %v4580_v36  ;;  %v5351_v36 = vld [vmem:[#allocation13 + $0x7c] ss:$12 sps:$4 sm:$0xff]  }
  0xea   :  { %1338 = vmatpush1.bf16.msra.mxu0 %v4566_v32  ;;  %v4624_v32 = vld [vmem:[#allocation10 + $0x2d0] ss:$12 sps:$4 sm:$0xff]  }
  0xeb   :  { %1339 = vmatprep.subr.bf16.mxu0 %v4573_v33  ;;  %v4629_v33 = vld [vmem:[#allocation10 + $0x2ec] ss:$12 sps:$4 sm:$0xff]  }
  0xec   :  { %4083 = vmatpush3.bf16.msra.mxu1 %v4584_v39  ;;  %v5354_v39 = vld [vmem:[#allocation13 + $0x78] ss:$12 sps:$4 sm:$0xff]  }
  0xed   :  { %4084 = vmatprep.subr.bf16.mxu1 %v4585_v40  ;;  %v5357_v40 = vld [vmem:[#allocation13 + $0x94] ss:$12 sps:$4 sm:$0xff]  }
  0xee   :  { %1340 = vmatpush1.bf16.msra.mxu0 %v4571_v37  ;;  %v4627_v37 = vld [vmem:[#allocation10 + $0x2e8] ss:$12 sps:$4 sm:$0xff]  }
  0xef   :  { %1341 = vmatprep.subr.bf16.mxu0 %v4578_v38  ;;  %v4632_v38 = vld [vmem:[#allocation10 + $0x304] ss:$12 sps:$4 sm:$0xff]  }
  0xf0   :  { %4085 = vmatpush3.bf16.msra.mxu1 %v4589_v44  ;;  %v4633_v44 = vld [vmem:[#allocation10 + $0x318] ss:$12 sps:$4 sm:$0xff]  }
  0xf1   :  { %4086 = vmatprep.subr.bf16.mxu1 %v4590_v45  ;;  %v5360_v45 = vld [vmem:[#allocation13 + $0x90] ss:$12 sps:$4 sm:$0xff]  }
  0xf2   :  { %1342 = vmatpush1.bf16.msra.mxu0 %v4576_v41  ;;  %v4630_v41 = vld [vmem:[#allocation10 + $0x300] ss:$12 sps:$4 sm:$0xff]  }
  0xf3   :  { %1343 = vmatprep.subr.bf16.mxu0 %v4583_v42  ;;  %v4635_v42 = vld [vmem:[#allocation10 + $0x31c] ss:$12 sps:$4 sm:$0xff]  }
  0xf4   :  { %4087 = vmatpush3.bf16.msra.mxu1 %v4594_v48  ;;  %v5367_v48 = vld [vmem:[#allocation13 + $0xa8] ss:$12 sps:$4 sm:$0xff]  }
  0xf5   :  { %4088 = vmatprep.subr.bf16.mxu1 %v4595_v49  ;;  %v4636_v49 = vld [vmem:[#allocation10 + $0x330] ss:$12 sps:$4 sm:$0xff]  }
  0xf6   :  { %1344 = vmatpush1.bf16.msra.mxu0 %v4581_v46  ;;  %v5364_v46 = vld [vmem:[#allocation13 + $0xac] ss:$12 sps:$4 sm:$0xff]  }
  0xf7   :  { %1345 = vmatprep.subr.bf16.mxu0 %v4588_v47  ;;  %v4638_v47 = vld [vmem:[#allocation10 + $0x334] ss:$12 sps:$4 sm:$0xff]  }
  0xf8   :  { %4089 = vmatpush3.bf16.msra.mxu1 %v4599_v52  ;;  %v4644_v52 = vld [vmem:[#allocation10 + $0x364] ss:$12 sps:$4 sm:$0xff]  }
  0xf9   :  { %4090 = vmatprep.subr.bf16.mxu1 %v4600_v55  ;;  %v5035_v55 = vmov 0.0  }
  0xfa   :  { %1346 = vmatpush1.bf16.msra.mxu0 %v4586_v50  ;;  %v4641_v50 = vld [vmem:[#allocation10 + $0x34c] ss:$12 sps:$4 sm:$0xff]  }
  0xfb   :  { %1347 = vmatprep.subr.bf16.mxu0 %v4593_v51  ;;  %v4702_v51 = vld [vmem:[#allocation13 + $0x8] ss:$12 sps:$4 sm:$0xff]  }
  0xfc   :  { %4091 = vmatpush3.bf16.msra.mxu1 %v4604_v59  ;;  %v4704_v59 = vld [vmem:[#allocation13 + $0x38] ss:$12 sps:$4 sm:$0xff]  }
  0xfd   :  { %4092 = vmatprep.subr.bf16.mxu1 %v4605_v60  ;;  %v4645_v60 = vld [vmem:[#allocation10 + $0x378] ss:$12 sps:$4 sm:$0xff]  }
  0xfe   :  { %1348 = vmatpush1.bf16.msra.mxu0 %v4591_v57  ;;  %v4642_v57 = vld [vmem:[#allocation10 + $0x360] ss:$12 sps:$4 sm:$0xff]  }
  0xff   :  { %1349 = vmatprep.subr.bf16.mxu0 %v4598_v58  ;;  %v4647_v58 = vld [vmem:[#allocation10 + $0x37c] ss:$12 sps:$4 sm:$0xff]  }
 0x100   :  { %4093 = vmatpush3.bf16.msra.mxu1 %v4609_v63  ;;  %v4648_v63 = vld [vmem:[#allocation10 + $0x390] ss:$12 sps:$4 sm:$0xff]  }
 0x101   :  { %4094 = vmatprep.subr.bf16.mxu1 %v4610_v8  ;;  %v4653_v8 = vld [vmem:[#allocation10 + $0x3ac] ss:$12 sps:$4 sm:$0xff]  }
 0x102   :  { %1350 = vmatpush1.bf16.msra.mxu0 %v4596_v61  ;;  %v4650_v61 = vld [vmem:[#allocation10 + $0x394] ss:$12 sps:$4 sm:$0xff]  }
 0x103   :  { %1351 = vmatprep.subr.bf16.mxu0 %v4603_v62  ;;  %v4705_v62 = vld [vmem:[#allocation13 + $0x50] ss:$12 sps:$4 sm:$0xff]  }
 0x104   :  { %4095 = vmatpush3.bf16.msra.mxu1 %v4614_v11  ;;  %v4656_v11 = vld [vmem:[#allocation10 + $0x3c4] ss:$12 sps:$4 sm:$0xff]  }
 0x105   :  { %1704 = vmatprep.subr.bf16.mxu1 %v5324_v18 }
 0x106   :  { %1352 = vmatpush1.bf16.msra.mxu0 %v4601_v9  ;;  %v4706_v9 = vld [vmem:[#allocation13 + $0x68] ss:$12 sps:$4 sm:$0xff]  }
 0x107   :  { %1353 = vmatprep.subr.bf16.mxu0 %v4608_v10  ;;  %1530 = vmatmul.mubr.bf16.vlgmr.msra.gmra.mrb[8].mxu1 %v5313_v53  ;;  %v4651_v10 = vld [vmem:[#allocation10 + $0x3a8] ss:$12 sps:$4 sm:$0xff]  }
 0x108   :  { %1736 = vmatprep.mubr.bf16.mxu1 %v5034_v16  ;;  %1705 = vmatpush1.bf16.msra.mxu1 %v5322_v17 }
 0x109   :  { %1706 = vmatprep.subr.bf16.mxu1 %v5327_v21 }
 0x10a   :  { %1354 = vmatpush1.bf16.msra.mxu0 %v4606_v12  ;;  %v4707_v12 = vld [vmem:[#allocation13 + $0x80] ss:$12 sps:$4 sm:$0xff]  }
 0x10b   :  { %1355 = vmatprep.subr.bf16.mxu0 %v4613_v13  ;;  %v4654_v13 = vld [vmem:[#allocation10 + $0x3c0] ss:$12 sps:$4 sm:$0xff]  }
 0x10c   :  { %1707 = vmatpush1.bf16.msra.mxu1 %v5330_v22 }
 0x10d   :  { %1708 = vmatprep.subr.bf16.mxu1 %v5333_v24 }
 0x10e   :  { %1356 = vmatpush1.bf16.msra.mxu0 %v4611_v14  ;;  %v4659_v14 = vld [vmem:[#allocation10 + $0x3dc] ss:$12 sps:$4 sm:$0xff]  }
 0x10f   :  { %1357 = vmatprep.subr.bf16.mxu0 %v4617_v15  ;;  %v4708_v15 = vld [vmem:[#allocation13 + $0x98] ss:$12 sps:$4 sm:$0xff]  }
 0x110   :  { %1709 = vmatpush1.bf16.msra.mxu1 %v5336_v26 }
 0x111   :  { %1710 = vmatprep.subr.bf16.mxu1 %v5339_v27 }
 0x112   :  { %1358 = vmatpush1.bf16.msra.mxu0 %v4615_v19  ;;  %v4657_v19 = vld [vmem:[#allocation10 + $0x3d8] ss:$12 sps:$4 sm:$0xff]  }
 0x113   :  { %1359 = vmatprep.subr.bf16.mxu0 %v4620_v20  ;;  %v4665_v20 = vld [vmem:[#allocation10 + $0x3f4] ss:$12 sps:$4 sm:$0xff]  }
 0x114   :  { %1711 = vmatpush1.bf16.msra.mxu1 %v5342_v30 }
 0x115   :  { %1712 = vmatprep.subr.bf16.mxu1 %v5345_v31 }
 0x116   :  { %1360 = vmatpush1.bf16.msra.mxu0 %v4618_v23  ;;  %v4709_v23 = vld [vmem:[#allocation13 + $0xb0] ss:$12 sps:$4 sm:$0xff]  }
 0x117   :  { %1361 = vmatprep.subr.bf16.mxu0 %v4623_v25  ;;  %v4663_v25 = vld [vmem:[#allocation10 + $0x3f0] ss:$12 sps:$4 sm:$0xff]  }
 0x118   :  { %1713 = vmatpush1.bf16.msra.mxu1 %v5348_v34 }
 0x119   :  { %1714 = vmatprep.subr.bf16.mxu1 %v5351_v36 }
 0x11a   :  { %1362 = vmatpush1.bf16.msra.mxu0 %v4621_v28  ;;  %v4671_v28 = vld [vmem:[#allocation10 + $0x40c] ss:$12 sps:$4 sm:$0xff]  }
 0x11b   :  { %1363 = vmatprep.subr.bf16.mxu0 %v4626_v29  ;;  %v4669_v29 = vld [vmem:[#allocation10 + $0x408] ss:$12 sps:$4 sm:$0xff]  }
 0x11c   :  { %1715 = vmatpush1.bf16.msra.mxu1 %v5354_v39 }
 0x11d   :  { %1716 = vmatprep.subr.bf16.mxu1 %v5357_v40 }
 0x11e   :  { %1364 = vmatpush1.bf16.msra.mxu0 %v4624_v32  ;;  %v4677_v32 = vld [vmem:[#allocation10 + $0x424] ss:$12 sps:$4 sm:$0xff]  }
 0x11f   :  { %1365 = vmatprep.subr.bf16.mxu0 %v4629_v33  ;;  %v4675_v33 = vld [vmem:[#allocation10 + $0x420] ss:$12 sps:$4 sm:$0xff]  }
 0x120   :  { %1717 = vmatpush1.bf16.msra.mxu1 %v5360_v45 }
 0x121   :  { %1718 = vmatprep.subr.bf16.mxu1 %v5364_v46 }
 0x122   :  { %1366 = vmatpush1.bf16.msra.mxu0 %v4627_v37  ;;  %v4683_v37 = vld [vmem:[#allocation10 + $0x43c] ss:$12 sps:$4 sm:$0xff]  }
 0x123   :  { %1376 = vmatprep.subr.bf16.mxu0 %v4632_v38  ;;  %v4681_v38 = vld [vmem:[#allocation10 + $0x438] ss:$12 sps:$4 sm:$0xff]  }
 0x124   :  { %1719 = vmatpush1.bf16.msra.mxu1 %v5367_v48 }
 0x125   :  { %1368 = vmatmul.mubr.bf16.vlgmr.msra.gmra.mrb[0].mxu0 %v5303_v54  ;;  %v4639_v54 = vld [vmem:[#allocation10 + $0x348] ss:$12 sps:$4 sm:$0xff]   ;;  %4254 = vmatprep.subr.bf16.mxu1 %v5035_v55 }
 0x126   :  { %1377 = vmatpush1.bf16.msra.mxu0 %v4630_v41  ;;  %1408 = vmatprep.mubr.bf16.mxu0 %v5317_v56  ;;  %v4703_v56 = vld [vmem:[#allocation13 + $0x20] ss:$12 sps:$4 sm:$0xff]  }
 0x127   :  { %1378 = vmatprep.subr.bf16.mxu0 %v4635_v42  ;;  %1737 = vmatmul.mubr.bf16.vlgmr.msra.gmra.mrb[12].mxu1 %v5034_v16  ;;  %v4689_v41 = vld [vmem:[#allocation10 + $0x454] ss:$12 sps:$4 sm:$0xff]   ;;  %v4687_v42 = vld [vmem:[#allocation10 + $0x450] ss:$12 sps:$4 sm:$0xff]  }
 0x128   :  { %4255 = vmatpush3.bf16.msra.mxu1 %v4702_v51  ;;  %4270 = vmatprep.mubr.msk.bf16.mxu1 %vm5036_vm0, %v5035_v55 }
 0x129   :  { %4256 = vmatprep.subr.bf16.mxu1 %v5035_v55 }
 0x12a   :  { %1379 = vmatpush1.bf16.msra.mxu0 %v4633_v44  ;;  %v4695_v44 = vld [vmem:[#allocation10 + $0x46c] ss:$12 sps:$4 sm:$0xff]  }
 0x12b   :  { %1380 = vmatprep.subr.bf16.mxu0 %v4638_v47  ;;  %v4693_v47 = vld [vmem:[#allocation10 + $0x468] ss:$12 sps:$4 sm:$0xff]  }
 0x12c   :  { %4257 = vmatpush3.bf16.msra.mxu1 %v4703_v56  ;;  %v476_v56 = vld [vmem:[#allocation15] sm:$0x7] }
 0x12d   :  { %4258 = vmatprep.subr.bf16.mxu1 %v5035_v55 }
 0x12e   :  { %1381 = vmatpush1.bf16.msra.mxu0 %v4636_v49 }
 0x12f   :  { %1382 = vmatprep.subr.bf16.mxu0 %v4641_v50 }
 0x130   :  { %4259 = vmatpush3.bf16.msra.mxu1 %v4704_v59 }
 0x131   :  { %4260 = vmatprep.subr.bf16.mxu1 %v5035_v55 }
 0x132   :  { %1383 = vmatpush1.bf16.msra.mxu0 %v4639_v54 }
 0x133   :  { %1384 = vmatprep.subr.bf16.mxu0 %v4644_v52 }
 0x134   :  { %4261 = vmatpush3.bf16.msra.mxu1 %v4705_v62 }
 0x135   :  { %4262 = vmatprep.subr.bf16.mxu1 %v5035_v55 }
 0x136   :  { %1385 = vmatpush1.bf16.msra.mxu0 %v4642_v57 }
 0x137   :  { %1386 = vmatprep.subr.bf16.mxu0 %v4647_v58 }
 0x138   :  { %4263 = vmatpush3.bf16.msra.mxu1 %v4706_v9  ;;  %v4710_v9 = vld [vmem:[#allocation13 + $0x8] ss:$12 sps:$4 sm:$0xff]  }
 0x139   :  { %4264 = vmatprep.subr.bf16.mxu1 %v5035_v55 }
 0x13a   :  { %1387 = vmatpush1.bf16.msra.mxu0 %v4645_v60 }
 0x13b   :  { %1388 = vmatprep.subr.bf16.mxu0 %v4650_v61 }
 0x13c   :  { %4265 = vmatpush3.bf16.msra.mxu1 %v4707_v12 }
 0x13d   :  { %4266 = vmatprep.subr.bf16.mxu1 %v5035_v55 }
 0x13e   :  { %1389 = vmatpush1.bf16.msra.mxu0 %v4648_v63 }
 0x13f   :  { %1390 = vmatprep.subr.bf16.mxu0 %v4653_v8 }
 0x140   :  { %4267 = vmatpush3.bf16.msra.mxu1 %v4708_v15 }
 0x141   :  { %4268 = vmatprep.subr.bf16.mxu1 %v5035_v55 }
 0x142   :  { %1391 = vmatpush1.bf16.msra.mxu0 %v4651_v10  ;;  %v4711_v10 = vld [vmem:[#allocation13 + $0x20] ss:$12 sps:$4 sm:$0xff]  }
 0x143   :  { %1392 = vmatprep.subr.bf16.mxu0 %v4656_v11 }
 0x144   :  { %4269 = vmatpush3.bf16.msra.mxu1 %v4709_v23  ;;  %v4713_v23 = vld [vmem:[#allocation13 + $0x50] ss:$12 sps:$4 sm:$0xff]  }
 0x145   :  { %1976 = vmatprep.subr.bf16.mxu1 %v5324_v18 }
 0x146   :  { %1393 = vmatpush1.bf16.msra.mxu0 %v4654_v13 }
 0x147   :  { %1394 = vmatprep.subr.bf16.mxu0 %v4659_v14  ;;  %4271 = vmatmul.mubr.bf16.vlgmr.msra.gmra.mrb[16].mxu1 %v5034_v16 }
 0x148   :  { %1977 = vmatpush1.bf16.msra.mxu1 %v5322_v17  ;;  %2008 = vmatprep.mubr.bf16.mxu1 %v5034_v16 }
 0x149   :  { %1978 = vmatprep.subr.bf16.mxu1 %v5327_v21 }
 0x14a   :  { %1395 = vmatpush1.bf16.msra.mxu0 %v4657_v19  ;;  %v4712_v19 = vld [vmem:[#allocation13 + $0x38] ss:$12 sps:$4 sm:$0xff]  }
 0x14b   :  { %1396 = vmatprep.subr.bf16.mxu0 %v4665_v20 }
 0x14c   :  { %1979 = vmatpush1.bf16.msra.mxu1 %v5330_v22 }
 0x14d   :  { %1980 = vmatprep.subr.bf16.mxu1 %v5333_v24 }
 0x14e   :  { %1397 = vmatpush1.bf16.msra.mxu0 %v4663_v25  ;;  %v4714_v25 = vld [vmem:[#allocation13 + $0x68] ss:$12 sps:$4 sm:$0xff]  }
 0x14f   :  { %1398 = vmatprep.subr.bf16.mxu0 %v4671_v28  ;;  %v4715_v28 = vld [vmem:[#allocation13 + $0x80] ss:$12 sps:$4 sm:$0xff]  }
 0x150   :  { %1981 = vmatpush1.bf16.msra.mxu1 %v5336_v26 }
 0x151   :  { %1982 = vmatprep.subr.bf16.mxu1 %v5339_v27 }
 0x152   :  { %1399 = vmatpush1.bf16.msra.mxu0 %v4669_v29  ;;  %v4716_v29 = vld [vmem:[#allocation13 + $0x98] ss:$12 sps:$4 sm:$0xff]  }
 0x153   :  { %1400 = vmatprep.subr.bf16.mxu0 %v4677_v32  ;;  %v4717_v32 = vld [vmem:[#allocation13 + $0xb0] ss:$12 sps:$4 sm:$0xff]  }
 0x154   :  { %1983 = vmatpush1.bf16.msra.mxu1 %v5342_v30 }
 0x155   :  { %1984 = vmatprep.subr.bf16.mxu1 %v5345_v31 }
 0x156   :  { %1401 = vmatpush1.bf16.msra.mxu0 %v4675_v33 }
 0x157   :  { %1402 = vmatprep.subr.bf16.mxu0 %v4683_v37 }
 0x158   :  { %1985 = vmatpush1.bf16.msra.mxu1 %v5348_v34 }
 0x159   :  { %1986 = vmatprep.subr.bf16.mxu1 %v5351_v36 }
 0x15a   :  { %1403 = vmatpush1.bf16.msra.mxu0 %v4681_v38 }
 0x15b   :  { %1404 = vmatprep.subr.bf16.mxu0 %v4689_v41 }
 0x15c   :  { %1987 = vmatpush1.bf16.msra.mxu1 %v5354_v39 }
 0x15d   :  { %1988 = vmatprep.subr.bf16.mxu1 %v5357_v40 }
 0x15e   :  { %1405 = vmatpush1.bf16.msra.mxu0 %v4687_v42 }
 0x15f   :  { %1406 = vmatprep.subr.bf16.mxu0 %v4695_v44 }
 0x160   :  { %1989 = vmatpush1.bf16.msra.mxu1 %v5360_v45 }
 0x161   :  { %1990 = vmatprep.subr.bf16.mxu1 %v5364_v46 }
 0x162   :  { %1407 = vmatpush1.bf16.msra.mxu0 %v4693_v47 }
 0x163   :  { %4274 = vmatprep.subr.bf16.mxu0 %v5035_v55 }
 0x164   :  { %1991 = vmatpush1.bf16.msra.mxu1 %v5367_v48 }
 0x165   :  { %1409 = vmatmul.mubr.bf16.vlgmr.msra.gmra.mrb[0].mxu0 %v5313_v53  ;;  %2248 = vmatprep.subr.bf16.mxu1 %v5324_v18  ;;  %v488_v53 = vsub.s32 2, %v5289_v35 }
 0x166   :  { %4290 = vmatprep.mubr.msk.bf16.mxu0 %vm5036_vm0, %v5035_v55  ;;  %4275 = vmatpush3.bf16.msra.mxu0 %v4710_v9 }
 0x167   :  { %v489_v57 = vrot.slane %v476_v56, %v488_v53  ;;  %4276 = vmatprep.subr.bf16.mxu0 %v5035_v55 }
 0x16a   :  { %4277 = vmatpush3.bf16.msra.mxu0 %v4711_v10 }
 0x16b   :  { %4278 = vmatprep.subr.bf16.mxu0 %v5035_v55 }
 0x16e   :  { %4279 = vmatpush3.bf16.msra.mxu0 %v4712_v19 }
 0x16f   :  { %4280 = vmatprep.subr.bf16.mxu0 %v5035_v55 }
 0x172   :  { %4281 = vmatpush3.bf16.msra.mxu0 %v4713_v23 }
 0x173   :  { %4282 = vmatprep.subr.bf16.mxu0 %v5035_v55 }
 0x176   :  { %4283 = vmatpush3.bf16.msra.mxu0 %v4714_v25 }
 0x177   :  { %4284 = vmatprep.subr.bf16.mxu0 %v5035_v55 }
 0x17a   :  { %4285 = vmatpush3.bf16.msra.mxu0 %v4715_v28 }
 0x17b   :  { %4286 = vmatprep.subr.bf16.mxu0 %v5035_v55 }
 0x17e   :  { %4287 = vmatpush3.bf16.msra.mxu0 %v4716_v29 }
 0x17f   :  { %4288 = vmatprep.subr.bf16.mxu0 %v5035_v55 }
 0x182   :  { %4289 = vmatpush3.bf16.msra.mxu0 %v4717_v32 }
 0x183   :  { %4294 = vmatprep.subr.bf16.mxu0 %v5035_v55 }
 0x19a   :  { %v4052_v49 = vpop.f32.mrb[0].mxu1 }
 0x19b   :  { %v4053_v50 = vpop.f32.mrb[1].mxu1 }
 0x19c   :  { %v4054_v51 = vadd.f32 %v4053_v50, %v4052_v49  ;;  %v4055_v54 = vpop.f32.mrb[2].mxu1  ;;  %v480_v50 = vsub.s32 0, %v5289_v35 }
 0x19d   :  { %v4056_v52 = vpop.f32.mrb[3].mxu1 }
 0x19e   :  { %v1452_v58 = vadd.f32 %v4054_v51, %v489_v57  ;;  %v484_v51 = vsub.s32 1, %v5289_v35  ;;  %v481_v54 = vrot.slane %v476_v56, %v480_v50 }
 0x1a0   :  { %v485_v52 = vrot.slane %v476_v56, %v484_v51  ;;  %v1802_v56 = vld [vmem:[#allocation16] sm:$0x1] }
 0x1ba   :  { %v4074_v59 = vpop.f32.mrb[4].mxu1 }
 0x1bb   :  { %v4075_v60 = vpop.f32.mrb[5].mxu1 }
 0x1bc   :  { %v4076_v61 = vadd.f32 %v4075_v60, %v4074_v59  ;;  %v4077_v62 = vpop.f32.mrb[6].mxu1 }
 0x1bd   :  { %v4078_v63 = vpop.f32.mrb[7].mxu1 }
 0x1be   :  { %v1492_v8 = vadd.f32 %v4076_v61, %v1452_v58 }
 0x1da   :  { %v4096_v11 = vpop.f32.mrb[8].mxu1 }
 0x1db   :  { %v4097_v12 = vpop.f32.mrb[9].mxu1 }
 0x1dc   :  { %v4098_v13 = vadd.f32 %v4097_v12, %v4096_v11  ;;  %v4099_v14 = vpop.f32.mrb[10].mxu1 }
 0x1dd   :  { %v4100_v15 = vpop.f32.mrb[11].mxu1 }
 0x1de   :  { %v1532_v20 = vadd.f32 %v4098_v13, %v1492_v8 }
 0x1e0   :  { %1542 = vst [vmem:[#allocation7 + $0x8] sm:$0xf] %v1532_v20 }
 0x1fa   :  { %v1738_v33 = vpop.f32.mrb[12].mxu1 }
 0x1fb   :  { %v1740_v37 = vpop.f32.mrb[13].mxu1 }
 0x1fc   :  { %v1742_v38 = vpop.f32.mrb[14].mxu1 }
 0x1fd   :  { %v1743_v41 = vpop.f32.mrb[15].mxu1 }
 0x21a   :  { %v1779_v42 = vpop.f32.mrb[16].mxu1 }
 0x21b   :  { %v4272_v44 = vpop.f32.mrb[17].mxu1  ;;  %v1803_v19 = vadd.f32 %v1802_v56, %v1779_v42  ;;  %v4718_v42 = vld [vmem:[#allocation13 + $0x8] ss:$12 sps:$4 sm:$0xff]  }
 0x21c   :  { %v1782_v47 = vpop.f32.mrb[18].mxu1 }
 0x21d   :  { %v4273_v49 = vpop.f32.mrb[19].mxu1 }
 0x21e   :  { %v4719_v49 = vld [vmem:[#allocation13 + $0x20] ss:$12 sps:$4 sm:$0xff]  }
 0x238   :  { %v1410_v57 = vpop.f32.mrb[0].mxu0 }
 0x239   :  { %v4446_v58 = vadd.f32 %v1410_v57, %v481_v54  ;;  %v1412_v59 = vpop.f32.mrb[1].mxu0  ;;  %v4720_v54 = vld [vmem:[#allocation13 + $0x38] ss:$12 sps:$4 sm:$0xff]   ;;  %v4722_v57 = vld [vmem:[#allocation13 + $0x68] ss:$12 sps:$4 sm:$0xff]  }
 0x23a   :  { %v4447_v60 = vadd.f32 %v1412_v59, %v485_v52  ;;  %v1414_v61 = vpop.f32.mrb[2].mxu0  ;;  %v4721_v52 = vld [vmem:[#allocation13 + $0x50] ss:$12 sps:$4 sm:$0xff]  }
 0x23b   :  { %v1415_v62 = vpop.f32.mrb[3].mxu0  ;;  %v4725_v59 = vld [vmem:[#allocation13 + $0xb0] ss:$12 sps:$4 sm:$0xff]  }
 0x23c   :  { %v1539_v63 = vcombine.low %v4446_v58, %v4447_v60  ;;  %v4723_v58 = vld [vmem:[#allocation13 + $0x80] ss:$12 sps:$4 sm:$0xff]  }
 0x23e   :  { %1541 = vst [vmem:[#allocation7] sm:$0xff] %v1539_v63 }
 0x245   :  { %v1543_v8 = vld [vmem:[#allocation7] ss:$4 sm:$0x7]  ;;  %v1814_v60 = vld [vmem:[#allocation7 + $0x1] ss:$4 sm:$0x7] }
 0x246   :  { %v1785_v9 = vadd.f32 %v1738_v33, %v1543_v8  ;;  %v1793_v11 = vrot.slane %v1543_v8, 1  ;;  %v1805_v25 = vrot.slane %v1543_v8, 2 }
 0x248   :  { %v3940_v10 = vmul.f32 -1.442695, %v1785_v9  ;;  %v1795_v12 = vadd.f32 %v1793_v11, %v1740_v37 }
 0x24a   :  { %4734 = vpow2.f32 %v3940_v10  ;;  %v3941_v13 = vmul.f32 -1.442695, %v1795_v12 }
 0x24c   :  { %4736 = vpow2.f32 %v3941_v13 }
 0x254   :  { %v4735_v14 = vpop.eup %4734 }
 0x255   :  { %v1789_v15 = vadd.f32 1.0, %v4735_v14 }
 0x256   :  { %v4737_v20 = vpop.eup %4736 }
 0x257   :  { %4738 = vrcp.f32 %v1789_v15  ;;  %v1799_v29 = vadd.f32 1.0, %v4737_v20  ;;  %v2065_v15 = vrot.slane %v1814_v60, 1 }
 0x261   :  { %v4739_v23 = vpop.eup %4738 }
 0x262   :  { %v1804_v28 = vmul.f32 %v4739_v23, %v1803_v19 }
 0x264   :  { %v1807_v32 = vadd.f32 %v1805_v25, %v1804_v28  ;;  %v2074_v25 = vld [vmem:[#allocation16] sm:$0x1] }
 0x266   :  { %4740 = vtanh.f32 %v1807_v32 }
 0x267   :  { %4742 = vrcp.f32 %v1799_v29 }
 0x270   :  { %v4741_v33 = vpop.eup %4740 }
 0x271   :  { %v1809_v38 = vsub.f32 0.0, %v4741_v33  ;;  %v4743_v41 = vpop.eup %4742 }
 0x273   :  { %v1810_v44 = vmul.f32 %v4743_v41, %v1809_v38 }
 0x275   :  { %v5423_v37 = vadd.f32 %v4741_v33, %v1810_v44  ;;  %v2077_v33 = vrot.slane %v1814_v60, 2 }
 0x277   :  { %1812 = vst [vmem:[#allocation9] sm:$0x1] %v5423_v37  ;;  %v1815_v47 = vpack.c.bf16 %v5423_v37, %v5423_v37 }
 0x279   :  { %2009 = vmatmul.mubr.bf16.vlgmr.msra.gmra.mrb[20].mxu1 %v1815_v47  ;;  %4291 = vmatmul.mubr.bf16.vlgmr.msra.gmra.mrb[4].mxu0 %v1815_v47 }
 0x27a   :  { %2249 = vmatpush1.bf16.msra.mxu1 %v5322_v17  ;;  %2280 = vmatprep.mubr.bf16.mxu1 %v5034_v16 }
 0x27b   :  { %2250 = vmatprep.subr.bf16.mxu1 %v5327_v21  ;;  %4310 = vmatprep.mubr.msk.bf16.mxu0 %vm5036_vm0, %v5035_v55 }
 0x27c   :  { %4295 = vmatpush3.bf16.msra.mxu0 %v4718_v42 }
 0x27d   :  { %4296 = vmatprep.subr.bf16.mxu0 %v5035_v55 }
 0x27e   :  { %2251 = vmatpush1.bf16.msra.mxu1 %v5330_v22 }
 0x27f   :  { %2252 = vmatprep.subr.bf16.mxu1 %v5333_v24 }
 0x280   :  { %4297 = vmatpush3.bf16.msra.mxu0 %v4719_v49 }
 0x281   :  { %4298 = vmatprep.subr.bf16.mxu0 %v5035_v55 }
 0x282   :  { %2253 = vmatpush1.bf16.msra.mxu1 %v5336_v26 }
 0x283   :  { %2254 = vmatprep.subr.bf16.mxu1 %v5339_v27 }
 0x284   :  { %4299 = vmatpush3.bf16.msra.mxu0 %v4720_v54 }
 0x285   :  { %4300 = vmatprep.subr.bf16.mxu0 %v5035_v55 }
 0x286   :  { %2255 = vmatpush1.bf16.msra.mxu1 %v5342_v30 }
 0x287   :  { %2256 = vmatprep.subr.bf16.mxu1 %v5345_v31 }
 0x288   :  { %4301 = vmatpush3.bf16.msra.mxu0 %v4721_v52 }
 0x289   :  { %4302 = vmatprep.subr.bf16.mxu0 %v5035_v55 }
 0x28a   :  { %2257 = vmatpush1.bf16.msra.mxu1 %v5348_v34 }
 0x28b   :  { %2258 = vmatprep.subr.bf16.mxu1 %v5351_v36 }
 0x28c   :  { %4303 = vmatpush3.bf16.msra.mxu0 %v4722_v57 }
 0x28d   :  { %4304 = vmatprep.subr.bf16.mxu0 %v5035_v55 }
 0x28e   :  { %2259 = vmatpush1.bf16.msra.mxu1 %v5354_v39 }
 0x28f   :  { %2260 = vmatprep.subr.bf16.mxu1 %v5357_v40 }
 0x290   :  { %4305 = vmatpush3.bf16.msra.mxu0 %v4723_v58 }
 0x291   :  { %4306 = vmatprep.subr.bf16.mxu0 %v5035_v55 }
 0x292   :  { %2261 = vmatpush1.bf16.msra.mxu1 %v5360_v45 }
 0x293   :  { %2262 = vmatprep.subr.bf16.mxu1 %v5364_v46 }
 0x296   :  { %2263 = vmatpush1.bf16.msra.mxu1 %v5367_v48 }
 0x297   :  { %2520 = vmatprep.subr.bf16.mxu1 %v5324_v18  ;;  %v4724_v18 = vld [vmem:[#allocation13 + $0x98] ss:$12 sps:$4 sm:$0xff]  }
 0x298   :  { %4307 = vmatpush3.bf16.msra.mxu0 %v4724_v18 }
 0x299   :  { %4308 = vmatprep.subr.bf16.mxu0 %v5035_v55 }
 0x29c   :  { %4309 = vmatpush3.bf16.msra.mxu0 %v4725_v59 }
 0x29d   :  { %4314 = vmatprep.subr.bf16.mxu0 %v5035_v55 }
 0x34c   :  { %v2010_v61 = vpop.f32.mrb[20].mxu1  ;;  %v2051_v62 = vpop.f32.mrb[4].mxu0 }
 0x34d   :  { %v2057_v63 = vadd.f32 %v2010_v61, %v1814_v60  ;;  %v2012_v8 = vpop.f32.mrb[21].mxu1  ;;  %v4292_v9 = vpop.f32.mrb[5].mxu0  ;;  %v2075_v29 = vadd.f32 %v2074_v25, %v2051_v62 }
 0x34e   :  { %v2014_v10 = vpop.f32.mrb[22].mxu1  ;;  %v2054_v11 = vpop.f32.mrb[6].mxu0  ;;  %v2067_v56 = vadd.f32 %v2065_v15, %v2012_v8  ;;  %v2346_v9 = vld [vmem:[#allocation16] sm:$0x1] }
 0x34f   :  { %v3966_v12 = vmul.f32 -1.442695, %v2057_v63  ;;  %v2015_v13 = vpop.f32.mrb[23].mxu1  ;;  %v4293_v14 = vpop.f32.mrb[7].mxu0 }
 0x350   :  { %v3967_v19 = vmul.f32 -1.442695, %v2067_v56 }
 0x351   :  { %4744 = vpow2.f32 %v3966_v12 }
 0x352   :  { %4746 = vpow2.f32 %v3967_v19 }
 0x35b   :  { %v4745_v20 = vpop.eup %4744 }
 0x35c   :  { %v2061_v23 = vadd.f32 1.0, %v4745_v20  ;;  %v4747_v28 = vpop.eup %4746 }
 0x35d   :  { %v2071_v44 = vadd.f32 1.0, %v4747_v28 }
 0x35e   :  { %4748 = vrcp.f32 %v2061_v23 }
 0x368   :  { %v4749_v32 = vpop.eup %4748 }
 0x369   :  { %v2076_v38 = vmul.f32 %v4749_v32, %v2075_v29  ;;  %v2358_v32 = vld [vmem:[#allocation7 + $0x3] ss:$4 sm:$0x7] }
 0x36b   :  { %v2079_v41 = vadd.f32 %v2077_v33, %v2076_v38 }
 0x36d   :  { %4750 = vtanh.f32 %v2079_v41 }
 0x36e   :  { %4752 = vrcp.f32 %v2071_v44 }
 0x377   :  { %v4751_v47 = vpop.eup %4750 }
 0x378   :  { %v2081_v42 = vsub.f32 %v5423_v37, %v4751_v47  ;;  %v4753_v49 = vpop.eup %4752 }
 0x37a   :  { %v2082_v54 = vmul.f32 %v4753_v49, %v2081_v42 }
 0x37c   :  { %v5456_v52 = vadd.f32 %v4751_v47, %v2082_v54 }
 0x37e   :  { %2084 = vst [vmem:[#allocation9 + $0x1] sm:$0x1] %v5456_v52  ;;  %v2087_v57 = vpack.c.bf16 %v5456_v52, %v5456_v52 }
 0x380   :  { %2281 = vmatmul.mubr.bf16.vlgmr.msra.gmra.mrb[24].mxu1 %v2087_v57  ;;  %4311 = vmatmul.mubr.bf16.vlgmr.msra.gmra.mrb[8].mxu0 %v2087_v57 }
 0x381   :  { %2521 = vmatpush1.bf16.msra.mxu1 %v5322_v17  ;;  %2552 = vmatprep.mubr.bf16.mxu1 %v5034_v16  ;;  %v4726_v17 = vld [vmem:[#allocation13 + $0x8] ss:$12 sps:$4 sm:$0xff]  }
 0x382   :  { %2522 = vmatprep.subr.bf16.mxu1 %v5327_v21  ;;  %4330 = vmatprep.mubr.msk.bf16.mxu0 %vm5036_vm0, %v5035_v55  ;;  %v4727_v21 = vld [vmem:[#allocation13 + $0x20] ss:$12 sps:$4 sm:$0xff]  }
 0x383   :  { %4315 = vmatpush3.bf16.msra.mxu0 %v4726_v17 }
 0x384   :  { %4316 = vmatprep.subr.bf16.mxu0 %v5035_v55 }
 0x385   :  { %2523 = vmatpush1.bf16.msra.mxu1 %v5330_v22  ;;  %v4728_v22 = vld [vmem:[#allocation13 + $0x38] ss:$12 sps:$4 sm:$0xff]  }
 0x386   :  { %2524 = vmatprep.subr.bf16.mxu1 %v5333_v24  ;;  %v4729_v24 = vld [vmem:[#allocation13 + $0x50] ss:$12 sps:$4 sm:$0xff]  }
 0x387   :  { %4317 = vmatpush3.bf16.msra.mxu0 %v4727_v21 }
 0x388   :  { %4318 = vmatprep.subr.bf16.mxu0 %v5035_v55 }
 0x389   :  { %2525 = vmatpush1.bf16.msra.mxu1 %v5336_v26  ;;  %v4730_v26 = vld [vmem:[#allocation13 + $0x68] ss:$12 sps:$4 sm:$0xff]  }
 0x38a   :  { %2526 = vmatprep.subr.bf16.mxu1 %v5339_v27  ;;  %v4731_v27 = vld [vmem:[#allocation13 + $0x80] ss:$12 sps:$4 sm:$0xff]  }
 0x38b   :  { %4319 = vmatpush3.bf16.msra.mxu0 %v4728_v22 }
 0x38c   :  { %4320 = vmatprep.subr.bf16.mxu0 %v5035_v55 }
 0x38d   :  { %2527 = vmatpush1.bf16.msra.mxu1 %v5342_v30  ;;  %v4732_v30 = vld [vmem:[#allocation13 + $0x98] ss:$12 sps:$4 sm:$0xff]  }
 0x38e   :  { %2528 = vmatprep.subr.bf16.mxu1 %v5345_v31  ;;  %v4733_v31 = vld [vmem:[#allocation13 + $0xb0] ss:$12 sps:$4 sm:$0xff]  }
 0x38f   :  { %4321 = vmatpush3.bf16.msra.mxu0 %v4729_v24 }
 0x390   :  { %4322 = vmatprep.subr.bf16.mxu0 %v5035_v55 }
 0x391   :  { %2529 = vmatpush1.bf16.msra.mxu1 %v5348_v34  ;;  %v2086_v34 = vld [vmem:[#allocation7 + $0x2] ss:$4 sm:$0x7] }
 0x392   :  { %2530 = vmatprep.subr.bf16.mxu1 %v5351_v36  ;;  %v2337_v60 = vrot.slane %v2086_v34, 1  ;;  %v2349_v13 = vrot.slane %v2086_v34, 2 }
 0x393   :  { %4323 = vmatpush3.bf16.msra.mxu0 %v4730_v26 }
 0x394   :  { %4324 = vmatprep.subr.bf16.mxu0 %v5035_v55 }
 0x395   :  { %2531 = vmatpush1.bf16.msra.mxu1 %v5354_v39 }
 0x396   :  { %2532 = vmatprep.subr.bf16.mxu1 %v5357_v40 }
 0x397   :  { %4325 = vmatpush3.bf16.msra.mxu0 %v4731_v27  ;;  %v2618_v27 = vld [vmem:[#allocation16] sm:$0x1] }
 0x398   :  { %4326 = vmatprep.subr.bf16.mxu0 %v5035_v55 }
 0x399   :  { %2533 = vmatpush1.bf16.msra.mxu1 %v5360_v45 }
 0x39a   :  { %2534 = vmatprep.subr.bf16.mxu1 %v5364_v46 }
 0x39b   :  { %4327 = vmatpush3.bf16.msra.mxu0 %v4732_v30 }
 0x39c   :  { %4328 = vmatprep.subr.bf16.mxu0 %v5035_v55 }
 0x39d   :  { %2535 = vmatpush1.bf16.msra.mxu1 %v5367_v48 }
 0x39f   :  { %4329 = vmatpush3.bf16.msra.mxu0 %v4733_v31 }
 0x453   :  { %v2282_v36 = vpop.f32.mrb[24].mxu1  ;;  %v2323_v39 = vpop.f32.mrb[8].mxu0 }
 0x454   :  { %v2329_v40 = vadd.f32 %v2282_v36, %v2086_v34  ;;  %v2284_v45 = vpop.f32.mrb[25].mxu1  ;;  %v4312_v46 = vpop.f32.mrb[9].mxu0  ;;  %v2347_v11 = vadd.f32 %v2346_v9, %v2323_v39  ;;  %v2621_v36 = vrot.slane %v2358_v32, 2 }
 0x455   :  { %v2286_v48 = vpop.f32.mrb[26].mxu1  ;;  %v2326_v37 = vpop.f32.mrb[10].mxu0  ;;  %v2339_v61 = vadd.f32 %v2337_v60, %v2284_v45 }
 0x456   :  { %v3992_v58 = vmul.f32 -1.442695, %v2329_v40  ;;  %v2287_v18 = vpop.f32.mrb[27].mxu1  ;;  %v4313_v59 = vpop.f32.mrb[11].mxu0 }
 0x457   :  { %v3993_v62 = vmul.f32 -1.442695, %v2339_v61 }
 0x458   :  { %4754 = vpow2.f32 %v3992_v58 }
 0x459   :  { %4756 = vpow2.f32 %v3993_v62 }
 0x462   :  { %v4755_v63 = vpop.eup %4754 }
 0x463   :  { %v2333_v8 = vadd.f32 1.0, %v4755_v63  ;;  %v4757_v10 = vpop.eup %4756 }
 0x464   :  { %v2343_v56 = vadd.f32 1.0, %v4757_v10 }
 0x465   :  { %4758 = vrcp.f32 %v2333_v8 }
 0x46f   :  { %v4759_v12 = vpop.eup %4758 }
 0x470   :  { %v2348_v14 = vmul.f32 %v4759_v12, %v2347_v11 }
 0x472   :  { %v2351_v15 = vadd.f32 %v2349_v13, %v2348_v14 }
 0x474   :  { %4760 = vtanh.f32 %v2351_v15 }
 0x475   :  { %4762 = vrcp.f32 %v2343_v56 }
 0x47e   :  { %v4761_v19 = vpop.eup %4760 }
 0x47f   :  { %v2353_v20 = vsub.f32 %v5456_v52, %v4761_v19  ;;  %v4763_v23 = vpop.eup %4762  ;;  %v2609_v52 = vrot.slane %v2358_v32, 1 }
 0x481   :  { %v2354_v25 = vmul.f32 %v4763_v23, %v2353_v20 }
 0x483   :  { %v2355_v28 = vadd.f32 %v4761_v19, %v2354_v25 }
 0x485   :  { %2356 = vst [vmem:[#allocation9 + $0x2] sm:$0x1] %v2355_v28  ;;  %v2359_v29 = vpack.c.bf16 %v2355_v28, %v2355_v28 }
 0x487   :  { %2553 = vmatmul.mubr.bf16.vlgmr.msra.gmra.mrb[28].mxu1 %v2359_v29  ;;  %4331 = vmatmul.mubr.bf16.vlgmr.msra.gmra.mrb[12].mxu0 %v2359_v29 }
 0x55a   :  { %v2554_v33 = vpop.f32.mrb[28].mxu1  ;;  %v2595_v38 = vpop.f32.mrb[12].mxu0 }
 0x55b   :  { %v2601_v41 = vadd.f32 %v2554_v33, %v2358_v32  ;;  %v2556_v44 = vpop.f32.mrb[29].mxu1  ;;  %v4332_v47 = vpop.f32.mrb[13].mxu0  ;;  %v2619_v31 = vadd.f32 %v2618_v27, %v2595_v38 }
 0x55c   :  { %v2558_v42 = vpop.f32.mrb[30].mxu1  ;;  %v2598_v49 = vpop.f32.mrb[14].mxu0  ;;  %v2611_v21 = vadd.f32 %v2609_v52, %v2556_v44 }
 0x55d   :  { %v4018_v54 = vmul.f32 -1.442695, %v2601_v41  ;;  %v2559_v57 = vpop.f32.mrb[31].mxu1  ;;  %v4333_v17 = vpop.f32.mrb[15].mxu0 }
 0x55e   :  { %v4019_v22 = vmul.f32 -1.442695, %v2611_v21 }
 0x55f   :  { %4764 = vpow2.f32 %v4018_v54 }
 0x560   :  { %4766 = vpow2.f32 %v4019_v22 }
 0x569   :  { %v4765_v24 = vpop.eup %4764 }
 0x56a   :  { %v2605_v26 = vadd.f32 1.0, %v4765_v24  ;;  %v4767_v30 = vpop.eup %4766 }
 0x56b   :  { %v2615_v45 = vadd.f32 1.0, %v4767_v30 }
 0x56c   :  { %4768 = vrcp.f32 %v2605_v26 }
 0x576   :  { %v4769_v34 = vpop.eup %4768 }
 0x577   :  { %v2620_v39 = vmul.f32 %v4769_v34, %v2619_v31 }
 0x579   :  { %v2623_v40 = vadd.f32 %v2621_v36, %v2620_v39 }
 0x57b   :  { %4770 = vtanh.f32 %v2623_v40 }
 0x57c   :  { %4772 = vrcp.f32 %v2615_v45 }
 0x585   :  { %v4771_v46 = vpop.eup %4770 }
 0x586   :  { %v2625_v48 = vsub.f32 %v2355_v28, %v4771_v46  ;;  %v4773_v37 = vpop.eup %4772 }
 0x588   :  { %v2626_v58 = vmul.f32 %v4773_v37, %v2625_v48 }
 0x58a   :  { %v2627_v18 = vadd.f32 %v4771_v46, %v2626_v58 }
 0x58c   :  { %2628 = vst [vmem:[#allocation9 + $0x3] sm:$0x1] %v2627_v18 }
 0x58d   :  { %4999 = dma.done.wait [#allocation6], 18432 }
 0x58e   :  { %5000 = vsyncadd [#allocation6], 4294948864 }
 0x58f   :  { %5001 = dma.done.wait [#allocation6 + $0x1], 3072 }
 0x590   :  { %5002 = vsyncadd [#allocation6 + $0x1], 4294964224 }
 0x591   :  { %5003 = dma.done.wait [#allocation6 + $0x2], 1024 }
 0x592   :  { %5004 = vsyncadd [#allocation6 + $0x2], 4294966272  ;;  %4334 = vmatprep.subr.bf16.mxu1 %v5035_v55 }
 0x593   :  { %5005 = dma.done.wait [#allocation6 + $0x3], 1536 }
 0x594   :  { %5006 = vsyncadd [#allocation6 + $0x3], 4294965760  ;;  %4350 = vmatprep.mubr.msk.bf16.mxu1 %vm5036_vm0, %v5035_v55  ;;  %4335 = vmatpush3.bf16.msra.mxu1 %v5239_v0  ;;  %v2705_v59 = vld [vmem:[#allocation2 + $0x8] sm:$0xff]  ;;  %v2704_v60 = vld [vmem:[#allocation2] sm:$0xff]  ;;  %vm2861_vm1 = vcmask 523264  }
 0x595   :  { %4336 = vmatprep.subr.bf16.mxu1 %v5035_v55  ;;  %2979 = vmatprep.subr.bf16.mxu0 %v2705_v59  ;;  %v2708_v61 = vld [vmem:[#allocation2 + $0x20] sm:$0xff]  ;;  %v2707_v62 = vld [vmem:[#allocation2 + $0x18] sm:$0xff]  ;;  %v2710_v0 = vld [vmem:[#allocation2 + $0x30] sm:$0xff] }
 0x596   :  { %2980 = vmatpush1.bf16.msra.mxu0 %v2704_v60  ;;  %v2711_v63 = vld [vmem:[#allocation2 + $0x38] sm:$0xff]  ;;  %v2717_v8 = vld [vmem:[#allocation2 + $0x68] sm:$0xff]  ;;  %v2720_v9 = vld [vmem:[#allocation2 + $0x80] sm:$0xff] }
 0x597   :  { %2981 = vmatprep.subr.bf16.mxu0 %v2708_v61  ;;  %v2644_v10 = vld [vmem:[#allocation9] sm:$0xf]  ;;  %v2850_v12 = vld [vmem:[#allocation5 + $0x8] sm:$0xff]  ;;  %v2849_v14 = vld [vmem:[#allocation5] sm:$0xff] }
 0x598   :  { %4337 = vmatpush3.bf16.msra.mxu1 %v5244_v1  ;;  %v2714_v1 = vld [vmem:[#allocation2 + $0x50] sm:$0xff]  ;;  %v2723_v11 = vld [vmem:[#allocation2 + $0x98] sm:$0xff]  ;;  %v2645_v13 = vpack.c.bf16 %v2644_v10, %v2644_v10  ;;  %v2853_v56 = vld [vmem:[#allocation5 + $0x20] sm:$0xff] }
 0x599   :  { %4338 = vmatprep.subr.bf16.mxu1 %v5035_v55  ;;  %v2726_v15 = vld [vmem:[#allocation2 + $0xb0] sm:$0xff]  ;;  %v2852_v19 = vld [vmem:[#allocation5 + $0x18] sm:$0xff]  ;;  %v2729_v20 = vld [vmem:[#allocation2 + $0xc8] sm:$0xff] }
 0x59a   :  { %2982 = vmatpush1.bf16.msra.mxu0 %v2707_v62  ;;  %v2856_v23 = vld [vmem:[#allocation5 + $0x38] sm:$0xff]  ;;  %v2855_v25 = vld [vmem:[#allocation5 + $0x30] sm:$0xff]  ;;  %v2732_v28 = vld [vmem:[#allocation2 + $0xe0] sm:$0xff] }
 0x59b   :  { %2983 = vmatprep.subr.bf16.mxu0 %v2711_v63  ;;  %v2731_v29 = vld [vmem:[#allocation2 + $0xd8] sm:$0xff]  ;;  %v2734_v33 = vld [vmem:[#allocation2 + $0xf0] sm:$0xff]  ;;  %v2737_v41 = vld [vmem:[#allocation2 + $0x108] sm:$0xff] }
 0x59c   :  { %4339 = vmatpush3.bf16.msra.mxu1 %v5249_v2  ;;  %v2713_v2 = vld [vmem:[#allocation2 + $0x48] sm:$0xff]  ;;  %v2735_v32 = vld [vmem:[#allocation2 + $0xf8] sm:$0xff]  ;;  %v2738_v38 = vld [vmem:[#allocation2 + $0x110] sm:$0xff] }
 0x59d   :  { %4340 = vmatprep.subr.bf16.mxu1 %v5035_v55  ;;  %v2741_v44 = vld [vmem:[#allocation2 + $0x128] sm:$0xff]  ;;  %v2740_v47 = vld [vmem:[#allocation2 + $0x120] sm:$0xff]  ;;  %v2743_v49 = vld [vmem:[#allocation2 + $0x138] sm:$0xff] }
 0x59e   :  { %2984 = vmatpush1.bf16.msra.mxu0 %v2710_v0  ;;  %v2744_v42 = vld [vmem:[#allocation2 + $0x140] sm:$0xff]  ;;  %v2747_v54 = vld [vmem:[#allocation2 + $0x158] sm:$0xff]  ;;  %v2746_v57 = vld [vmem:[#allocation2 + $0x150] sm:$0xff] }
 0x59f   :  { %2985 = vmatprep.subr.bf16.mxu0 %v2714_v1  ;;  %v2859_v17 = vld [vmem:[#allocation5 + $0x50] sm:$0xff]  ;;  %v5509_v52 = vld [vmem:[%s5783_s0] sm:$0xff]  ;;  %v2858_v21 = vld [vmem:[#allocation5 + $0x48] sm:$0xff] }
 0x5a0   :  { %4341 = vmatpush3.bf16.msra.mxu1 %v5254_v3  ;;  %v2716_v3 = vld [vmem:[#allocation2 + $0x60] sm:$0xff]  ;;  %v2750_v22 = vld [vmem:[#allocation2 + $0x170] sm:$0xff]  ;;  %v5513_v24 = vrot.slane %v5509_v52, %v5292_v43  ;;  %v2749_v26 = vld [vmem:[#allocation2 + $0x168] sm:$0xff] }
 0x5a1   :  { %4342 = vmatprep.subr.bf16.mxu1 %v5035_v55  ;;  %v2801_v30 = vld [vmem:[#allocation2 + $0x308] sm:$0xff]  ;;  %v2800_v31 = vld [vmem:[#allocation2 + $0x300] sm:$0xff]  ;;  %v2803_v36 = vld [vmem:[#allocation2 + $0x318] sm:$0xff] }
 0x5a2   :  { %2986 = vmatpush1.bf16.msra.mxu0 %v2713_v2  ;;  %v5518_v27 = vcombine.high %v5513_v24, %v5513_v24  ;;  %v2804_v34 = vld [vmem:[#allocation2 + $0x320] sm:$0xff]  ;;  %v2807_v39 = vld [vmem:[#allocation2 + $0x338] sm:$0xff]  ;;  %v2806_v40 = vld [vmem:[#allocation2 + $0x330] sm:$0xff] }
 0x5a3   :  { %2987 = vmatprep.subr.bf16.mxu0 %v2717_v8  ;;  %v2810_v45 = vld [vmem:[#allocation2 + $0x350] sm:$0xff]  ;;  %v2809_v46 = vld [vmem:[#allocation2 + $0x348] sm:$0xff]  ;;  %v2812_v37 = vld [vmem:[#allocation2 + $0x360] sm:$0xff] }
 0x5a4   :  { %4343 = vmatpush3.bf16.msra.mxu1 %v5259_v4  ;;  %v2719_v4 = vld [vmem:[#allocation2 + $0x78] sm:$0xff]  ;;  %3011 = vmatprep.mubr.bf16.mxu0 %v5518_v27  ;;  %v2813_v48 = vld [vmem:[#allocation2 + $0x368] sm:$0xff]  ;;  %v2816_v58 = vld [vmem:[#allocation2 + $0x380] sm:$0xff] }
 0x5a5   :  { %4344 = vmatprep.subr.bf16.mxu1 %v5035_v55  ;;  %v2815_v18 = vld [vmem:[#allocation2 + $0x378] sm:$0xff]  ;;  %v2818_v60 = vld [vmem:[#allocation2 + $0x390] sm:$0xff]  ;;  %v2821_v62 = vld [vmem:[#allocation2 + $0x3a8] sm:$0xff] }
 0x5a6   :  { %2988 = vmatpush1.bf16.msra.mxu0 %v2716_v3  ;;  %v2819_v59 = vld [vmem:[#allocation2 + $0x398] sm:$0xff]  ;;  %v2822_v61 = vld [vmem:[#allocation2 + $0x3b0] sm:$0xff]  ;;  %v2825_v63 = vld [vmem:[#allocation2 + $0x3c8] sm:$0xff] }
 0x5a7   :  { %2989 = vmatprep.subr.bf16.mxu0 %v2720_v9  ;;  %v2824_v0 = vld [vmem:[#allocation2 + $0x3c0] sm:$0xff]  ;;  %v2827_v2 = vld [vmem:[#allocation2 + $0x3d8] sm:$0xff]  ;;  %v2830_v3 = vld [vmem:[#allocation2 + $0x3f0] sm:$0xff] }
 0x5a8   :  { %4345 = vmatpush3.bf16.msra.mxu1 %v5264_v5  ;;  %v2722_v5 = vld [vmem:[#allocation2 + $0x90] sm:$0xff]  ;;  %v2828_v1 = vld [vmem:[#allocation2 + $0x3e0] sm:$0xff]  ;;  %v2831_v8 = vld [vmem:[#allocation2 + $0x3f8] sm:$0xff] }
 0x5a9   :  { %4346 = vmatprep.subr.bf16.mxu1 %v5035_v55  ;;  %v2834_v9 = vld [vmem:[#allocation2 + $0x410] sm:$0xff]  ;;  %v2833_v10 = vld [vmem:[#allocation2 + $0x408] sm:$0xff]  ;;  %v5687_v35 = vld [vmem:[#allocation19] sm:$0x1] }
 0x5aa   :  { %2990 = vmatpush1.bf16.msra.mxu0 %v2719_v4  ;;  %v2837_v4 = vld [vmem:[#allocation2 + $0x428] sm:$0xff] }
 0x5ab   :  { %2991 = vmatprep.subr.bf16.mxu0 %v2723_v11  ;;  %v2836_v11 = vld [vmem:[#allocation2 + $0x420] sm:$0xff] }
 0x5ac   :  { %4347 = vmatpush3.bf16.msra.mxu1 %v5269_v6  ;;  %v2725_v6 = vld [vmem:[#allocation2 + $0xa8] sm:$0xff] }
 0x5ad   :  { %4348 = vmatprep.subr.bf16.mxu1 %v5035_v55 }
 0x5ae   :  { %2992 = vmatpush1.bf16.msra.mxu0 %v2722_v5  ;;  %v2843_v5 = vld [vmem:[#allocation2 + $0x458] sm:$0xff] }
 0x5af   :  { %2993 = vmatprep.subr.bf16.mxu0 %v2726_v15  ;;  %v2846_v15 = vld [vmem:[#allocation2 + $0x470] sm:$0xff] }
 0x5b0   :  { %4349 = vmatpush3.bf16.msra.mxu1 %v5274_v7  ;;  %v2728_v7 = vld [vmem:[#allocation2 + $0xc0] sm:$0xff] }
 0x5b1   :  { %2865 = vmatprep.subr.bf16.mxu1 %v2850_v12  ;;  %v2840_v12 = vld [vmem:[#allocation2 + $0x440] sm:$0xff] }
 0x5b2   :  { %2994 = vmatpush1.bf16.msra.mxu0 %v2725_v6  ;;  %v5525_v6 = vld.sshfl [vmem:[%s5783_s0 + $0x8] sm:$0x33 pattern:$0x76325410]  ;;  %s5037_s0 = smov [#allocation22]  }
 0x5b3   :  { %4351 = vmatmul.mubr.bf16.vlgmr.msra.gmra.mrb[32].mxu1 %v2645_v13  ;;  %2995 = vmatprep.subr.bf16.mxu0 %v2729_v20  ;;  %v2839_v13 = vld [vmem:[#allocation2 + $0x438] sm:$0xff]  ;;  %v2826_v20 = vld [vmem:[#allocation2 + $0x3d0] sm:$0xff]  ;;  %s3718_s23 = sshll.u32 %s5037_s0, 4  ;;  %s3719_s23 = int_to_ptr.vmem [resolvable:$true] %s3718_s23 }
 0x5b4   :  { %2866 = vmatpush1.bf16.msra.mxu1 %v2849_v14  ;;  %2897 = vmatprep.mubr.bf16.mxu1 %v5034_v16  ;;  %v2842_v14 = vld [vmem:[#allocation2 + $0x450] sm:$0xff]  ;;  %s4969_s26 = scalar_lea.vmem %s3719_s23, 16  ;;  %s4973_s14 = scalar_lea.vmem %s3719_s23, 32 }
 0x5b5   :  { %2867 = vmatprep.subr.bf16.mxu1 %v2853_v56  ;;  %v2845_v56 = vld [vmem:[#allocation2 + $0x468] sm:$0xff]  ;;  %p4970_p0 = scmp.ne.s32.totalorder %s3719_s23, %s4969_s26  ;;  %p4974_p1 = scmp.lt.s32.totalorder %s3719_s23, %s3719_s23 }
 0x5b6   :  { %2996 = vmatpush1.bf16.msra.mxu0 %v2728_v7  ;;  %v2829_v7 = vld [vmem:[#allocation2 + $0x3e8] sm:$0xff]  ;;  %p4975_p2 = scmp.lt.s32.totalorder %s4973_s14, %s4969_s26 }
 0x5b7   :  { %2997 = vmatprep.subr.bf16.mxu0 %v2732_v28  ;;  %v4020_v28 = vld [vmem:[#allocation21] ss:$0 sm:$0xff] }
 0x5b8   :  { %2868 = vmatpush1.bf16.msra.mxu1 %v2852_v19  ;;  %v2972_v19 = vcombine.high %v5525_v6, %v5525_v6  ;;  %p4976_p3 = por %p4975_p2, %p4974_p1 }
 0x5b9   :  { %2869 = vmatprep.subr.bf16.mxu1 %v2856_v23  ;;  %v2802_v23 = vld [vmem:[#allocation2 + $0x310] sm:$0xff] }
 0x5ba   :  { %2998 = vmatpush1.bf16.msra.mxu0 %v2731_v29  ;;  %p4977_p4 = pnand %p4976_p3, %p4970_p0 }
 0x5bb   :  { %2999 = vmatprep.subr.bf16.mxu0 %v2735_v32  ;;  %v2832_v32 = vld [vmem:[#allocation2 + $0x400] sm:$0xff] }
 0x5bc   :  { %2870 = vmatpush1.bf16.msra.mxu1 %v2855_v25  ;;  %v2805_v25 = vld [vmem:[#allocation2 + $0x328] sm:$0xff] }
 0x5bd   :  { %2871 = vmatprep.subr.bf16.mxu1 %v2859_v17  ;;  %v2851_v17 = vld [vmem:[#allocation5 + $0x10] sm:$0xff] }
 0x5be   :  { %3000 = vmatpush1.bf16.msra.mxu0 %v2734_v33  ;;  %v2808_v33 = vld [vmem:[#allocation2 + $0x340] sm:$0xff] }
 0x5bf   :  { %3001 = vmatprep.subr.bf16.mxu0 %v2738_v38 }
 0x5c0   :  { %2872 = vmatpush1.bf16.msra.mxu1 %v2858_v21  ;;  %v2838_v21 = vld [vmem:[#allocation2 + $0x430] sm:$0xff] }
 0x5c1   :  { %4354 = vmatprep.subr.bf16.mxu1 %v5035_v55 }
 0x5c2   :  { %3002 = vmatpush1.bf16.msra.mxu0 %v2737_v41 }
 0x5c3   :  { %3003 = vmatprep.subr.bf16.mxu0 %v2741_v44 }
 0x5c6   :  { %3004 = vmatpush1.bf16.msra.mxu0 %v2740_v47 }
 0x5c7   :  { %3005 = vmatprep.subr.bf16.mxu0 %v2744_v42 }
 0x5ca   :  { %3006 = vmatpush1.bf16.msra.mxu0 %v2743_v49  ;;  %v2835_v49 = vld [vmem:[#allocation2 + $0x418] sm:$0xff] }
 0x5cb   :  { %3007 = vmatprep.subr.bf16.mxu0 %v2747_v54  ;;  %v2811_v54 = vld [vmem:[#allocation2 + $0x358] sm:$0xff] }
 0x5ce   :  { %3008 = vmatpush1.bf16.msra.mxu0 %v2746_v57 }
 0x5cf   :  { %3009 = vmatprep.subr.bf16.mxu0 %v2750_v22  ;;  %v2814_v22 = vld [vmem:[#allocation2 + $0x370] sm:$0xff] }
 0x5d2   :  { %3010 = vmatpush1.bf16.msra.mxu0 %v2749_v26  ;;  %v2854_v26 = vld [vmem:[#allocation5 + $0x28] sm:$0xff] }
 0x5d3   :  { %3061 = vmatprep.subr.bf16.mxu0 %v2801_v30  ;;  %v2948_v30 = vcombine.high %v5509_v52, %v5509_v52 }
 0x5d5   :  { %3012 = vmatmul.mubr.bf16.vlgmr.msra.gmra.mrb[16].mxu0 %v5513_v24 }
 0x5d6   :  { %3062 = vmatpush1.bf16.msra.mxu0 %v2800_v31  ;;  %3093 = vmatprep.mubr.bf16.mxu0 %v2972_v19  ;;  %v2841_v31 = vld [vmem:[#allocation2 + $0x448] sm:$0xff] }
 0x5d7   :  { %3063 = vmatprep.subr.bf16.mxu0 %v2804_v34  ;;  %v2817_v34 = vld [vmem:[#allocation2 + $0x388] sm:$0xff] }
 0x5da   :  { %3064 = vmatpush1.bf16.msra.mxu0 %v2803_v36  ;;  %v2857_v36 = vld [vmem:[#allocation5 + $0x40] sm:$0xff] }
 0x5db   :  { %3065 = vmatprep.subr.bf16.mxu0 %v2807_v39  ;;  %v5538_v39 = vrot.slane %v2948_v30, %v5292_v43  ;;  %v2756_v43 = vld [vmem:[#allocation2 + $0x1a0] sm:$0xff] }
 0x5dd   :  { %v5543_v52 = vcombine.high %v5538_v39, %v5538_v39 }
 0x5de   :  { %3066 = vmatpush1.bf16.msra.mxu0 %v2806_v40  ;;  %v2844_v40 = vld [vmem:[#allocation2 + $0x460] sm:$0xff] }
 0x5df   :  { %3067 = vmatprep.subr.bf16.mxu0 %v2810_v45  ;;  %v2820_v45 = vld [vmem:[#allocation2 + $0x3a0] sm:$0xff] }
 0x5e2   :  { %3068 = vmatpush1.bf16.msra.mxu0 %v2809_v46  ;;  %v2860_v46 = vld [vmem:[#allocation5 + $0x58] sm:$0xff] }
 0x5e3   :  { %3069 = vmatprep.subr.bf16.mxu0 %v2813_v48  ;;  %v2753_v48 = vld [vmem:[#allocation2 + $0x188] sm:$0xff] }
 0x5e6   :  { %3070 = vmatpush1.bf16.msra.mxu0 %v2812_v37  ;;  %v2847_v37 = vld [vmem:[#allocation2 + $0x478] sm:$0xff] }
 0x5e7   :  { %3071 = vmatprep.subr.bf16.mxu0 %v2816_v58  ;;  %v2823_v58 = vld [vmem:[#allocation2 + $0x3b8] sm:$0xff] }
 0x5ea   :  { %3072 = vmatpush1.bf16.msra.mxu0 %v2815_v18  ;;  %v2752_v18 = vld [vmem:[#allocation2 + $0x180] sm:$0xff] }
 0x5eb   :  { %3073 = vmatprep.subr.bf16.mxu0 %v2819_v59  ;;  %v2755_v59 = vld [vmem:[#allocation2 + $0x198] sm:$0xff] }
 0x5ee   :  { %3074 = vmatpush1.bf16.msra.mxu0 %v2818_v60  ;;  %v2759_v60 = vld [vmem:[#allocation2 + $0x1b8] sm:$0xff] }
 0x5ef   :  { %3075 = vmatprep.subr.bf16.mxu0 %v2822_v61  ;;  %v2758_v61 = vld [vmem:[#allocation2 + $0x1b0] sm:$0xff] }
 0x5f2   :  { %3076 = vmatpush1.bf16.msra.mxu0 %v2821_v62  ;;  %v2762_v62 = vld [vmem:[#allocation2 + $0x1d0] sm:$0xff] }
 0x5f3   :  { %3077 = vmatprep.subr.bf16.mxu0 %v2825_v63  ;;  %v2761_v63 = vld [vmem:[#allocation2 + $0x1c8] sm:$0xff] }
 0x5f6   :  { %3078 = vmatpush1.bf16.msra.mxu0 %v2824_v0  ;;  %v2765_v0 = vld [vmem:[#allocation2 + $0x1e8] sm:$0xff] }
 0x5f7   :  { %3079 = vmatprep.subr.bf16.mxu0 %v2828_v1  ;;  %v2764_v1 = vld [vmem:[#allocation2 + $0x1e0] sm:$0xff] }
 0x5fa   :  { %3080 = vmatpush1.bf16.msra.mxu0 %v2827_v2  ;;  %v2768_v2 = vld [vmem:[#allocation2 + $0x200] sm:$0xff] }
 0x5fb   :  { %3081 = vmatprep.subr.bf16.mxu0 %v2831_v8  ;;  %v2767_v8 = vld [vmem:[#allocation2 + $0x1f8] sm:$0xff] }
 0x5fe   :  { %3082 = vmatpush1.bf16.msra.mxu0 %v2830_v3  ;;  %v2771_v3 = vld [vmem:[#allocation2 + $0x218] sm:$0xff] }
 0x5ff   :  { %3083 = vmatprep.subr.bf16.mxu0 %v2834_v9  ;;  %v2770_v9 = vld [vmem:[#allocation2 + $0x210] sm:$0xff] }
 0x602   :  { %3084 = vmatpush1.bf16.msra.mxu0 %v2833_v10  ;;  %v5551_v10 = vld [vmem:[#allocation3 + $0x10] sm:$0xff] }
 0x603   :  { %3085 = vmatprep.subr.bf16.mxu0 %v2837_v4  ;;  %v2774_v4 = vld [vmem:[#allocation2 + $0x230] sm:$0xff] }
 0x606   :  { %3086 = vmatpush1.bf16.msra.mxu0 %v2836_v11  ;;  %v2773_v11 = vld [vmem:[#allocation2 + $0x228] sm:$0xff] }
 0x607   :  { %3087 = vmatprep.subr.bf16.mxu0 %v2840_v12  ;;  %v5555_v12 = vld [vmem:[#allocation3 + $0x28] sm:$0xff] }
 0x60a   :  { %3088 = vmatpush1.bf16.msra.mxu0 %v2839_v13  ;;  %v2777_v13 = vld [vmem:[#allocation2 + $0x248] sm:$0xff] }
 0x60b   :  { %3089 = vmatprep.subr.bf16.mxu0 %v2843_v5  ;;  %v2776_v5 = vld [vmem:[#allocation2 + $0x240] sm:$0xff] }
 0x60e   :  { %3090 = vmatpush1.bf16.msra.mxu0 %v2842_v14  ;;  %v2780_v14 = vld [vmem:[#allocation2 + $0x260] sm:$0xff] }
 0x60f   :  { %3091 = vmatprep.subr.bf16.mxu0 %v2846_v15  ;;  %v5559_v15 = vld [vmem:[#allocation3 + $0x40] sm:$0xff] }
 0x612   :  { %3092 = vmatpush1.bf16.msra.mxu0 %v2845_v56  ;;  %v5563_v56 = vld [vmem:[#allocation3 + $0x58] sm:$0xff] }
 0x613   :  { %4196 = vmatprep.subr.bf16.mxu0 %v2826_v20  ;;  %v5567_v20 = vld [vmem:[#allocation3 + $0x70] sm:$0xff] }
 0x615   :  { %3094 = vmatmul.mubr.bf16.vlgmr.msra.gmra.mrb[20].mxu0 %v5525_v6 }
 0x616   :  { %3214 = vmatprep.mubr.bf16.mxu0 %v2972_v19  ;;  %4197 = vmatpush3.bf16.msra.mxu0 %v2802_v23  ;;  %v2783_v19 = vld [vmem:[#allocation2 + $0x278] sm:$0xff]  ;;  %v2782_v23 = vld [vmem:[#allocation2 + $0x270] sm:$0xff] }
 0x617   :  { %4198 = vmatprep.subr.bf16.mxu0 %v2829_v7  ;;  %v2786_v7 = vld [vmem:[#allocation2 + $0x290] sm:$0xff] }
 0x61a   :  { %4199 = vmatpush3.bf16.msra.mxu0 %v2805_v25  ;;  %v5571_v25 = vld [vmem:[#allocation3 + $0x88] sm:$0xff] }
 0x61b   :  { %4200 = vmatprep.subr.bf16.mxu0 %v2832_v32  ;;  %v5575_v32 = vld [vmem:[#allocation3 + $0xa0] sm:$0xff] }
 0x61e   :  { %4201 = vmatpush3.bf16.msra.mxu0 %v2808_v33  ;;  %v2788_v33 = vld [vmem:[#allocation2 + $0x2a0] sm:$0xff] }
 0x61f   :  { %4202 = vmatprep.subr.bf16.mxu0 %v2835_v49  ;;  %v2798_v49 = vld [vmem:[#allocation2 + $0x2f0] sm:$0xff] }
 0x622   :  { %4203 = vmatpush3.bf16.msra.mxu0 %v2811_v54  ;;  %v2797_v54 = vld [vmem:[#allocation2 + $0x2e8] sm:$0xff] }
 0x623   :  { %4204 = vmatprep.subr.bf16.mxu0 %v2838_v21  ;;  %v2733_v21 = vld [vmem:[#allocation2 + $0xe8] sm:$0xff] }
 0x626   :  { %4205 = vmatpush3.bf16.msra.mxu0 %v2814_v22  ;;  %v2709_v22 = vld [vmem:[#allocation2 + $0x28] sm:$0xff] }
 0x627   :  { %4206 = vmatprep.subr.bf16.mxu0 %v2841_v31 }
 0x62a   :  { %4207 = vmatpush3.bf16.msra.mxu0 %v2817_v34 }
 0x62b   :  { %4208 = vmatprep.subr.bf16.mxu0 %v2844_v40 }
 0x62e   :  { %4209 = vmatpush3.bf16.msra.mxu0 %v2820_v45  ;;  %v2739_v45 = vld [vmem:[#allocation2 + $0x118] sm:$0xff] }
 0x62f   :  { %4210 = vmatprep.subr.bf16.mxu0 %v2847_v37  ;;  %v2745_v37 = vld [vmem:[#allocation2 + $0x148] sm:$0xff] }
 0x632   :  { %4211 = vmatpush3.bf16.msra.mxu0 %v2823_v58  ;;  %v2721_v58 = vld [vmem:[#allocation2 + $0x88] sm:$0xff] }
 0x633   :  { %4366 = vmatprep.subr.bf16.mxu0 %v5035_v55 }
 0x635   :  { %3215 = vmatmul.mubr.bf16.vlgmr.msra.gmra.mrb[24].mxu0 %v5525_v6  ;;  %v2779_v6 = vld [vmem:[#allocation2 + $0x258] sm:$0xff] }
 0x636   :  { %4382 = vmatprep.mubr.msk.bf16.mxu0 %vm5036_vm0, %v5035_v55  ;;  %4367 = vmatpush3.bf16.msra.mxu0 %v5551_v10 }
 0x637   :  { %4368 = vmatprep.subr.bf16.mxu0 %v5035_v55 }
 0x63a   :  { %4369 = vmatpush3.bf16.msra.mxu0 %v5555_v12 }
 0x63b   :  { %4370 = vmatprep.subr.bf16.mxu0 %v5035_v55 }
 0x63e   :  { %4371 = vmatpush3.bf16.msra.mxu0 %v5559_v15 }
 0x63f   :  { %4372 = vmatprep.subr.bf16.mxu0 %v5035_v55 }
 0x642   :  { %4373 = vmatpush3.bf16.msra.mxu0 %v5563_v56 }
 0x643   :  { %4374 = vmatprep.subr.bf16.mxu0 %v5035_v55 }
 0x646   :  { %4375 = vmatpush3.bf16.msra.mxu0 %v5567_v20 }
 0x647   :  { %4376 = vmatprep.subr.bf16.mxu0 %v5035_v55 }
 0x64a   :  { %4377 = vmatpush3.bf16.msra.mxu0 %v5571_v25 }
 0x64b   :  { %4378 = vmatprep.subr.bf16.mxu0 %v5035_v55 }
 0x64e   :  { %4379 = vmatpush3.bf16.msra.mxu0 %v5575_v32 }
 0x64f   :  { %4380 = vmatprep.subr.bf16.mxu0 %v5035_v55 }
 0x686   :  { %v2695_v29 = vpop.f32.mrb[32].mxu1 }
 0x687   :  { %v2696_v38 = vadd.f32 %v4020_v28, %v2695_v29  ;;  %v4352_v41 = vpop.f32.mrb[33].mxu1  ;;  %v2785_v28 = vld [vmem:[#allocation2 + $0x288] sm:$0xff] }
 0x688   :  { %v2698_v44 = vpop.f32.mrb[34].mxu1  ;;  %v2789_v29 = vld [vmem:[#allocation2 + $0x2a8] sm:$0xff]  ;;  %v5579_v41 = vld [vmem:[#allocation3 + $0xb8] sm:$0xff] }
 0x689   :  { %v2701_v47 = vmax.f32 %v2696_v38, 0.0  ;;  %v4353_v42 = vpop.f32.mrb[35].mxu1  ;;  %v2792_v38 = vld [vmem:[#allocation2 + $0x2c0] sm:$0xff]  ;;  %v2791_v44 = vld [vmem:[#allocation2 + $0x2b8] sm:$0xff]  ;;  %4381 = vmatpush3.bf16.msra.mxu0 %v5579_v41 }
 0x68a   :  { %4386 = vmatprep.subr.bf16.mxu0 %v5035_v55  ;;  %v2794_v42 = vld [vmem:[#allocation2 + $0x2d0] sm:$0xff] }
 0x68b   :  { %v2848_v57 = vpack.c.bf16 %v2701_v47, %v2701_v47  ;;  %v2795_v47 = vld [vmem:[#allocation2 + $0x2d8] sm:$0xff] }
 0x68c   :  { %4383 = vmatmul.mubr.bf16.vlgmr.msra.gmra.mrb[28].mxu0 %v5034_v16 }
 0x68d   :  { %4021 = vmatmul.mubr.msk.bf16.vlgmr.msra.gmra.mrb[36].mxu1 %vm2861_vm1, %v2848_v57  ;;  %4387 = vmatpush3.bf16.msra.mxu0 %v5551_v10 }
 0x68e   :  { %4355 = vmatpush3.bf16.msra.mxu1 %v2851_v17  ;;  %4362 = vmatprep.mubr.msk.bf16.mxu1 %vm5036_vm0, %v5035_v55  ;;  %v2706_v17 = vld [vmem:[#allocation2 + $0x10] sm:$0xff] }
 0x68f   :  { %4356 = vmatprep.subr.bf16.mxu1 %v5035_v55  ;;  %4402 = vmatprep.mubr.msk.bf16.mxu0 %vm5036_vm0, %v5035_v55 }
 0x690   :  { %4388 = vmatprep.subr.bf16.mxu0 %v5035_v55 }
 0x691   :  { %4389 = vmatpush3.bf16.msra.mxu0 %v5555_v12 }
 0x692   :  { %4357 = vmatpush3.bf16.msra.mxu1 %v2854_v26  ;;  %4390 = vmatprep.subr.bf16.mxu0 %v5035_v55  ;;  %v2736_v26 = vld [vmem:[#allocation2 + $0x100] sm:$0xff] }
 0x693   :  { %4358 = vmatprep.subr.bf16.mxu1 %v5035_v55 }
 0x695   :  { %4391 = vmatpush3.bf16.msra.mxu0 %v5559_v15 }
 0x696   :  { %4359 = vmatpush3.bf16.msra.mxu1 %v2857_v36  ;;  %4392 = vmatprep.subr.bf16.mxu0 %v5035_v55  ;;  %v2712_v36 = vld [vmem:[#allocation2 + $0x40] sm:$0xff] }
 0x697   :  { %4360 = vmatprep.subr.bf16.mxu1 %v5035_v55 }
 0x699   :  { %4393 = vmatpush3.bf16.msra.mxu0 %v5563_v56 }
 0x69a   :  { %4361 = vmatpush3.bf16.msra.mxu1 %v2860_v46  ;;  %4394 = vmatprep.subr.bf16.mxu0 %v5035_v55  ;;  %v2742_v46 = vld [vmem:[#allocation2 + $0x130] sm:$0xff] }
 0x69b   :  { %3020 = vmatprep.subr.bf16.mxu1 %v2753_v48  ;;  %v2718_v48 = vld [vmem:[#allocation2 + $0x70] sm:$0xff] }
 0x69d   :  { %4363 = vmatmul.mubr.msk.bf16.vlgmr.msra.gmra.mrb[40].mxu1 %vm2861_vm1, %v2848_v57  ;;  %v2730_v57 = vld [vmem:[#allocation2 + $0xd0] sm:$0xff]  ;;  %4395 = vmatpush3.bf16.msra.mxu0 %v5567_v20 }
 0x69e   :  { %3021 = vmatpush1.bf16.msra.mxu1 %v2752_v18  ;;  %3052 = vmatprep.mubr.bf16.mxu1 %v5543_v52  ;;  %v2748_v18 = vld [vmem:[#allocation2 + $0x160] sm:$0xff] }
 0x69f   :  { %3022 = vmatprep.subr.bf16.mxu1 %v2756_v43  ;;  %4396 = vmatprep.subr.bf16.mxu0 %v5035_v55  ;;  %v2724_v43 = vld [vmem:[#allocation2 + $0xa0] sm:$0xff] }
 0x6a1   :  { %4397 = vmatpush3.bf16.msra.mxu0 %v5571_v25 }
 0x6a2   :  { %3023 = vmatpush1.bf16.msra.mxu1 %v2755_v59  ;;  %4398 = vmatprep.subr.bf16.mxu0 %v5035_v55  ;;  %v2751_v59 = vld [vmem:[#allocation2 + $0x178] sm:$0xff] }
 0x6a3   :  { %3024 = vmatprep.subr.bf16.mxu1 %v2759_v60  ;;  %v2727_v60 = vld [vmem:[#allocation2 + $0xb8] sm:$0xff] }
 0x6a5   :  { %4399 = vmatpush3.bf16.msra.mxu0 %v5575_v32 }
 0x6a6   :  { %3025 = vmatpush1.bf16.msra.mxu1 %v2758_v61  ;;  %4400 = vmatprep.subr.bf16.mxu0 %v5035_v55  ;;  %v2778_v61 = vld [vmem:[#allocation2 + $0x250] sm:$0xff] }
 0x6a7   :  { %3026 = vmatprep.subr.bf16.mxu1 %v2762_v62  ;;  %v2754_v62 = vld [vmem:[#allocation2 + $0x190] sm:$0xff] }
 0x6a8   :  { %v5594_v30 = vpop.f32.mrb[16].mxu0 }
 0x6a9   :  { %v5596_v31 = vpop.f32.mrb[17].mxu0  ;;  %4401 = vmatpush3.bf16.msra.mxu0 %v5579_v41 }
 0x6aa   :  { %3027 = vmatpush1.bf16.msra.mxu1 %v2761_v63  ;;  %v3017_v34 = vpop.f32.mrb[18].mxu0  ;;  %4406 = vmatprep.subr.bf16.mxu0 %v5035_v55  ;;  %v2781_v63 = vld [vmem:[#allocation2 + $0x268] sm:$0xff] }
 0x6ab   :  { %3028 = vmatprep.subr.bf16.mxu1 %v2765_v0  ;;  %v3018_v40 = vpop.f32.mrb[19].mxu0  ;;  %v2757_v0 = vld [vmem:[#allocation2 + $0x1a8] sm:$0xff] }
 0x6ac   :  { %v5657_v34 = vld [vmem:[#allocation3 + $0xa8] sm:$0xff] }
 0x6ae   :  { %3029 = vmatpush1.bf16.msra.mxu1 %v2764_v1  ;;  %v2784_v1 = vld [vmem:[#allocation2 + $0x280] sm:$0xff] }
 0x6af   :  { %3030 = vmatprep.subr.bf16.mxu1 %v2768_v2  ;;  %v2760_v2 = vld [vmem:[#allocation2 + $0x1c0] sm:$0xff] }
 0x6b2   :  { %3031 = vmatpush1.bf16.msra.mxu1 %v2767_v8  ;;  %v2787_v8 = vld [vmem:[#allocation2 + $0x298] sm:$0xff] }
 0x6b3   :  { %3032 = vmatprep.subr.bf16.mxu1 %v2771_v3  ;;  %v2763_v3 = vld [vmem:[#allocation2 + $0x1d8] sm:$0xff] }
 0x6b6   :  { %3033 = vmatpush1.bf16.msra.mxu1 %v2770_v9  ;;  %v2790_v9 = vld [vmem:[#allocation2 + $0x2b0] sm:$0xff] }
 0x6b7   :  { %3034 = vmatprep.subr.bf16.mxu1 %v2774_v4  ;;  %v2766_v4 = vld [vmem:[#allocation2 + $0x1f0] sm:$0xff] }
 0x6ba   :  { %3035 = vmatpush1.bf16.msra.mxu1 %v2773_v11  ;;  %v2793_v11 = vld [vmem:[#allocation2 + $0x2c8] sm:$0xff] }
 0x6bb   :  { %3036 = vmatprep.subr.bf16.mxu1 %v2777_v13  ;;  %v2796_v13 = vld [vmem:[#allocation2 + $0x2e0] sm:$0xff] }
 0x6be   :  { %3037 = vmatpush1.bf16.msra.mxu1 %v2776_v5  ;;  %v2799_v5 = vld [vmem:[#allocation2 + $0x2f8] sm:$0xff] }
 0x6bf   :  { %3038 = vmatprep.subr.bf16.mxu1 %v2780_v14  ;;  %v2775_v14 = vld [vmem:[#allocation2 + $0x238] sm:$0xff] }
 0x6c2   :  { %3039 = vmatpush1.bf16.msra.mxu1 %v2779_v6  ;;  %v5610_v6 = vld [vmem:[#allocation3 + $0x8] sm:$0xff] }
 0x6c3   :  { %3040 = vmatprep.subr.bf16.mxu1 %v2783_v19  ;;  %v5613_v19 = vld [vmem:[#allocation3] sm:$0xff] }
 0x6c6   :  { %3041 = vmatpush1.bf16.msra.mxu1 %v2782_v23  ;;  %v5615_v23 = vld [vmem:[#allocation3 + $0x20] sm:$0xff] }
 0x6c7   :  { %3042 = vmatprep.subr.bf16.mxu1 %v2786_v7  ;;  %v5621_v7 = vld [vmem:[#allocation3 + $0x18] sm:$0xff] }
 0x6ca   :  { %3043 = vmatpush1.bf16.msra.mxu1 %v2785_v28  ;;  %v5623_v28 = vld [vmem:[#allocation3 + $0x38] sm:$0xff] }
 0x6cb   :  { %3044 = vmatprep.subr.bf16.mxu1 %v2789_v29  ;;  %v5627_v29 = vld [vmem:[#allocation3 + $0x30] sm:$0xff] }
 0x6ce   :  { %3045 = vmatpush1.bf16.msra.mxu1 %v2788_v33  ;;  %v5629_v33 = vld [vmem:[#allocation3 + $0x50] sm:$0xff] }
 0x6cf   :  { %3046 = vmatprep.subr.bf16.mxu1 %v2792_v38  ;;  %v5635_v38 = vld [vmem:[#allocation3 + $0x68] sm:$0xff] }
 0x6d2   :  { %3047 = vmatpush1.bf16.msra.mxu1 %v2791_v44  ;;  %v5639_v44 = vld [vmem:[#allocation3 + $0x60] sm:$0xff] }
 0x6d3   :  { %3048 = vmatprep.subr.bf16.mxu1 %v2795_v47  ;;  %v5641_v47 = vld [vmem:[#allocation3 + $0x80] sm:$0xff] }
 0x6d6   :  { %3049 = vmatpush1.bf16.msra.mxu1 %v2794_v42  ;;  %v5645_v42 = vld [vmem:[#allocation3 + $0x78] sm:$0xff] }
 0x6d7   :  { %3050 = vmatprep.subr.bf16.mxu1 %v2798_v49  ;;  %v5647_v49 = vld [vmem:[#allocation3 + $0x98] sm:$0xff] }
 0x6da   :  { %3051 = vmatpush1.bf16.msra.mxu1 %v2797_v54 }
 0x6db   :  { %4152 = vmatprep.subr.bf16.mxu1 %v2730_v57  ;;  %v5651_v57 = vld [vmem:[#allocation3 + $0x90] sm:$0xff] }
 0x6dd   :  { %3053 = vmatmul.mubr.bf16.vlgmr.msra.gmra.mrb[44].mxu1 %v5538_v39 }
 0x6de   :  { %4153 = vmatpush3.bf16.msra.mxu1 %v2706_v17  ;;  %3134 = vmatprep.mubr.bf16.mxu1 %v5518_v27  ;;  %v2715_v27 = vld [vmem:[#allocation2 + $0x58] sm:$0xff] }
 0x6df   :  { %4154 = vmatprep.subr.bf16.mxu1 %v2733_v21  ;;  %v5653_v21 = vld [vmem:[#allocation3 + $0xb0] sm:$0xff] }
 0x6e2   :  { %4155 = vmatpush3.bf16.msra.mxu1 %v2709_v22 }
 0x6e3   :  { %4156 = vmatprep.subr.bf16.mxu1 %v2736_v26 }
 0x6e6   :  { %4157 = vmatpush3.bf16.msra.mxu1 %v2712_v36 }
 0x6e7   :  { %4158 = vmatprep.subr.bf16.mxu1 %v2739_v45 }
 0x6e8   :  { %v3095_v54 = vpop.f32.mrb[20].mxu0 }
 0x6e9   :  { %v3097_v17 = vpop.f32.mrb[21].mxu0 }
 0x6ea   :  { %4159 = vmatpush3.bf16.msra.mxu1 %v2715_v27  ;;  %v3099_v22 = vpop.f32.mrb[22].mxu0 }
 0x6eb   :  { %4160 = vmatprep.subr.bf16.mxu1 %v2742_v46  ;;  %v3100_v26 = vpop.f32.mrb[23].mxu0 }
 0x6ee   :  { %4161 = vmatpush3.bf16.msra.mxu1 %v2718_v48 }
 0x6ef   :  { %4162 = vmatprep.subr.bf16.mxu1 %v2745_v37 }
 0x6f2   :  { %4163 = vmatpush3.bf16.msra.mxu1 %v2721_v58 }
 0x6f3   :  { %4164 = vmatprep.subr.bf16.mxu1 %v2748_v18 }
 0x6f6   :  { %4165 = vmatpush3.bf16.msra.mxu1 %v2724_v43 }
 0x6f7   :  { %4166 = vmatprep.subr.bf16.mxu1 %v2751_v59 }
 0x6fa   :  { %4167 = vmatpush3.bf16.msra.mxu1 %v2727_v60 }
 0x6fb   :  { %4174 = vmatprep.subr.bf16.mxu1 %v2778_v61 }
 0x6fd   :  { %3135 = vmatmul.mubr.bf16.vlgmr.msra.gmra.mrb[48].mxu1 %v5513_v24  ;;  %v2769_v24 = vld [vmem:[#allocation2 + $0x208] sm:$0xff] }
 0x6fe   :  { %4175 = vmatpush3.bf16.msra.mxu1 %v2754_v62  ;;  %3174 = vmatprep.mubr.bf16.mxu1 %v5543_v52  ;;  %v2772_v52 = vld [vmem:[#allocation2 + $0x220] sm:$0xff] }
 0x6ff   :  { %4176 = vmatprep.subr.bf16.mxu1 %v2781_v63 }
 0x702   :  { %4177 = vmatpush3.bf16.msra.mxu1 %v2757_v0 }
 0x703   :  { %4178 = vmatprep.subr.bf16.mxu1 %v2784_v1 }
 0x706   :  { %4179 = vmatpush3.bf16.msra.mxu1 %v2760_v2 }
 0x707   :  { %4180 = vmatprep.subr.bf16.mxu1 %v2787_v8 }
 0x708   :  { %v4212_v43 = vpop.f32.mrb[24].mxu0 }
 0x709   :  { %v4213_v60 = vpop.f32.mrb[25].mxu0 }
 0x70a   :  { %4181 = vmatpush3.bf16.msra.mxu1 %v2763_v3  ;;  %v4214_v61 = vadd.f32 %v4213_v60, %v4212_v43  ;;  %v4215_v62 = vpop.f32.mrb[26].mxu0  ;;  %v3222_v3 = vld [vmem:[#allocation18] sm:$0x7] }
 0x70b   :  { %4182 = vmatprep.subr.bf16.mxu1 %v2790_v9  ;;  %v4216_v63 = vpop.f32.mrb[27].mxu0 }
 0x70e   :  { %4183 = vmatpush3.bf16.msra.mxu1 %v2766_v4 }
 0x70f   :  { %4184 = vmatprep.subr.bf16.mxu1 %v2793_v11 }
 0x712   :  { %4185 = vmatpush3.bf16.msra.mxu1 %v2769_v24 }
 0x713   :  { %4186 = vmatprep.subr.bf16.mxu1 %v2796_v13  ;;  %v3231_v13 = vrot.slane %v3222_v3, %v484_v51  ;;  %v3235_v51 = vrot.slane %v3222_v3, %v488_v53 }
 0x716   :  { %4187 = vmatpush3.bf16.msra.mxu1 %v2772_v52 }
 0x717   :  { %4188 = vmatprep.subr.bf16.mxu1 %v2799_v5 }
 0x71a   :  { %4189 = vmatpush3.bf16.msra.mxu1 %v2775_v14 }
 0x71b   :  { %3274 = vmatprep.subr.bf16.mxu1 %v5610_v6 }
 0x71d   :  { %3175 = vmatmul.mubr.bf16.vlgmr.msra.gmra.mrb[52].mxu1 %v5538_v39  ;;  %v5633_v39 = vld [vmem:[#allocation3 + $0x48] sm:$0xff] }
 0x71e   :  { %3275 = vmatpush1.bf16.msra.mxu1 %v5613_v19  ;;  %3306 = vmatprep.mubr.bf16.mxu1 %v5034_v16 }
 0x71f   :  { %3276 = vmatprep.subr.bf16.mxu1 %v5615_v23 }
 0x722   :  { %3277 = vmatpush1.bf16.msra.mxu1 %v5621_v7 }
 0x723   :  { %3278 = vmatprep.subr.bf16.mxu1 %v5623_v28 }
 0x726   :  { %3279 = vmatpush1.bf16.msra.mxu1 %v5627_v29 }
 0x727   :  { %3280 = vmatprep.subr.bf16.mxu1 %v5629_v33 }
 0x72a   :  { %3281 = vmatpush1.bf16.msra.mxu1 %v5633_v39 }
 0x72b   :  { %3282 = vmatprep.subr.bf16.mxu1 %v5635_v38 }
 0x72e   :  { %3283 = vmatpush1.bf16.msra.mxu1 %v5639_v44 }
 0x72f   :  { %3284 = vmatprep.subr.bf16.mxu1 %v5641_v47 }
 0x732   :  { %3285 = vmatpush1.bf16.msra.mxu1 %v5645_v42 }
 0x733   :  { %3286 = vmatprep.subr.bf16.mxu1 %v5647_v49 }
 0x736   :  { %3287 = vmatpush1.bf16.msra.mxu1 %v5651_v57 }
 0x737   :  { %3288 = vmatprep.subr.bf16.mxu1 %v5653_v21 }
 0x73a   :  { %3289 = vmatpush1.bf16.msra.mxu1 %v5657_v34 }
 0x73b   :  { %3385 = vmatprep.subr.bf16.mxu1 %v5610_v6 }
 0x73d   :  { %3307 = vmatmul.mubr.bf16.vlgmr.msra.gmra.mrb[56].mxu1 %v5034_v16 }
 0x73e   :  { %3386 = vmatpush1.bf16.msra.mxu1 %v5613_v19  ;;  %3417 = vmatprep.mubr.bf16.mxu1 %v5034_v16 }
 0x73f   :  { %3387 = vmatprep.subr.bf16.mxu1 %v5615_v23 }
 0x742   :  { %3388 = vmatpush1.bf16.msra.mxu1 %v5621_v7 }
 0x743   :  { %3389 = vmatprep.subr.bf16.mxu1 %v5623_v28 }
 0x746   :  { %3390 = vmatpush1.bf16.msra.mxu1 %v5627_v29 }
 0x747   :  { %3391 = vmatprep.subr.bf16.mxu1 %v5629_v33 }
 0x74a   :  { %3392 = vmatpush1.bf16.msra.mxu1 %v5633_v39 }
 0x74b   :  { %3393 = vmatprep.subr.bf16.mxu1 %v5635_v38 }
 0x74e   :  { %3394 = vmatpush1.bf16.msra.mxu1 %v5639_v44 }
 0x74f   :  { %3395 = vmatprep.subr.bf16.mxu1 %v5641_v47 }
 0x752   :  { %3396 = vmatpush1.bf16.msra.mxu1 %v5645_v42 }
 0x753   :  { %3397 = vmatprep.subr.bf16.mxu1 %v5647_v49 }
 0x756   :  { %3398 = vmatpush1.bf16.msra.mxu1 %v5651_v57 }
 0x757   :  { %3399 = vmatprep.subr.bf16.mxu1 %v5653_v21 }
 0x75a   :  { %3400 = vmatpush1.bf16.msra.mxu1 %v5657_v34 }
 0x75b   :  { %3495 = vmatprep.subr.bf16.mxu1 %v5610_v6 }
 0x75f   :  { %v3349_v0 = vpop.f32.mrb[28].mxu0 }
 0x760   :  { %v2899_v36 = vpop.f32.mrb[36].mxu1  ;;  %v4384_v1 = vpop.f32.mrb[29].mxu0  ;;  %v3373_v53 = vadd.f32 %v5687_v35, %v3349_v0 }
 0x761   :  { %v3014_v40 = vadd.f32 %v5594_v30, %v2899_v36  ;;  %v2901_v45 = vpop.f32.mrb[37].mxu1  ;;  %v3352_v2 = vpop.f32.mrb[30].mxu0 }
 0x762   :  { %v3016_v27 = vadd.f32 %v5596_v31, %v2901_v45  ;;  %v2903_v46 = vpop.f32.mrb[38].mxu1  ;;  %v4385_v8 = vpop.f32.mrb[31].mxu0  ;;  %v3227_v31 = vrot.slane %v3222_v3, %v480_v50 }
 0x763   :  { %v2904_v48 = vpop.f32.mrb[39].mxu1 }
 0x770   :  { %v2940_v37 = vpop.f32.mrb[40].mxu1 }
 0x771   :  { %v4364_v58 = vpop.f32.mrb[41].mxu1 }
 0x772   :  { %v2943_v18 = vpop.f32.mrb[42].mxu1 }
 0x773   :  { %v4365_v59 = vpop.f32.mrb[43].mxu1 }
 0x7b0   :  { %v3054_v30 = vpop.f32.mrb[44].mxu1 }
 0x7b1   :  { %v3055_v9 = vadd.f32 %v3054_v30, %v3014_v40  ;;  %v3056_v4 = vpop.f32.mrb[45].mxu1 }
 0x7b2   :  { %v3057_v11 = vadd.f32 %v3056_v4, %v3016_v27  ;;  %v3058_v24 = vpop.f32.mrb[46].mxu1 }
 0x7b3   :  { %v3096_v52 = vadd.f32 %v3095_v54, %v3055_v9  ;;  %v3059_v5 = vpop.f32.mrb[47].mxu1 }
 0x7b4   :  { %v3098_v14 = vadd.f32 %v3097_v17, %v3057_v11 }
 0x7b5   :  { %v3239_v22 = vadd.f32 %v3227_v31, %v3096_v52 }
 0x7b6   :  { %v3240_v26 = vadd.f32 %v3231_v13, %v3098_v14 }
 0x7b8   :  { %v3244_v36 = vcombine.low %v3239_v22, %v3240_v26 }
 0x7ba   :  { %3246 = vst [vmem:[#allocation8] sm:$0xff] %v3244_v36 }
 0x7d0   :  { %v4168_v45 = vpop.f32.mrb[48].mxu1 }
 0x7d1   :  { %v4169_v46 = vpop.f32.mrb[49].mxu1 }
 0x7d2   :  { %v4170_v48 = vadd.f32 %v4169_v46, %v4168_v45  ;;  %v4171_v40 = vpop.f32.mrb[50].mxu1 }
 0x7d3   :  { %v4172_v58 = vpop.f32.mrb[51].mxu1 }
 0x7d4   :  { %v3137_v18 = vadd.f32 %v4170_v48, %v2940_v37 }
 0x7f0   :  { %v4190_v43 = vpop.f32.mrb[52].mxu1 }
 0x7f1   :  { %v4191_v50 = vpop.f32.mrb[53].mxu1 }
 0x7f2   :  { %v4192_v27 = vadd.f32 %v4191_v50, %v4190_v43  ;;  %v4193_v59 = vpop.f32.mrb[54].mxu1 }
 0x7f3   :  { %v4194_v60 = vpop.f32.mrb[55].mxu1 }
 0x7f4   :  { %v3177_v62 = vadd.f32 %v4192_v27, %v3137_v18 }
 0x7f6   :  { %v3217_v54 = vadd.f32 %v4214_v61, %v3177_v62 }
 0x7f8   :  { %v3241_v17 = vadd.f32 %v3235_v51, %v3217_v54 }
 0x7fa   :  { %3247 = vst [vmem:[#allocation8 + $0x8] sm:$0xf] %v3241_v17 }
 0x801   :  { %v3249_v63 = vld [vmem:[#allocation8 + $0x3] ss:$4 sm:$0x7]  ;;  %v3383_v0 = vld [vmem:[#allocation8 + $0x2] ss:$4 sm:$0x7] }
 0x802   :  { %v3363_v37 = vrot.slane %v3249_v63, 1  ;;  %v3375_v52 = vrot.slane %v3249_v63, 2  ;;  %v3474_v17 = vrot.slane %v3383_v0, 1 }
 0x810   :  { %v3308_v1 = vpop.f32.mrb[56].mxu1 }
 0x811   :  { %v3355_v2 = vadd.f32 %v3308_v1, %v3249_v63  ;;  %v3310_v8 = vpop.f32.mrb[57].mxu1 }
 0x812   :  { %v3312_v30 = vpop.f32.mrb[58].mxu1  ;;  %v3365_v31 = vadd.f32 %v3363_v37, %v3310_v8 }
 0x813   :  { %v4024_v9 = vmul.f32 -1.442695, %v3355_v2  ;;  %v3313_v4 = vpop.f32.mrb[59].mxu1 }
 0x814   :  { %v4025_v11 = vmul.f32 -1.442695, %v3365_v31  ;;  %v3485_v4 = vrot.slane %v3383_v0, 2 }
 0x815   :  { %4775 = vpow2.f32 %v4024_v9 }
 0x816   :  { %4777 = vpow2.f32 %v4025_v11 }
 0x81f   :  { %v4776_v24 = vpop.eup %4775 }
 0x820   :  { %v3359_v13 = vadd.f32 1.0, %v4776_v24  ;;  %v4778_v61 = vpop.eup %4777 }
 0x821   :  { %v3369_v14 = vadd.f32 1.0, %v4778_v61 }
 0x822   :  { %4779 = vrcp.f32 %v3359_v13 }
 0x82c   :  { %v4780_v3 = vpop.eup %4779 }
 0x82d   :  { %v3374_v5 = vmul.f32 %v4780_v3, %v3373_v53 }
 0x82f   :  { %v3377_v22 = vadd.f32 %v3375_v52, %v3374_v5 }
 0x831   :  { %4781 = vtanh.f32 %v3377_v22 }
 0x832   :  { %4783 = vrcp.f32 %v3369_v14 }
 0x83b   :  { %v4782_v26 = vpop.eup %4781 }
 0x83c   :  { %v3379_v36 = vsub.f32 0.0, %v4782_v26  ;;  %v4784_v45 = vpop.eup %4783 }
 0x83e   :  { %v3380_v46 = vmul.f32 %v4784_v45, %v3379_v36  ;;  %v3602_v36 = vld [vmem:[#allocation8] ss:$4 sm:$0x7] }
 0x840   :  { %v5690_v48 = vadd.f32 %v4782_v26, %v3380_v46 }
 0x842   :  { %v3384_v40 = vpack.c.bf16 %v5690_v48, %v5690_v48 }
 0x844   :  { %3418 = vmatmul.mubr.bf16.vlgmr.msra.gmra.mrb[60].mxu1 %v3384_v40  ;;  %4403 = vmatmul.mubr.bf16.vlgmr.msra.gmra.mrb[32].mxu0 %v3384_v40 }
 0x845   :  { %3496 = vmatpush1.bf16.msra.mxu1 %v5613_v19  ;;  %4407 = vmatpush3.bf16.msra.mxu0 %v5551_v10 }
 0x846   :  { %3497 = vmatprep.subr.bf16.mxu1 %v5615_v23  ;;  %4408 = vmatprep.subr.bf16.mxu0 %v5035_v55 }
 0x847   :  { %3527 = vmatprep.mubr.bf16.mxu1 %v5034_v16  ;;  %4422 = vmatprep.mubr.msk.bf16.mxu0 %vm5036_vm0, %v5035_v55 }
 0x849   :  { %3498 = vmatpush1.bf16.msra.mxu1 %v5621_v7  ;;  %4409 = vmatpush3.bf16.msra.mxu0 %v5555_v12 }
 0x84a   :  { %3499 = vmatprep.subr.bf16.mxu1 %v5623_v28  ;;  %4410 = vmatprep.subr.bf16.mxu0 %v5035_v55 }
 0x84d   :  { %3500 = vmatpush1.bf16.msra.mxu1 %v5627_v29  ;;  %4411 = vmatpush3.bf16.msra.mxu0 %v5559_v15 }
 0x84e   :  { %3501 = vmatprep.subr.bf16.mxu1 %v5629_v33  ;;  %4412 = vmatprep.subr.bf16.mxu0 %v5035_v55 }
 0x851   :  { %3502 = vmatpush1.bf16.msra.mxu1 %v5633_v39  ;;  %4413 = vmatpush3.bf16.msra.mxu0 %v5563_v56 }
 0x852   :  { %3503 = vmatprep.subr.bf16.mxu1 %v5635_v38  ;;  %4414 = vmatprep.subr.bf16.mxu0 %v5035_v55 }
 0x855   :  { %3504 = vmatpush1.bf16.msra.mxu1 %v5639_v44  ;;  %4415 = vmatpush3.bf16.msra.mxu0 %v5567_v20 }
 0x856   :  { %3505 = vmatprep.subr.bf16.mxu1 %v5641_v47  ;;  %4416 = vmatprep.subr.bf16.mxu0 %v5035_v55 }
 0x859   :  { %3506 = vmatpush1.bf16.msra.mxu1 %v5645_v42  ;;  %4417 = vmatpush3.bf16.msra.mxu0 %v5571_v25 }
 0x85a   :  { %3507 = vmatprep.subr.bf16.mxu1 %v5647_v49  ;;  %4418 = vmatprep.subr.bf16.mxu0 %v5035_v55 }
 0x85d   :  { %3508 = vmatpush1.bf16.msra.mxu1 %v5651_v57  ;;  %4419 = vmatpush3.bf16.msra.mxu0 %v5575_v32 }
 0x85e   :  { %3509 = vmatprep.subr.bf16.mxu1 %v5653_v21  ;;  %4420 = vmatprep.subr.bf16.mxu0 %v5035_v55 }
 0x861   :  { %3510 = vmatpush1.bf16.msra.mxu1 %v5657_v34  ;;  %4421 = vmatpush3.bf16.msra.mxu0 %v5579_v41 }
 0x862   :  { %3604 = vmatprep.subr.bf16.mxu1 %v5610_v6  ;;  %4426 = vmatprep.subr.bf16.mxu0 %v5035_v55 }
 0x917   :  { %v3419_v58 = vpop.f32.mrb[60].mxu1  ;;  %v3460_v18 = vpop.f32.mrb[32].mxu0 }
 0x918   :  { %v3466_v43 = vadd.f32 %v3419_v58, %v3383_v0  ;;  %v3421_v50 = vpop.f32.mrb[61].mxu1  ;;  %v4404_v27 = vpop.f32.mrb[33].mxu0  ;;  %v3483_v30 = vadd.f32 %v3460_v18, %v5687_v35 }
 0x919   :  { %v3423_v59 = vpop.f32.mrb[62].mxu1  ;;  %v3463_v60 = vpop.f32.mrb[34].mxu0  ;;  %v3476_v63 = vadd.f32 %v3474_v17, %v3421_v50 }
 0x91a   :  { %v4026_v62 = vmul.f32 -1.442695, %v3466_v43  ;;  %v3424_v51 = vpop.f32.mrb[63].mxu1  ;;  %v4405_v54 = vpop.f32.mrb[35].mxu0  ;;  %v3693_v59 = vrot.slane %v3602_v36, 1 }
 0x91b   :  { %v4027_v1 = vmul.f32 -1.442695, %v3476_v63 }
 0x91c   :  { %4785 = vpow2.f32 %v4026_v62 }
 0x91d   :  { %4787 = vpow2.f32 %v4027_v1 }
 0x926   :  { %v4786_v2 = vpop.eup %4785 }
 0x927   :  { %v3470_v8 = vadd.f32 1.0, %v4786_v2  ;;  %v4788_v6 = vpop.eup %4787  ;;  %v3704_v2 = vrot.slane %v3602_v36, 2 }
 0x928   :  { %v3480_v11 = vadd.f32 1.0, %v4788_v6 }
 0x929   :  { %4789 = vrcp.f32 %v3470_v8 }
 0x933   :  { %v4790_v9 = vpop.eup %4789 }
 0x934   :  { %v3484_v37 = vmul.f32 %v4790_v9, %v3483_v30 }
 0x936   :  { %v3487_v31 = vadd.f32 %v3485_v4, %v3484_v37 }
 0x938   :  { %4791 = vtanh.f32 %v3487_v31 }
 0x939   :  { %4793 = vrcp.f32 %v3480_v11 }
 0x942   :  { %v4792_v24 = vpop.eup %4791 }
 0x943   :  { %v3489_v13 = vsub.f32 %v5690_v48, %v4792_v24  ;;  %v4794_v53 = vpop.eup %4793 }
 0x945   :  { %v3490_v61 = vmul.f32 %v4794_v53, %v3489_v13 }
 0x947   :  { %v5731_v3 = vadd.f32 %v4792_v24, %v3490_v61 }
 0x949   :  { %v3494_v52 = vpack.c.bf16 %v5731_v3, %v5731_v3 }
 0x94b   :  { %3528 = vmatmul.mubr.bf16.vlgmr.msra.gmra.mrb[64].mxu1 %v3494_v52  ;;  %4423 = vmatmul.mubr.bf16.vlgmr.msra.gmra.mrb[36].mxu0 %v3494_v52 }
 0x94c   :  { %3605 = vmatpush1.bf16.msra.mxu1 %v5613_v19  ;;  %4427 = vmatpush3.bf16.msra.mxu0 %v5551_v10 }
 0x94d   :  { %3606 = vmatprep.subr.bf16.mxu1 %v5615_v23  ;;  %4428 = vmatprep.subr.bf16.mxu0 %v5035_v55 }
 0x94e   :  { %3636 = vmatprep.mubr.bf16.mxu1 %v5034_v16  ;;  %4442 = vmatprep.mubr.msk.bf16.mxu0 %vm5036_vm0, %v5035_v55  ;;  %v3493_v16 = vld [vmem:[#allocation8 + $0x1] ss:$4 sm:$0x7] }
 0x950   :  { %3607 = vmatpush1.bf16.msra.mxu1 %v5621_v7  ;;  %4429 = vmatpush3.bf16.msra.mxu0 %v5555_v12 }
 0x951   :  { %3608 = vmatprep.subr.bf16.mxu1 %v5623_v28  ;;  %4430 = vmatprep.subr.bf16.mxu0 %v5035_v55 }
 0x954   :  { %3609 = vmatpush1.bf16.msra.mxu1 %v5627_v29  ;;  %4431 = vmatpush3.bf16.msra.mxu0 %v5559_v15 }
 0x955   :  { %3610 = vmatprep.subr.bf16.mxu1 %v5629_v33  ;;  %4432 = vmatprep.subr.bf16.mxu0 %v5035_v55 }
 0x958   :  { %3611 = vmatpush1.bf16.msra.mxu1 %v5633_v39  ;;  %4433 = vmatpush3.bf16.msra.mxu0 %v5563_v56 }
 0x959   :  { %3612 = vmatprep.subr.bf16.mxu1 %v5635_v38  ;;  %4434 = vmatprep.subr.bf16.mxu0 %v5035_v55 }
 0x95c   :  { %3613 = vmatpush1.bf16.msra.mxu1 %v5639_v44  ;;  %4435 = vmatpush3.bf16.msra.mxu0 %v5567_v20 }
 0x95d   :  { %3614 = vmatprep.subr.bf16.mxu1 %v5641_v47  ;;  %4436 = vmatprep.subr.bf16.mxu0 %v5035_v55  ;;  %v3595_v47 = vrot.slane %v3493_v16, 2 }
 0x960   :  { %3615 = vmatpush1.bf16.msra.mxu1 %v5645_v42  ;;  %4437 = vmatpush3.bf16.msra.mxu0 %v5571_v25 }
 0x961   :  { %3616 = vmatprep.subr.bf16.mxu1 %v5647_v49  ;;  %4438 = vmatprep.subr.bf16.mxu0 %v5035_v55 }
 0x964   :  { %3617 = vmatpush1.bf16.msra.mxu1 %v5651_v57  ;;  %4439 = vmatpush3.bf16.msra.mxu0 %v5575_v32  ;;  %v3584_v32 = vrot.slane %v3493_v16, 1 }
 0x965   :  { %3618 = vmatprep.subr.bf16.mxu1 %v5653_v21  ;;  %4440 = vmatprep.subr.bf16.mxu0 %v5035_v55 }
 0x968   :  { %3619 = vmatpush1.bf16.msra.mxu1 %v5657_v34  ;;  %4441 = vmatpush3.bf16.msra.mxu0 %v5579_v41 }
 0xa1e   :  { %v3529_v10 = vpop.f32.mrb[64].mxu1  ;;  %v3570_v12 = vpop.f32.mrb[36].mxu0 }
 0xa1f   :  { %v3576_v15 = vadd.f32 %v3529_v10, %v3493_v16  ;;  %v3531_v56 = vpop.f32.mrb[65].mxu1  ;;  %v4424_v20 = vpop.f32.mrb[37].mxu0  ;;  %v3593_v38 = vadd.f32 %v3570_v12, %v5687_v35 }
 0xa20   :  { %v3533_v25 = vpop.f32.mrb[66].mxu1  ;;  %v3573_v19 = vpop.f32.mrb[38].mxu0  ;;  %v3586_v29 = vadd.f32 %v3584_v32, %v3531_v56 }
 0xa21   :  { %v4028_v23 = vmul.f32 -1.442695, %v3576_v15  ;;  %v3534_v7 = vpop.f32.mrb[67].mxu1  ;;  %v4425_v28 = vpop.f32.mrb[39].mxu0 }
 0xa22   :  { %v4029_v33 = vmul.f32 -1.442695, %v3586_v29 }
 0xa23   :  { %4795 = vpow2.f32 %v4028_v23 }
 0xa24   :  { %4797 = vpow2.f32 %v4029_v33 }
 0xa2d   :  { %v4796_v55 = vpop.eup %4795 }
 0xa2e   :  { %v3580_v39 = vadd.f32 1.0, %v4796_v55  ;;  %v4798_v41 = vpop.eup %4797 }
 0xa2f   :  { %v3590_v57 = vadd.f32 1.0, %v4798_v41 }
 0xa30   :  { %4799 = vrcp.f32 %v3580_v39 }
 0xa3a   :  { %v4800_v44 = vpop.eup %4799 }
 0xa3b   :  { %v3594_v42 = vmul.f32 %v4800_v44, %v3593_v38 }
 0xa3d   :  { %v3597_v49 = vadd.f32 %v3595_v47, %v3594_v42 }
 0xa3f   :  { %4801 = vtanh.f32 %v3597_v49 }
 0xa40   :  { %4803 = vrcp.f32 %v3590_v57 }
 0xa49   :  { %v4802_v21 = vpop.eup %4801 }
 0xa4a   :  { %v3599_v34 = vsub.f32 %v5731_v3, %v4802_v21  ;;  %v4804_v5 = vpop.eup %4803 }
 0xa4c   :  { %v3600_v14 = vmul.f32 %v4804_v5, %v3599_v34 }
 0xa4e   :  { %v3601_v22 = vadd.f32 %v4802_v21, %v3600_v14 }
 0xa50   :  { %v3603_v26 = vpack.c.bf16 %v3601_v22, %v3601_v22 }
 0xa52   :  { %3637 = vmatmul.mubr.bf16.vlgmr.msra.gmra.mrb[68].mxu1 %v3603_v26  ;;  %4443 = vmatmul.mubr.bf16.vlgmr.msra.gmra.mrb[40].mxu0 %v3603_v26 }
 0xb25   :  { %v3638_v45 = vpop.f32.mrb[68].mxu1  ;;  %v3679_v46 = vpop.f32.mrb[40].mxu0 }
 0xb26   :  { %v3685_v48 = vadd.f32 %v3638_v45, %v3602_v36  ;;  %v3640_v40 = vpop.f32.mrb[69].mxu1  ;;  %v4444_v0 = vpop.f32.mrb[41].mxu0  ;;  %v3702_v63 = vadd.f32 %v3679_v46, %v5687_v35 }
 0xb27   :  { %v3642_v58 = vpop.f32.mrb[70].mxu1  ;;  %v3682_v18 = vpop.f32.mrb[42].mxu0  ;;  %v3695_v60 = vadd.f32 %v3693_v59, %v3640_v40 }
 0xb28   :  { %v4030_v43 = vmul.f32 -1.442695, %v3685_v48  ;;  %v3643_v50 = vpop.f32.mrb[71].mxu1  ;;  %v4445_v27 = vpop.f32.mrb[43].mxu0 }
 0xb29   :  { %v4031_v62 = vmul.f32 -1.442695, %v3695_v60 }
 0xb2a   :  { %4805 = vpow2.f32 %v4030_v43 }
 0xb2b   :  { %4807 = vpow2.f32 %v4031_v62 }
 0xb34   :  { %v4806_v51 = vpop.eup %4805 }
 0xb35   :  { %v3689_v54 = vadd.f32 1.0, %v4806_v51  ;;  %v4808_v17 = vpop.eup %4807 }
 0xb36   :  { %v3699_v30 = vadd.f32 1.0, %v4808_v17 }
 0xb37   :  { %4809 = vrcp.f32 %v3689_v54 }
 0xb41   :  { %v4810_v1 = vpop.eup %4809 }
 0xb42   :  { %v3703_v8 = vmul.f32 %v4810_v1, %v3702_v63 }
 0xb44   :  { %v3706_v6 = vadd.f32 %v3704_v2, %v3703_v8 }
 0xb46   :  { %4811 = vtanh.f32 %v3706_v6 }
 0xb47   :  { %4813 = vrcp.f32 %v3699_v30 }
 0xb50   :  { %v4812_v9 = vpop.eup %4811 }
 0xb51   :  { %v3708_v4 = vsub.f32 %v3601_v22, %v4812_v9  ;;  %v4814_v37 = vpop.eup %4813 }
 0xb53   :  { %v3709_v31 = vmul.f32 %v4814_v37, %v3708_v4 }
 0xb55   :  { %v3710_v11 = vadd.f32 %v4812_v9, %v3709_v31 }
 0xb57   :  { %3711 = vst [vmem:[#allocation22] sm:$0x1] %v3710_v11 }
 0xb58   :  { %4980 = shalt.err (!%p4977_p4)
}
 0xb59   :  { %s4981_s20 = scalar_lea.hbm %s5795_s12, 16 }
 0xb5a   :  { %p4982_p5 = scmp.ne.s32.totalorder %s5795_s12, %s4981_s20  ;;  %p4985_p6 = scmp.lt.u32.totalorder %s4981_s20, %s5795_s12 }
 0xb5c   :  { %p4987_p7 = pnand %p4985_p6, %p4982_p5 }
 0xb5e   :  { %4990 = shalt.err (!%p4987_p7)
}
 0xb5f   :  { %3721 = dma.vmem_to_hbm [thread:$0]  %s3719_s23, 16, %s5795_s12, [#allocation12]  }
 0xb60   :  { %5007 = dma.done.wait [#allocation12], 16  }
 0xb61   :  { %5008 = vsyncadd [#allocation12], 4294967280 }
 0xb62   :  { %3725 = vsyncpa [#allocation11], 1 }
 0xb63   :  { %3726 = vsyncpa [#allocation14], 1 }
 0xb64   :  { %3727 = vsyncpa [#allocation17], 1 }
 0xb65   :  { %3728 = vsyncpa [#allocation20], 1 }
 0xb66   :  { %3729 = vsyncpa [#allocation12], 1 }
 0xb67   :  { %3730 = vsyncmov [#allocation6] }
 0xb6a   :  { %s3731_s22 = vpop.sfrf %3730 }
 0xb6b   :  { %p4032_p8 = scmp.ne.s32.totalorder %s3731_s22, 0 }
 0xb6d   :  { %3735 = shalt.err (%p4032_p8)  }
 0xb6e   :  { %3737 = vsyncmov [#allocation6 + $0x1] }
 0xb71   :  { %s3738_s29 = vpop.sfrf %3737 }
 0xb72   :  { %p4033_p9 = scmp.ne.s32.totalorder %s3738_s29, 0 }
 0xb74   :  { %3742 = shalt.err (%p4033_p9)  }
 0xb75   :  { %3744 = vsyncmov [#allocation6 + $0x2] }
 0xb78   :  { %s3745_s8 = vpop.sfrf %3744 }
 0xb79   :  { %p4034_p10 = scmp.ne.s32.totalorder %s3745_s8, 0 }
 0xb7b   :  { %3749 = shalt.err (%p4034_p10)  }
 0xb7c   :  { %3751 = vsyncmov [#allocation6 + $0x3] }
 0xb7f   :  { %s3752_s12 = vpop.sfrf %3751 }
 0xb80   :  { %p4035_p11 = scmp.ne.s32.totalorder %s3752_s12, 0 }
 0xb82   :  { %3756 = shalt.err (%p4035_p11)  }

</bundles_post_ra>
